<compile_context>
chip_gen: v6e
topology: v6e:2x2x1
jax: 0.10.0
libtpu: 0.0.40
codegen_flags: <defaults>
</compile_context>

<pallas_src>
import functools

import jax
import jax.numpy as jnp
from jax.experimental import pallas as pl
from jax.experimental.pallas import tpu as pltpu

INPUT_SIZE = 338
PADDED_INPUT = 384          # next multiple of 128 (lane-aligned K for the 1st matmul)
H1 = 512
H2 = 256
ACTION_SIZE = 4
NEG_INF = -1.0e9


def _round_up(n, m):
    return ((n + m - 1) // m) * m


def _actor_kernel(x_ref, w1_ref, b1_ref, w2_ref, b2_ref, w3_ref, b3_ref,
                  mask_ref, logits_ref, probs_ref, logp_ref, ent_ref, xpad_ref):
    # ----- in-kernel cast f32->bf16 and zero-pad features 338 -> 384 -----
    # (zero every step: with "parallel" semantics each core has its own scratch)
    xpad_ref[...] = jnp.zeros_like(xpad_ref)
    xpad_ref[:, :INPUT_SIZE] = x_ref[...].astype(jnp.bfloat16)
    x = xpad_ref[...]                                               # (TB, 384) bf16

    # ----- Linear(384 -> 512) + ReLU : bf16 MXU matmul, f32 accumulation -----
    h1 = jnp.dot(x, w1_ref[...], preferred_element_type=jnp.float32) + b1_ref[...]
    h1 = jnp.maximum(h1, 0.0)                                       # f32

    # ----- Linear(512 -> 256) + ReLU -----
    h2 = jnp.dot(h1.astype(jnp.bfloat16), w2_ref[...],
                 preferred_element_type=jnp.float32) + b2_ref[...]
    h2 = jnp.maximum(h2, 0.0)                                       # f32

    # ----- Linear(256 -> 4) -----
    logits = jnp.dot(h2.astype(jnp.bfloat16), w3_ref[...],
                     preferred_element_type=jnp.float32) + b3_ref[...]

    # ----- action mask: logits[action_mask == 0] = -1e9 (f32) -----
    logits = jnp.where(mask_ref[...] == 0, NEG_INF, logits)
    logits_ref[...] = logits

    # ----- Categorical(logits): probs, log_probs, entropy (all f32) -----
    m = jnp.max(logits, axis=-1, keepdims=True)
    e = jnp.exp(logits - m)
    s = jnp.sum(e, axis=-1, keepdims=True)                          # >= 1
    probs = e * pl.reciprocal(s, approx=True)                       # EUP slot, free
    probs_ref[...] = probs
    log_probs = (logits - m) - jnp.log(s)
    logp_ref[...] = log_probs
    ent_ref[...] = -jnp.sum(probs * log_probs, axis=-1, keepdims=True)


def prepare_params(params):
    """One-time weight prep: pad w1 fan-in 338->384 (zero rows, so the padded x
    columns contribute nothing) and cast weight matrices to bf16. Biases stay
    f32 (added after f32 accumulation)."""
    w1, b1, w2, b2, w3, b3 = params
    w1p = jnp.pad(w1, ((0, PADDED_INPUT - INPUT_SIZE), (0, 0)))
    return (w1p.astype(jnp.bfloat16), b1.reshape(1, -1).astype(jnp.float32),
            w2.astype(jnp.bfloat16), b2.reshape(1, -1).astype(jnp.float32),
            w3.astype(jnp.bfloat16), b3.reshape(1, -1).astype(jnp.float32))


@functools.partial(jax.jit, static_argnames=("max_block_b",))
def actor_ppo_forward(x, prepared_params, action_mask=None, *, max_block_b=1024):
    """Batched ActorPPO forward in one Pallas call.

    Returns (masked_logits, probs, log_probs, entropy) -- the data backing
    Categorical(logits=...). Tiling: two balanced batch blocks (capped at
    `max_block_b` rows) so v7x megacore is fully used and per-step overhead is
    amortized on single-TC parts.
    """
    w1, b1, w2, b2, w3, b3 = prepared_params
    B = x.shape[0]
    if action_mask is None:
        action_mask = jnp.ones((B, ACTION_SIZE), jnp.int32)

    # Two balanced blocks (v7x has 2 TensorCores); a single block when B <= 128.
    tb = min(_round_up(pl.cdiv(B, 2), 128), max_block_b)
    n_blocks = pl.cdiv(B, tb)
    b_pad = n_blocks * tb

    # Only a batch-axis pad remains in the wrapper (no-op when B % tb == 0);
    # feature padding + bf16 cast happen inside the kernel.
    x_p = x.astype(jnp.float32)
    mask_p = action_mask.astype(jnp.int32)
    if b_pad != B:
        x_p = jnp.pad(x_p, ((0, b_pad - B), (0, 0)))
        mask_p = jnp.pad(mask_p, ((0, b_pad - B), (0, 0)), constant_values=1)

    n_weight_elems = PADDED_INPUT * H1 + H1 * H2 + H2 * ACTION_SIZE
    cost = pl.CostEstimate(
        flops=2 * b_pad * n_weight_elems,
        transcendentals=b_pad * (ACTION_SIZE + 2),          # exp x4, log, recip
        bytes_accessed=(b_pad * INPUT_SIZE * 4              # x (f32)
                        + n_weight_elems * 2                # weights (bf16)
                        + (H1 + H2 + ACTION_SIZE) * 4       # biases (f32)
                        + b_pad * ACTION_SIZE * 4           # mask (i32)
                        + b_pad * (3 * ACTION_SIZE + 1) * 4))  # 4 outputs (f32)

    # Tight-ish scoped-VMEM limit: actual usage is a few MiB; keep headroom for
    # XLA to overlap surrounding PPO ops (esp. on v7x's 64 MiB VMEM).
    vmem_limit = (16 << 20) if tb <= 512 else (32 << 20)

    logits, probs, log_probs, entropy = pl.pallas_call(
        _actor_kernel,
        out_shape=(jax.ShapeDtypeStruct((b_pad, ACTION_SIZE), jnp.float32),
                   jax.ShapeDtypeStruct((b_pad, ACTION_SIZE), jnp.float32),
                   jax.ShapeDtypeStruct((b_pad, ACTION_SIZE), jnp.float32),
                   jax.ShapeDtypeStruct((b_pad, 1), jnp.float32)),
        grid_spec=pltpu.PrefetchScalarGridSpec(
            num_scalar_prefetch=0,
            grid=(n_blocks,),
            in_specs=[
                pl.BlockSpec((tb, INPUT_SIZE), lambda i: (i, 0)),     # x tile (f32, raw)
                pl.BlockSpec((PADDED_INPUT, H1), lambda i: (0, 0)),   # w1 (resident)
                pl.BlockSpec((1, H1), lambda i: (0, 0)),              # b1
                pl.BlockSpec((H1, H2), lambda i: (0, 0)),             # w2
                pl.BlockSpec((1, H2), lambda i: (0, 0)),              # b2
                pl.BlockSpec((H2, ACTION_SIZE), lambda i: (0, 0)),    # w3
                pl.BlockSpec((1, ACTION_SIZE), lambda i: (0, 0)),     # b3
                pl.BlockSpec((tb, ACTION_SIZE), lambda i: (i, 0)),    # mask tile
            ],
            out_specs=(
                pl.BlockSpec((tb, ACTION_SIZE), lambda i: (i, 0)),    # masked logits
                pl.BlockSpec((tb, ACTION_SIZE), lambda i: (i, 0)),    # softmax probs
                pl.BlockSpec((tb, ACTION_SIZE), lambda i: (i, 0)),    # log_probs
                pl.BlockSpec((tb, 1), lambda i: (i, 0)),              # entropy
            ),
            scratch_shapes=[pltpu.VMEM((tb, PADDED_INPUT), jnp.bfloat16)],
        ),
        compiler_params=pltpu.CompilerParams(
            dimension_semantics=("parallel",),
            vmem_limit_bytes=vmem_limit),
        cost_estimate=cost,
    )(x_p, w1, b1, w2, b2, w3, b3, mask_p)

    return logits[:B], probs[:B], log_probs[:B], entropy[:B]


def init_params(key):
    """Deterministic init mimicking nn.Linear default (U[-1/sqrt(fan_in), +])."""
    ks = jax.random.split(key, 6)

    def lin(kw, kb, fan_in, fan_out):
        bound = 1.0 / jnp.sqrt(float(fan_in))
        w = jax.random.uniform(kw, (fan_in, fan_out), jnp.float32, -bound, bound)
        b = jax.random.uniform(kb, (1, fan_out), jnp.float32, -bound, bound)
        return w, b

    w1, b1 = lin(ks[0], ks[1], INPUT_SIZE, H1)
    w2, b2 = lin(ks[2], ks[3], H1, H2)
    w3, b3 = lin(ks[4], ks[5], H2, ACTION_SIZE)
    return w1, b1, w2, b2, w3, b3


def reference_forward_bf16(x, params, action_mask):
    """Same math as the kernel (bf16 dot inputs, f32 accumulation/elementwise)."""
    w1, b1, w2, b2, w3, b3 = params
    h1 = jnp.maximum(jnp.dot(x.astype(jnp.bfloat16), w1.astype(jnp.bfloat16),
                             preferred_element_type=jnp.float32) + b1, 0.0)
    h2 = jnp.maximum(jnp.dot(h1.astype(jnp.bfloat16), w2.astype(jnp.bfloat16),
                             preferred_element_type=jnp.float32) + b2, 0.0)
    logits = jnp.dot(h2.astype(jnp.bfloat16), w3.astype(jnp.bfloat16),
                     preferred_element_type=jnp.float32) + b3
    logits = jnp.where(action_mask == 0, NEG_INF, logits)
    probs = jax.nn.softmax(logits, axis=-1)
    log_probs = jax.nn.log_softmax(logits, axis=-1)
    entropy = -jnp.sum(probs * log_probs, axis=-1, keepdims=True)
    return logits, probs, log_probs, entropy


def reference_forward_f32(x, params, action_mask):
    """Pure-f32 semantics of the original PyTorch module."""
    w1, b1, w2, b2, w3, b3 = params
    h1 = jnp.maximum(x @ w1 + b1, 0.0)
    h2 = jnp.maximum(h1 @ w2 + b2, 0.0)
    logits = h2 @ w3 + b3
    logits = jnp.where(action_mask == 0, NEG_INF, logits)
    return logits, jax.nn.softmax(logits, axis=-1)


if __name__ == "__main__":
    key = jax.random.PRNGKey(0)
    k_param, k_x, k_mask = jax.random.split(key, 3)

    params = init_params(k_param)
    prepared = prepare_params(params)

    # Batch a PPO minibatch through one call: b_pad=512 -> two balanced 256-row
    # blocks (both v7x TensorCores busy; weights DMA'd once and kept resident).
    B = 512
    x = jax.random.normal(k_x, (B, INPUT_SIZE), jnp.float32)
    action_mask = (jax.random.uniform(k_mask, (B, ACTION_SIZE)) > 0.3).astype(jnp.int32)
    action_mask = action_mask.at[:, 0].set(1)   # at least one legal action per row

    logits, probs, log_probs, entropy = actor_ppo_forward(x, prepared, action_mask)
    jax.block_until_ready((logits, probs, log_probs, entropy))
    assert logits.shape == (B, ACTION_SIZE) and probs.shape == (B, ACTION_SIZE)
    assert log_probs.shape == (B, ACTION_SIZE) and entropy.shape == (B, 1)

    # Check against a bf16-consistent reference (same casts as the kernel).
    ref_logits, ref_probs, ref_logp, ref_ent = reference_forward_bf16(
        x, params, action_mask)
    assert jnp.allclose(logits, ref_logits, atol=2e-3, rtol=2e-3)
    assert jnp.allclose(probs, ref_probs, atol=1e-3, rtol=1e-3)
    assert jnp.allclose(log_probs, ref_logp, atol=5e-3, rtol=2e-3)
    assert jnp.allclose(entropy, ref_ent, atol=5e-3)

    # Loose sanity check against the original pure-f32 module semantics.
    f32_logits, f32_probs = reference_forward_f32(x, params, action_mask)
    assert jnp.allclose(logits, f32_logits, atol=5e-2, rtol=5e-2)
    assert jnp.allclose(probs, f32_probs, atol=1e-2)

    # Ragged batch (exercises the batch-pad path and the single-block grid).
    B2 = 37
    l2, p2, lp2, e2 = actor_ppo_forward(x[:B2], prepared, action_mask[:B2])
    jax.block_until_ready((l2, p2, lp2, e2))
    assert l2.shape == (B2, ACTION_SIZE)
    r2_logits, r2_probs, _, _ = reference_forward_bf16(x[:B2], params, action_mask[:B2])
    assert jnp.allclose(l2, r2_logits, atol=2e-3, rtol=2e-3)
    assert jnp.allclose(p2, r2_probs, atol=1e-3, rtol=1e-3)

    # TODO(synk): Categorical sampling stays outside the kernel (computed from the
    # returned logits/probs), matching the PyTorch module which returns a
    # distribution object rather than a tensor.
    print("KERNEL_OK")
</pallas_src>

<mosaic_0001>
module attributes {stable_mosaic.version = 11 : i64} {
  func.func @_actor_kernel(%arg0: i32, %arg1: memref<256x338xf32, #tpu.memory_space<vmem>>, %arg2: memref<384x512xbf16, #tpu.memory_space<vmem>>, %arg3: memref<1x512xf32, #tpu.memory_space<vmem>>, %arg4: memref<512x256xbf16, #tpu.memory_space<vmem>>, %arg5: memref<1x256xf32, #tpu.memory_space<vmem>>, %arg6: memref<256x4xbf16, #tpu.memory_space<vmem>>, %arg7: memref<1x4xf32, #tpu.memory_space<vmem>>, %arg8: memref<256x4xi32, #tpu.memory_space<vmem>>, %arg9: memref<256x4xf32, #tpu.memory_space<vmem>>, %arg10: memref<256x4xf32, #tpu.memory_space<vmem>>, %arg11: memref<256x4xf32, #tpu.memory_space<vmem>>, %arg12: memref<256x1xf32, #tpu.memory_space<vmem>>, %arg13: memref<256x384xbf16, #tpu.memory_space<vmem>>) attributes {dimension_semantics = [#tpu.dimension_semantics<parallel>], iteration_bounds = array<i64: 2>, scalar_prefetch = 0 : i64, scratch_operands = 1 : i64, tpu.core_type = #tpu.core_type<tc>, window_params = [{transform_indices = @transform_0, window_bounds = array<i64: 256, 338>}, {pipeline_mode = #tpu.pipeline_mode<synchronous>, transform_indices = @transform_1, window_bounds = array<i64: 384, 512>}, {pipeline_mode = #tpu.pipeline_mode<synchronous>, transform_indices = @transform_2, window_bounds = array<i64: 1, 512>}, {pipeline_mode = #tpu.pipeline_mode<synchronous>, transform_indices = @transform_3, window_bounds = array<i64: 512, 256>}, {pipeline_mode = #tpu.pipeline_mode<synchronous>, transform_indices = @transform_4, window_bounds = array<i64: 1, 256>}, {pipeline_mode = #tpu.pipeline_mode<synchronous>, transform_indices = @transform_5, window_bounds = array<i64: 256, 4>}, {pipeline_mode = #tpu.pipeline_mode<synchronous>, transform_indices = @transform_6, window_bounds = array<i64: 1, 4>}, {transform_indices = @transform_7, window_bounds = array<i64: 256, 4>}, {transform_indices = @transform_8, window_bounds = array<i64: 256, 4>}, {transform_indices = @transform_9, window_bounds = array<i64: 256, 4>}, {transform_indices = @transform_10, window_bounds = array<i64: 256, 4>}, {transform_indices = @transform_11, window_bounds = array<i64: 256, 1>}]} {
    %cst = arith.constant 0.000000e+00 : bf16
    %0 = vector.broadcast %cst : bf16 to vector<256x384xbf16>
    %c0 = arith.constant 0 : index
    %c0_0 = arith.constant 0 : index
    %1 = vector.load %arg13[%c0, %c0_0] : memref<256x384xbf16, #tpu.memory_space<vmem>>, vector<256x384xbf16>
    tpu.vector_store %arg13[%c0, %c0_0], %0 {strides = array<i32>} : memref<256x384xbf16, #tpu.memory_space<vmem>>, vector<256x384xbf16>,
    %c0_1 = arith.constant 0 : index
    %c0_2 = arith.constant 0 : index
    %2 = vector.load %arg1[%c0_1, %c0_2] : memref<256x338xf32, #tpu.memory_space<vmem>>, vector<256x338xf32>
    %3 = arith.truncf %2 : vector<256x338xf32> to vector<256x338xbf16>
    %c0_3 = arith.constant 0 : index
    %c0_4 = arith.constant 0 : index
    %4 = vector.load %arg13[%c0_3, %c0_4] : memref<256x384xbf16, #tpu.memory_space<vmem>>, vector<256x338xbf16>
    tpu.vector_store %arg13[%c0_3, %c0_4], %3 {strides = array<i32>} : memref<256x384xbf16, #tpu.memory_space<vmem>>, vector<256x338xbf16>,
    %c0_5 = arith.constant 0 : index
    %c0_6 = arith.constant 0 : index
    %5 = vector.load %arg13[%c0_5, %c0_6] : memref<256x384xbf16, #tpu.memory_space<vmem>>, vector<256x384xbf16>
    %c0_7 = arith.constant 0 : index
    %c0_8 = arith.constant 0 : index
    %6 = vector.load %arg2[%c0_7, %c0_8] : memref<384x512xbf16, #tpu.memory_space<vmem>>, vector<384x512xbf16>
    %cst_9 = arith.constant dense<0.000000e+00> : vector<256x512xf32>
    %7 = tpu.matmul %5, %6, %cst_9 {dimension_numbers = #tpu.dot_dimension_numbers<[1], [0], [0], [1], [0, 0, 1, 1], [], []>} : vector<256x384xbf16>, vector<384x512xbf16>, vector<256x512xf32> -> vector<256x512xf32>
    %c0_10 = arith.constant 0 : index
    %c0_11 = arith.constant 0 : index
    %8 = vector.load %arg3[%c0_10, %c0_11] : memref<1x512xf32, #tpu.memory_space<vmem>>, vector<1x512xf32>
    %9 = vector.broadcast %8 : vector<1x512xf32> to vector<256x512xf32>
    %10 = arith.addf %7, %9 : vector<256x512xf32>
    %cst_12 = arith.constant 0.000000e+00 : f32
    %11 = vector.broadcast %cst_12 : f32 to vector<256x512xf32>
    %12 = arith.maximumf %10, %11 : vector<256x512xf32>
    %13 = arith.truncf %12 : vector<256x512xf32> to vector<256x512xbf16>
    %c0_13 = arith.constant 0 : index
    %c0_14 = arith.constant 0 : index
    %14 = vector.load %arg4[%c0_13, %c0_14] : memref<512x256xbf16, #tpu.memory_space<vmem>>, vector<512x256xbf16>
    %cst_15 = arith.constant dense<0.000000e+00> : vector<256x256xf32>
    %15 = tpu.matmul %13, %14, %cst_15 {dimension_numbers = #tpu.dot_dimension_numbers<[1], [0], [0], [1], [0, 0, 1, 1], [], []>} : vector<256x512xbf16>, vector<512x256xbf16>, vector<256x256xf32> -> vector<256x256xf32>
    %c0_16 = arith.constant 0 : index
    %c0_17 = arith.constant 0 : index
    %16 = vector.load %arg5[%c0_16, %c0_17] : memref<1x256xf32, #tpu.memory_space<vmem>>, vector<1x256xf32>
    %17 = vector.broadcast %16 : vector<1x256xf32> to vector<256x256xf32>
    %18 = arith.addf %15, %17 : vector<256x256xf32>
    %cst_18 = arith.constant 0.000000e+00 : f32
    %19 = vector.broadcast %cst_18 : f32 to vector<256x256xf32>
    %20 = arith.maximumf %18, %19 : vector<256x256xf32>
    %21 = arith.truncf %20 : vector<256x256xf32> to vector<256x256xbf16>
    %c0_19 = arith.constant 0 : index
    %c0_20 = arith.constant 0 : index
    %22 = vector.load %arg6[%c0_19, %c0_20] : memref<256x4xbf16, #tpu.memory_space<vmem>>, vector<256x4xbf16>
    %cst_21 = arith.constant dense<0.000000e+00> : vector<256x4xf32>
    %23 = tpu.matmul %21, %22, %cst_21 {dimension_numbers = #tpu.dot_dimension_numbers<[1], [0], [0], [1], [0, 0, 1, 1], [], []>} : vector<256x256xbf16>, vector<256x4xbf16>, vector<256x4xf32> -> vector<256x4xf32>
    %c0_22 = arith.constant 0 : index
    %c0_23 = arith.constant 0 : index
    %24 = vector.load %arg7[%c0_22, %c0_23] : memref<1x4xf32, #tpu.memory_space<vmem>>, vector<1x4xf32>
    %25 = vector.broadcast %24 : vector<1x4xf32> to vector<256x4xf32>
    %26 = arith.addf %23, %25 : vector<256x4xf32>
    %c0_24 = arith.constant 0 : index
    %c0_25 = arith.constant 0 : index
    %27 = vector.load %arg8[%c0_24, %c0_25] : memref<256x4xi32, #tpu.memory_space<vmem>>, vector<256x4xi32>
    %c0_i32 = arith.constant 0 : i32
    %28 = vector.broadcast %c0_i32 : i32 to vector<256x4xi32>
    %29 = arith.cmpi eq, %27, %28 : vector<256x4xi32>
    %cst_26 = arith.constant -1.000000e+09 : f32
    %30 = vector.broadcast %cst_26 : f32 to vector<256x4xf32>
    %31 = arith.select %29, %30, %26 : vector<256x4xi1>, vector<256x4xf32>
    %c0_27 = arith.constant 0 : index
    %c0_28 = arith.constant 0 : index
    %32 = vector.load %arg9[%c0_27, %c0_28] : memref<256x4xf32, #tpu.memory_space<vmem>>, vector<256x4xf32>
    tpu.vector_store %arg9[%c0_27, %c0_28], %31 {strides = array<i32>} : memref<256x4xf32, #tpu.memory_space<vmem>>, vector<256x4xf32>,
    %cst_29 = arith.constant dense<0xFF800000> : vector<256xf32>
    %33 = vector.multi_reduction <maximumf>, %31, %cst_29 [1] : vector<256x4xf32> to vector<256xf32>
    %34 = vector.shape_cast %33 : vector<256xf32> to vector<256x1xf32>
    %35 = vector.broadcast %34 : vector<256x1xf32> to vector<256x4xf32>
    %36 = arith.subf %31, %35 : vector<256x4xf32>
    %37 = math.exp %36 : vector<256x4xf32>
    %cst_30 = arith.constant dense<0.000000e+00> : vector<256xf32>
    %38 = vector.multi_reduction <add>, %37, %cst_30 [1] : vector<256x4xf32> to vector<256xf32>
    %39 = vector.shape_cast %38 : vector<256xf32> to vector<256x1xf32>
    %40 = tpu.reciprocal %39 {approx = true} : vector<256x1xf32> -> vector<256x1xf32>
    %41 = vector.broadcast %40 : vector<256x1xf32> to vector<256x4xf32>
    %42 = arith.mulf %37, %41 : vector<256x4xf32>
    %c0_31 = arith.constant 0 : index
    %c0_32 = arith.constant 0 : index
    %43 = vector.load %arg10[%c0_31, %c0_32] : memref<256x4xf32, #tpu.memory_space<vmem>>, vector<256x4xf32>
    tpu.vector_store %arg10[%c0_31, %c0_32], %42 {strides = array<i32>} : memref<256x4xf32, #tpu.memory_space<vmem>>, vector<256x4xf32>,
    %44 = vector.broadcast %34 : vector<256x1xf32> to vector<256x4xf32>
    %45 = arith.subf %31, %44 : vector<256x4xf32>
    %46 = math.log %39 : vector<256x1xf32>
    %47 = vector.broadcast %46 : vector<256x1xf32> to vector<256x4xf32>
    %48 = arith.subf %45, %47 : vector<256x4xf32>
    %c0_33 = arith.constant 0 : index
    %c0_34 = arith.constant 0 : index
    %49 = vector.load %arg11[%c0_33, %c0_34] : memref<256x4xf32, #tpu.memory_space<vmem>>, vector<256x4xf32>
    tpu.vector_store %arg11[%c0_33, %c0_34], %48 {strides = array<i32>} : memref<256x4xf32, #tpu.memory_space<vmem>>, vector<256x4xf32>,
    %50 = arith.mulf %42, %48 : vector<256x4xf32>
    %cst_35 = arith.constant dense<0.000000e+00> : vector<256xf32>
    %51 = vector.multi_reduction <add>, %50, %cst_35 [1] : vector<256x4xf32> to vector<256xf32>
    %52 = vector.shape_cast %51 : vector<256xf32> to vector<256x1xf32>
    %cst_36 = arith.constant 0.000000e+00 : f32
    %53 = vector.broadcast %cst_36 : f32 to vector<256x1xf32>
    %54 = arith.subf %53, %52 : vector<256x1xf32>
    %c0_37 = arith.constant 0 : index
    %c0_38 = arith.constant 0 : index
    %55 = vector.load %arg12[%c0_37, %c0_38] : memref<256x1xf32, #tpu.memory_space<vmem>>, vector<256x1xf32>
    tpu.vector_store %arg12[%c0_37, %c0_38], %54 {strides = array<i32>} : memref<256x1xf32, #tpu.memory_space<vmem>>, vector<256x1xf32>,
    return
  }
  func.func @transform_0(%arg0: i32) -> (i32, i32) {
    %c0_i32 = arith.constant 0 : i32
    %c0_i32_0 = arith.constant 0 : i32
    return %arg0, %c0_i32 : i32, i32
  }
  func.func @transform_1(%arg0: i32) -> (i32, i32) {
    %c0_i32 = arith.constant 0 : i32
    %c0_i32_0 = arith.constant 0 : i32
    %c0_i32_1 = arith.constant 0 : i32
    return %c0_i32, %c0_i32_0 : i32, i32
  }
  func.func @transform_2(%arg0: i32) -> (i32, i32) {
    %c0_i32 = arith.constant 0 : i32
    %c0_i32_0 = arith.constant 0 : i32
    %c0_i32_1 = arith.constant 0 : i32
    return %c0_i32, %c0_i32_0 : i32, i32
  }
  func.func @transform_3(%arg0: i32) -> (i32, i32) {
    %c0_i32 = arith.constant 0 : i32
    %c0_i32_0 = arith.constant 0 : i32
    %c0_i32_1 = arith.constant 0 : i32
    return %c0_i32, %c0_i32_0 : i32, i32
  }
  func.func @transform_4(%arg0: i32) -> (i32, i32) {
    %c0_i32 = arith.constant 0 : i32
    %c0_i32_0 = arith.constant 0 : i32
    %c0_i32_1 = arith.constant 0 : i32
    return %c0_i32, %c0_i32_0 : i32, i32
  }
  func.func @transform_5(%arg0: i32) -> (i32, i32) {
    %c0_i32 = arith.constant 0 : i32
    %c0_i32_0 = arith.constant 0 : i32
    %c0_i32_1 = arith.constant 0 : i32
    return %c0_i32, %c0_i32_0 : i32, i32
  }
  func.func @transform_6(%arg0: i32) -> (i32, i32) {
    %c0_i32 = arith.constant 0 : i32
    %c0_i32_0 = arith.constant 0 : i32
    %c0_i32_1 = arith.constant 0 : i32
    return %c0_i32, %c0_i32_0 : i32, i32
  }
  func.func @transform_7(%arg0: i32) -> (i32, i32) {
    %c0_i32 = arith.constant 0 : i32
    %c0_i32_0 = arith.constant 0 : i32
    return %arg0, %c0_i32 : i32, i32
  }
  func.func @transform_8(%arg0: i32) -> (i32, i32) {
    %c0_i32 = arith.constant 0 : i32
    %c0_i32_0 = arith.constant 0 : i32
    return %arg0, %c0_i32 : i32, i32
  }
  func.func @transform_9(%arg0: i32) -> (i32, i32) {
    %c0_i32 = arith.constant 0 : i32
    %c0_i32_0 = arith.constant 0 : i32
    return %arg0, %c0_i32 : i32, i32
  }
  func.func @transform_10(%arg0: i32) -> (i32, i32) {
    %c0_i32 = arith.constant 0 : i32
    %c0_i32_0 = arith.constant 0 : i32
    return %arg0, %c0_i32 : i32, i32
  }
  func.func @transform_11(%arg0: i32) -> (i32, i32) {
    %c0_i32 = arith.constant 0 : i32
    %c0_i32_0 = arith.constant 0 : i32
    return %arg0, %c0_i32 : i32, i32
  }
}

</mosaic_0001>

<bundles_post_ra>
// kernel: actor_ppo_forward.1
= control target key start
LH: loop header
LB: loop body
LE: loop exit
PB: predicated region body
PF: predicated region fallthrough
CT: control target
= control target key end

     0   :  { %s6146_s17 = smov 0   ;;  %s8839_s0 = inlined_call_operand.vmem [shape: f32[512,338], index: 0, kind: input, shape index: {}]   ;;  %s8840_s1 = inlined_call_operand.vmem [shape: bf16[384,512], index: 1, kind: input, shape index: {}]   ;;  %s8841_s2 = inlined_call_operand.vmem [shape: f32[1,512], index: 2, kind: input, shape index: {}]   ;;  %s8842_s3 = inlined_call_operand.vmem [shape: bf16[512,256], index: 3, kind: input, shape index: {}]   ;;  %s8843_s4 = inlined_call_operand.vmem [shape: f32[1,256], index: 4, kind: input, shape index: {}]   ;;  %s8844_s5 = inlined_call_operand.vmem [shape: bf16[256,4], index: 5, kind: input, shape index: {}]   ;;  %s8845_s6 = inlined_call_operand.vmem [shape: f32[1,4], index: 6, kind: input, shape index: {}]   ;;  %s8846_s7 = inlined_call_operand.vmem [shape: s32[512,4], index: 7, kind: input, shape index: {}]   ;;  %s8847_s8 = inlined_call_operand.vmem [shape: f32[512,4], index: 8, kind: output, shape index: {0}]   ;;  %s8848_s9 = inlined_call_operand.vmem [shape: f32[512,4], index: 9, kind: output, shape index: {1}]   ;;  %s8849_s10 = inlined_call_operand.vmem [shape: f32[512,4], index: 10, kind: output, shape index: {2}]   ;;  %s8850_s11 = inlined_call_operand.vmem [shape: f32[512,1], index: 11, kind: output, shape index: {3}]  }
   0x1 LB: > { %s5061_s18 = sadd.s32 4294967295, %s6083_s17   ;;  %p5065_p0 = scmp.ge.s32.totalorder %s6083_s17, 1  ;;  %s6083_s17 = sphi %s6146_s17, %s22_s17  }
   0x2   : > { %p357_p1 = scmp.lt.s32.totalorder %s6083_s17, 3 }
   0x4   : > { %p358_p2 = pnand %p5065_p0, %p357_p1 }
   0x6   : > { %361 = sbr.rel (%p358_p2) target bundleno = 1447 (0x5a7), region = 52 }
   0xb   : > { %v5571_v0 = vld [vmem:[%s8840_s1 + $0xe4] ss:$16 sps:$4 sm:$0xff]   ;;  %v5573_v1 = vld [vmem:[%s8840_s1 + $0xe0] ss:$16 sps:$4 sm:$0xff]   ;;  %v8851_v2 = vmov 0   ;;  %s5066_s27 = sshll.u32 %s5061_s18, 5 }
   0xc   : > { %457 = vst [vmem:[#allocation2 + $0x8] sm:$0xf] %v8851_v2  ;;  %459 = vst [vmem:[#allocation2 + $0x14] sm:$0xf] %v8851_v2  ;;  %2204 = vmatprep.mubr.bf16.mxu1 %v8851_v2  ;;  %1919 = vmatprep.subr.bf16.mxu0 %v5571_v0  ;;  %v5574_v3 = vld [vmem:[%s8840_s1 + $0xc4] ss:$16 sps:$4 sm:$0xff]  }
   0xd   : > { %461 = vst [vmem:[#allocation2 + $0x20] sm:$0xf] %v8851_v2  ;;  %463 = vst [vmem:[#allocation2 + $0x2c] sm:$0xf] %v8851_v2  ;;  %1920 = vmatpush1.bf16.msra.mxu0 %v5573_v1  ;;  %v5576_v4 = vld [vmem:[%s8840_s1 + $0xc0] ss:$16 sps:$4 sm:$0xff]  }
   0xe   : > { %465 = vst [vmem:[#allocation2 + $0x38] sm:$0xf] %v8851_v2  ;;  %467 = vst [vmem:[#allocation2 + $0x44] sm:$0xf] %v8851_v2  ;;  %1921 = vmatprep.subr.bf16.mxu0 %v5574_v3  ;;  %v5577_v5 = vld [vmem:[%s8840_s1 + $0xa4] ss:$16 sps:$4 sm:$0xff]  }
   0xf   : > { %469 = vst [vmem:[#allocation2 + $0x50] sm:$0xf] %v8851_v2  ;;  %471 = vst [vmem:[#allocation2 + $0x5c] sm:$0xf] %v8851_v2  ;;  %p419_p3 = scmp.lt.s32.totalorder %s5066_s27, 63  ;;  %vm937_vm0 = vcmask 666624  }
  0x10   : > { %473 = vst [vmem:[#allocation2 + $0x68] sm:$0xf] %v8851_v2  ;;  %475 = vst [vmem:[#allocation2 + $0x74] sm:$0xf] %v8851_v2  ;;  %v5579_v6 = vld [vmem:[%s8840_s1 + $0xa0] ss:$16 sps:$4 sm:$0xff]  }
  0x11   : > { %477 = vst [vmem:[#allocation2 + $0x80] sm:$0xf] %v8851_v2  ;;  %479 = vst [vmem:[#allocation2 + $0x8c] sm:$0xf] %v8851_v2  ;;  %1922 = vmatpush1.bf16.msra.mxu0 %v5576_v4  ;;  %v5580_v7 = vld [vmem:[%s8840_s1 + $0x84] ss:$16 sps:$4 sm:$0xff]  }
  0x12   : > { %481 = vst [vmem:[#allocation2 + $0x98] sm:$0xf] %v8851_v2  ;;  %483 = vst [vmem:[#allocation2 + $0xa4] sm:$0xf] %v8851_v2  ;;  %1923 = vmatprep.subr.bf16.mxu0 %v5577_v5  ;;  %s8978_s27 = smov (!%p419_p3, %s5066_s27), 63  ;;  %vm4153_vm2 = vcmask 31744  }
  0x13   : > { %485 = vst [vmem:[#allocation2 + $0xb0] sm:$0xf] %v8851_v2  ;;  %487 = vst [vmem:[#allocation2 + $0xbc] sm:$0xf] %v8851_v2  ;;  %v5582_v8 = vld [vmem:[%s8840_s1 + $0x80] ss:$16 sps:$4 sm:$0xff]  }
  0x14   : > { %489 = vst [vmem:[#allocation2 + $0xc8] sm:$0xf] %v8851_v2  ;;  %491 = vst [vmem:[#allocation2 + $0xd4] sm:$0xf] %v8851_v2  ;;  %v5583_v9 = vld [vmem:[%s8840_s1 + $0x64] ss:$16 sps:$4 sm:$0xff]  }
  0x15   : > { %493 = vst [vmem:[#allocation2 + $0xe0] sm:$0xf] %v8851_v2  ;;  %495 = vst [vmem:[#allocation2 + $0xec] sm:$0xf] %v8851_v2  ;;  %1924 = vmatpush1.bf16.msra.mxu0 %v5579_v6  ;;  %s5561_s20 = smul.u32 24, %s8978_s27  ;;  %s7967_s12 = sshll.u32 %s8978_s27, 3 }
  0x16   : > { %497 = vst [vmem:[#allocation2 + $0xf8] sm:$0xf] %v8851_v2  ;;  %499 = vst [vmem:[#allocation2 + $0x104] sm:$0xf] %v8851_v2  ;;  %1925 = vmatprep.subr.bf16.mxu0 %v5580_v7  ;;  %v5585_v10 = vld [vmem:[%s8840_s1 + $0x60] ss:$16 sps:$4 sm:$0xff]   ;;  %s7973_s15 = scalar_lea.vmem %s8846_s7, %s7967_s12  ;;  %s7986_s19 = scalar_lea.vmem %s8847_s8, %s7967_s12 }
  0x17   : > { %501 = vst [vmem:[#allocation2 + $0x110] sm:$0xf] %v8851_v2  ;;  %503 = vst [vmem:[#allocation2 + $0x11c] sm:$0xf] %v8851_v2  ;;  %v5586_v11 = vld [vmem:[%s8840_s1 + $0x44] ss:$16 sps:$4 sm:$0xff]   ;;  %s6228_s28 = scalar_lea.vmem %s8839_s0, %s5561_s20  ;;  %s8534_s22 = scalar_lea.vmem %s8848_s9, %s7967_s12 }
  0x18   : > { %505 = vst [vmem:[#allocation2 + $0x128] sm:$0xf] %v8851_v2  ;;  %507 = vst [vmem:[#allocation2 + $0x134] sm:$0xf] %v8851_v2  ;;  %v5588_v12 = vld [vmem:[%s8840_s1 + $0x40] ss:$16 sps:$4 sm:$0xff]   ;;  %s8541_s25 = scalar_lea.vmem %s8849_s10, %s7967_s12  ;;  %s8770_s30 = scalar_lea.vmem %s8850_s11, %s7967_s12 }
  0x19   : > { %509 = vst [vmem:[#allocation2 + $0x140] sm:$0xf] %v8851_v2  ;;  %511 = vst [vmem:[#allocation2 + $0x14c] sm:$0xf] %v8851_v2  ;;  %1926 = vmatpush1.bf16.msra.mxu0 %v5582_v8  ;;  %v5589_v13 = vld [vmem:[%s8840_s1 + $0x24] ss:$16 sps:$4 sm:$0xff]  }
  0x1a   : > { %513 = vst [vmem:[#allocation2 + $0x158] sm:$0xf] %v8851_v2  ;;  %515 = vst [vmem:[#allocation2 + $0x164] sm:$0xf] %v8851_v2  ;;  %1927 = vmatprep.subr.bf16.mxu0 %v5583_v9  ;;  %v5591_v14 = vld [vmem:[%s8840_s1 + $0x20] ss:$16 sps:$4 sm:$0xff]  }
  0x1b   : > { %517 = vst [vmem:[#allocation2 + $0x170] sm:$0xf] %v8851_v2  ;;  %519 = vst [vmem:[#allocation2 + $0x17c] sm:$0xf] %v8851_v2  ;;  %v6240_v15 = vld [vmem:[%s6228_s28] sm:$0xff]  ;;  %v521_v16 = vld [vmem:[%s6228_s28 + $0x8] sm:$0xff] }
  0x1c   : > { %v5592_v17 = vld [vmem:[%s8840_s1 + $0x4] ss:$16 sps:$4 sm:$0xff]   ;;  %v6247_v18 = vld [vmem:[%s6228_s28 + $0x18] sm:$0xff]  ;;  %v6253_v20 = vld [vmem:[%s8840_s1 + $0x2e0] ss:$16 sps:$4 sm:$0xff]  }
  0x1d   : > { %1928 = vmatpush1.bf16.msra.mxu0 %v5585_v10  ;;  %v524_v19 = vld [vmem:[%s6228_s28 + $0x20] sm:$0xff]  ;;  %v6261_v22 = vld [vmem:[%s6228_s28 + $0x30] sm:$0xff]  ;;  %v6264_v23 = vld [vmem:[%s6228_s28 + $0x38] sm:$0xff] }
  0x1e   : > { %1929 = vmatprep.subr.bf16.mxu0 %v5586_v11  ;;  %v6258_v21 = vld [vmem:[%s8840_s1 + $0x2e4] ss:$16 sps:$4 sm:$0xff]   ;;  %v6267_v24 = vld [vmem:[%s6228_s28 + $0x48] sm:$0xff]  ;;  %v5594_v25 = vld [vmem:[%s8840_s1] ss:$16 sps:$4 sm:$0xff]   ;;  %v6272_v26 = vpack.c.bf16 %v524_v19, %v521_v16 }
  0x1f   : > { %v6275_v27 = vld [vmem:[%s6228_s28 + $0x50] sm:$0xff]  ;;  %v6278_v28 = vld [vmem:[%s6228_s28 + $0x60] sm:$0xff]  ;;  %v6281_v29 = vld [vmem:[%s6228_s28 + $0x68] sm:$0xff]  ;;  %5545 = vmatprep.subr.bf16.mxu1 %v6258_v21 }
  0x20   : > { %8874 = vst [vmem:[#allocation3_spill] sm:$0xff] %v6272_v26  ;;  %v5595_v30 = vld [vmem:[%s8840_s1 + $0x1e4] ss:$16 sps:$4 sm:$0xff]   ;;  %v6288_v31 = vld [vmem:[%s6228_s28 + $0x78] sm:$0xff]  ;;  %5553 = vmatpush1.bf16.msra.mxu1 %v6253_v20  ;;  %1951 = vmatprep.mubr.bf16.mxu0 %v6272_v26  ;;  %v6298_v33 = vld [vmem:[%s8840_s1 + $0x2c0] ss:$16 sps:$4 sm:$0xff]  }
  0x21   : > { %1930 = vmatpush1.bf16.msra.mxu0 %v5588_v12  ;;  %v6291_v32 = vld [vmem:[%s6228_s28 + $0x80] sm:$0xff]  ;;  %v6306_v35 = vld [vmem:[%s6228_s28 + $0x90] sm:$0xff]  ;;  %v6309_v36 = vld [vmem:[%s6228_s28 + $0x98] sm:$0xff] }
  0x22   : > { %1931 = vmatprep.subr.bf16.mxu0 %v5589_v13  ;;  %v6303_v34 = vld [vmem:[%s8840_s1 + $0x2c4] ss:$16 sps:$4 sm:$0xff]   ;;  %v6312_v37 = vld [vmem:[%s6228_s28 + $0xa8] sm:$0xff]  ;;  %v5597_v38 = vld [vmem:[%s8840_s1 + $0x1e0] ss:$16 sps:$4 sm:$0xff]  }
  0x23   : > { %5546 = vmatprep.subr.bf16.mxu1 %v6303_v34  ;;  %v6319_v39 = vld [vmem:[%s6228_s28 + $0xb0] sm:$0xff]  ;;  %v6341_v44 = vld [vmem:[%s6228_s28 + $0xc0] sm:$0xff]  ;;  %v6345_v45 = vld [vmem:[%s6228_s28 + $0xc8] sm:$0xff] }
  0x24   : > { %v5598_v40 = vld [vmem:[%s8840_s1 + $0x1c4] ss:$16 sps:$4 sm:$0xff]   ;;  %5554 = vmatpush1.bf16.msra.mxu1 %v6298_v33  ;;  %v6333_v42 = vld [vmem:[%s8840_s1 + $0x2a0] ss:$16 sps:$4 sm:$0xff]   ;;  %v6348_v46 = vld [vmem:[%s6228_s28 + $0xd8] sm:$0xff] }
  0x25   : > { %1932 = vmatpush1.bf16.msra.mxu0 %v5591_v14  ;;  %v6328_v41 = vld [vmem:[%s8840_s1 + $0x2a4] ss:$16 sps:$4 sm:$0xff]   ;;  %v5600_v48 = vld [vmem:[%s8840_s1 + $0x1c0] ss:$16 sps:$4 sm:$0xff]   ;;  %v6373_v53 = vld [vmem:[%s6228_s28 + $0xf8] sm:$0xff] }
  0x26   : > { %1933 = vmatprep.subr.bf16.mxu0 %v5592_v17  ;;  %v6338_v43 = vld [vmem:[%s8840_s1 + $0x284] ss:$16 sps:$4 sm:$0xff]   ;;  %5547 = vmatprep.subr.bf16.mxu1 %v6328_v41  ;;  %v6363_v50 = vld [vmem:[%s8840_s1 + $0x280] ss:$16 sps:$4 sm:$0xff]   ;;  %v553_v54 = vld [vmem:[%s6228_s28 + $0x108] sm:$0xff] }
  0x27   : > { %v6351_v47 = vld [vmem:[%s6228_s28 + $0xe0] sm:$0xff]  ;;  %v550_v52 = vld [vmem:[%s6228_s28 + $0xf0] sm:$0xff]  ;;  %v6406_v63 = vld [vmem:[%s6228_s28 + $0x128] sm:$0xff] }
  0x28   : > { %v5601_v49 = vld [vmem:[%s8840_s1 + $0x1a4] ss:$16 sps:$4 sm:$0xff]   ;;  %5555 = vmatpush1.bf16.msra.mxu1 %v6333_v42  ;;  %v5603_v56 = vld [vmem:[%s8840_s1 + $0x1a0] ss:$16 sps:$4 sm:$0xff]   ;;  %v6397_v60 = vpack.c.bf16 %v553_v54, %v550_v52  ;;  %v559_v0 = vld [vmem:[%s6228_s28 + $0x138] sm:$0xff] }
  0x29   : > { %1934 = vmatpush1.bf16.msra.mxu0 %v5594_v25  ;;  %5548 = vmatprep.subr.bf16.mxu1 %v6338_v43  ;;  %v6369_v51 = vld [vmem:[%s8840_s1 + $0x264] ss:$16 sps:$4 sm:$0xff]   ;;  %v6389_v58 = vld [vmem:[%s8840_s1 + $0x260] ss:$16 sps:$4 sm:$0xff]   ;;  %v561_v6 = vld [vmem:[%s6228_s28 + $0x148] sm:$0xff] }
  0x2a   : > { %1935 = vmatprep.subr.bf16.mxu0 %v5595_v30  ;;  %v6377_v55 = vld [vmem:[%s6228_s28 + $0x110] sm:$0xff]  ;;  %v556_v61 = vld [vmem:[%s6228_s28 + $0x120] sm:$0xff]  ;;  %v5396_v9 = vpack.c.bf16 %v561_v6, %v561_v6  ;;  %v563_v11 = vld [vmem:[%s6228_s28 + $0x158] sm:$0xff] }
  0x2b   : > { %v5604_v57 = vld [vmem:[%s8840_s1 + $0x184] ss:$16 sps:$4 sm:$0xff]   ;;  %v6403_v62 = vld [vmem:[%s8840_s1 + $0x240] ss:$16 sps:$4 sm:$0xff]   ;;  %v565_v12 = vld [vmem:[%s6228_s28 + $0x168] sm:$0xff]  ;;  %v6430_v13 = vpack.c.bf16 %v559_v0, %v556_v61 }
  0x2c   : > { %5556 = vmatpush1.bf16.msra.mxu1 %v6363_v50  ;;  %v6395_v59 = vld [vmem:[%s8840_s1 + $0x244] ss:$16 sps:$4 sm:$0xff]   ;;  %v5606_v3 = vld [vmem:[%s8840_s1 + $0x180] ss:$16 sps:$4 sm:$0xff]   ;;  %v567_v17 = vld [vmem:[%s6228_s28 + $0x178] sm:$0xff] }
  0x2d   : > { %1936 = vmatpush2.bf16.msra.mxu0 %v5597_v38  ;;  %5549 = vmatprep.subr.bf16.mxu1 %v6369_v51  ;;  %v6410_v1 = vld [vmem:[%s6228_s28 + $0x140] sm:$0xff]  ;;  %v558_v5 = vld [vmem:[%s6228_s28 + $0x130] sm:$0xff]  ;;  %964 = vst.msk [vmem:[#allocation2 + $0xa4] sm:$0xf] %vm937_vm0, %v5396_v9  ;;  %v5400_v30 = vpack.c.bf16 %v567_v17, %v567_v17  ;;  %v575_v9 = vld [vmem:[%s6228_s28 + $0x1b8] sm:$0xff] }
  0x2e   : > { %1937 = vmatprep.subr.bf16.mxu0 %v5598_v40  ;;  %v6418_v4 = vld [vmem:[%s8840_s1 + $0x224] ss:$16 sps:$4 sm:$0xff]   ;;  %v5394_v8 = vpack.c.bf16 %v558_v5, %v558_v5  ;;  %v6438_v19 = vld [vmem:[%s8840_s1 + $0x220] ss:$16 sps:$4 sm:$0xff]   ;;  %v569_v40 = vld [vmem:[%s6228_s28 + $0x188] sm:$0xff] }
  0x2f   : > { %v5607_v7 = vld [vmem:[%s8840_s1 + $0x164] ss:$16 sps:$4 sm:$0xff]   ;;  %968 = vst.msk [vmem:[#allocation2 + $0xbc] sm:$0xf] %vm937_vm0, %v5400_v30  ;;  %v583_v2 = vld [vmem:[%s6228_s28 + $0x1f8] sm:$0xff] }
  0x30   : > { %5557 = vmatpush1.bf16.msra.mxu1 %v6389_v58  ;;  %v562_v10 = vld [vmem:[%s6228_s28 + $0x150] sm:$0xff]  ;;  %v564_v16 = vld [vmem:[%s6228_s28 + $0x160] sm:$0xff]  ;;  %962 = vst.msk [vmem:[#allocation2 + $0x98] sm:$0xf] %vm937_vm0, %v5394_v8 }
  0x31   : > { %1938 = vmatpush2.bf16.msra.mxu0 %v5600_v48  ;;  %5550 = vmatprep.subr.bf16.mxu1 %v6395_v59  ;;  %v566_v14 = vld [vmem:[%s6228_s28 + $0x170] sm:$0xff]  ;;  %v5398_v25 = vpack.c.bf16 %v564_v16, %v564_v16  ;;  %v568_v38 = vld [vmem:[%s6228_s28 + $0x180] sm:$0xff]  ;;  %v571_v48 = vld [vmem:[%s6228_s28 + $0x198] sm:$0xff]  ;;  %v6462_v5 = vpack.c.bf16 %v565_v12, %v562_v10 }
  0x32   : > { %1939 = vmatprep.subr.bf16.mxu0 %v5601_v49  ;;  %v5609_v49 = vld [vmem:[%s8840_s1 + $0x160] ss:$16 sps:$4 sm:$0xff]   ;;  %v6451_v52 = vld [vmem:[%s8840_s1 + $0x204] ss:$16 sps:$4 sm:$0xff]   ;;  %v6460_v0 = vpack.c.bf16 %v566_v14, %v563_v11  ;;  %v577_v16 = vld [vmem:[%s6228_s28 + $0x1c8] sm:$0xff]  ;;  %v6480_v30 = vpack.c.bf16 %v571_v48, %v568_v38 }
  0x33   : > { %v572_v54 = vld [vmem:[%s6228_s28 + $0x1a0] sm:$0xff]  ;;  %8875 = vst [vmem:[#allocation4_spill] sm:$0xff] %v6462_v5  ;;  %966 = vst.msk [vmem:[#allocation2 + $0xb0] sm:$0xf] %vm937_vm0, %v5398_v25  ;;  %v574_v8 = vld [vmem:[%s6228_s28 + $0x1b0] sm:$0xff] }
  0x34   : > { %v5610_v61 = vld [vmem:[%s8840_s1 + $0x144] ss:$16 sps:$4 sm:$0xff]   ;;  %5558 = vmatpush1.bf16.msra.mxu1 %v6403_v62  ;;  %v579_v12 = vld [vmem:[%s6228_s28 + $0x1d8] sm:$0xff]  ;;  %v6476_v14 = vld [vmem:[%s8840_s1 + $0x200] ss:$16 sps:$4 sm:$0xff]   ;;  %v6478_v25 = vpack.c.bf16 %v572_v54, %v569_v40  ;;  %8877 = vst [vmem:[#allocation6_spill] sm:$0xff] %v6480_v30 }
  0x35   : > { %1940 = vmatpush2.bf16.msra.mxu0 %v5603_v56  ;;  %v570_v56 = vld [vmem:[%s6228_s28 + $0x190] sm:$0xff]  ;;  %5551 = vmatprep.subr.bf16.mxu1 %v6418_v4  ;;  %v576_v10 = vld [vmem:[%s6228_s28 + $0x1c0] sm:$0xff]  ;;  %v5408_v26 = vpack.c.bf16 %v579_v12, %v579_v12  ;;  %v585_v38 = vld [vmem:[%s6228_s28 + $0x208] sm:$0xff] }
  0x36   : > { %1941 = vmatprep.subr.bf16.mxu0 %v5604_v57  ;;  %v573_v57 = vld [vmem:[%s6228_s28 + $0x1a8] sm:$0xff]  ;;  %v5402_v6 = vpack.c.bf16 %v570_v56, %v570_v56  ;;  %v578_v11 = vld [vmem:[%s6228_s28 + $0x1d0] sm:$0xff]  ;;  %8876 = vst [vmem:[#allocation5_spill] sm:$0xff] %v6478_v25  ;;  %v580_v56 = vld [vmem:[%s6228_s28 + $0x1e0] sm:$0xff] }
  0x37   : > { %v5404_v17 = vpack.c.bf16 %v573_v57, %v573_v57  ;;  %v581_v57 = vld [vmem:[%s6228_s28 + $0x1e8] sm:$0xff]  ;;  %v584_v40 = vld [vmem:[%s6228_s28 + $0x200] sm:$0xff]  ;;  %v582_v54 = vld [vmem:[%s6228_s28 + $0x1f0] sm:$0xff]  ;;  %v6494_v48 = vpack.c.bf16 %v578_v11, %v575_v9  ;;  %976 = vst.msk [vmem:[#allocation2 + $0xec] sm:$0xf] %vm937_vm0, %v5408_v26  ;;  %v5412_v9 = vpack.c.bf16 %v585_v38, %v585_v38 }
  0x38   : > { %970 = vst.msk [vmem:[#allocation2 + $0xc8] sm:$0xf] %vm937_vm0, %v5402_v6  ;;  %5559 = vmatpush1.bf16.msra.mxu1 %v6438_v19  ;;  %v6496_v6 = vpack.c.bf16 %v577_v16, %v574_v8  ;;  %v586_v30 = vld [vmem:[%s6228_s28 + $0x210] sm:$0xff]  ;;  %v587_v25 = vld [vmem:[%s6228_s28 + $0x218] sm:$0xff]  ;;  %v589_v5 = vld [vmem:[%s6228_s28 + $0x228] sm:$0xff]  ;;  %v6507_v8 = vpack.c.bf16 %v584_v40, %v581_v57  ;;  %v6509_v16 = vpack.c.bf16 %v583_v2, %v580_v56 }
  0x39   : > { %1942 = vmatpush2.bf16.msra.mxu0 %v5606_v3  ;;  %v5406_v3 = vpack.c.bf16 %v576_v10, %v576_v10  ;;  %972 = vst.msk [vmem:[#allocation2 + $0xd4] sm:$0xf] %vm937_vm0, %v5404_v17  ;;  %v5410_v10 = vpack.c.bf16 %v582_v54, %v582_v54  ;;  %v5613_v17 = vld [vmem:[%s8840_s1 + $0x124] ss:$16 sps:$4 sm:$0xff]   ;;  %5552 = vmatprep.subr.bf16.mxu1 %v6451_v52  ;;  %980 = vst.msk [vmem:[#allocation2 + $0x104] sm:$0xf] %vm937_vm0, %v5412_v9 }
  0x3a   : > { %1943 = vmatprep.subr.bf16.mxu0 %v5607_v7  ;;  %v5612_v7 = vld [vmem:[%s8840_s1 + $0x140] ss:$16 sps:$4 sm:$0xff]   ;;  %v5643_v54 = vld [vmem:[#allocation2 + $0x98] ss:$12 sps:$4 sm:$0xff]   ;;  %v6525_v57 = vpack.c.bf16 %v589_v5, %v586_v30  ;;  %v5651_v40 = vld [vmem:[%s8840_s1 + $0xec] ss:$16 sps:$4 sm:$0xff]  }
  0x3b   : > { %974 = vst.msk [vmem:[#allocation2 + $0xe0] sm:$0xf] %vm937_vm0, %v5406_v3  ;;  %978 = vst.msk [vmem:[#allocation2 + $0xf8] sm:$0xf] %vm937_vm0, %v5410_v10  ;;  %v590_v11 = vld [vmem:[%s6228_s28 + $0x230] sm:$0xff]  ;;  %v588_v12 = vld [vmem:[%s6228_s28 + $0x220] sm:$0xff] }
  0x3c   : > { %v5615_v3 = vld [vmem:[%s8840_s1 + $0x120] ss:$16 sps:$4 sm:$0xff]   ;;  %v5414_v26 = vpack.c.bf16 %v588_v12, %v588_v12  ;;  %5560 = vmatpush1.bf16.msra.mxu1 %v6476_v14  ;;  %v5649_v2 = vld [vmem:[%s8840_s1 + $0xe8] ss:$16 sps:$4 sm:$0xff]   ;;  %v6523_v56 = vpack.c.bf16 %v590_v11, %v587_v25  ;;  %v8878_v9 = vmov 0  }
  0x3d   : > { %1944 = vmatpush2.bf16.msra.mxu0 %v5609_v49  ;;  %v591_v49 = vld [vmem:[%s6228_s28 + $0x238] sm:$0xff]  ;;  %v592_v38 = vld [vmem:[%s6228_s28 + $0x240] sm:$0xff]  ;;  %v593_v25 = vld [vmem:[%s6228_s28 + $0x248] sm:$0xff]  ;;  %2305 = vmatprep.subr.bf16.mxu1 %v5651_v40 }
  0x3e   : > { %1945 = vmatprep.subr.bf16.mxu0 %v5610_v61  ;;  %v5416_v61 = vpack.c.bf16 %v591_v49, %v591_v49  ;;  %982 = vst.msk [vmem:[#allocation2 + $0x110] sm:$0xf] %vm937_vm0, %v5414_v26  ;;  %v595_v5 = vld [vmem:[%s6228_s28 + $0x258] sm:$0xff]  ;;  %v596_v30 = vld [vmem:[%s6228_s28 + $0x260] sm:$0xff]  ;;  %v594_v11 = vld [vmem:[%s6228_s28 + $0x250] sm:$0xff] }
  0x3f   : > { %2205 = vmatmul.mubr.bf16.vlgmr.msra.gmra.mxu1 %v5643_v54  ;;  %v5618_v10 = vld [vmem:[%s8840_s1 + $0x100] ss:$16 sps:$4 sm:$0xff]   ;;  %v5418_v12 = vpack.c.bf16 %v594_v11, %v594_v11  ;;  %v6545_v54 = vpack.c.bf16 %v596_v30, %v593_v25  ;;  %v6547_v26 = vpack.c.bf16 %v595_v5, %v592_v38  ;;  %v6564_v38 = vpack.c.bf16 %v6275_v27, %v6264_v23  ;;  %v599_v25 = vld [vmem:[%s6228_s28 + $0x278] sm:$0xff]  ;;  %v601_v5 = vld [vmem:[%s6228_s28 + $0x288] sm:$0xff] }
  0x40   : > { %984 = vst.msk [vmem:[#allocation2 + $0x11c] sm:$0xf] %vm937_vm0, %v5416_v61  ;;  %2214 = vmatprep.mubr.bf16.mxu1 %v8878_v9  ;;  %2306 = vmatpush1.bf16.msra.mxu1 %v5649_v2  ;;  %v5644_v49 = vld [vmem:[#allocation2 + $0xb0] ss:$12 sps:$4 sm:$0xff]   ;;  %v5653_v2 = vld [vmem:[%s8840_s1 + $0xc8] ss:$16 sps:$4 sm:$0xff]  }
  0x41   : > { %1946 = vmatpush2.bf16.msra.mxu0 %v5612_v7  ;;  %v5616_v7 = vld [vmem:[%s8840_s1 + $0x104] ss:$16 sps:$4 sm:$0xff]   ;;  %986 = vst.msk [vmem:[#allocation2 + $0x128] sm:$0xf] %vm937_vm0, %v5418_v12  ;;  %v603_v27 = vld [vmem:[%s6228_s28 + $0x298] sm:$0xff] }
  0x42   : > { %1947 = vmatprep.subr.bf16.mxu0 %v5613_v17  ;;  %v597_v17 = vld [vmem:[%s6228_s28 + $0x268] sm:$0xff]  ;;  %v598_v40 = vld [vmem:[%s6228_s28 + $0x270] sm:$0xff]  ;;  %v600_v23 = vld [vmem:[%s6228_s28 + $0x280] sm:$0xff] }
  0x43   : > { %v5420_v61 = vpack.c.bf16 %v597_v17, %v597_v17  ;;  %v602_v30 = vld [vmem:[%s6228_s28 + $0x290] sm:$0xff]  ;;  %v5422_v11 = vpack.c.bf16 %v600_v23, %v600_v23  ;;  %v5424_v17 = vpack.c.bf16 %v603_v27, %v603_v27  ;;  %v5662_v12 = vld [vmem:[%s8840_s1 + $0x8c] ss:$16 sps:$4 sm:$0xff]  }
  0x44   : > { %v614_v27 = vld [vmem:[%s6228_s28 + $0x2f0] sm:$0xff] }
  0x45   : > { %1948 = vmatpush2.bf16.msra.mxu0 %v5615_v3  ;;  %v5655_v3 = vld [vmem:[%s8840_s1 + $0xcc] ss:$16 sps:$4 sm:$0xff]   ;;  %988 = vst.msk [vmem:[#allocation2 + $0x134] sm:$0xf] %vm937_vm0, %v5420_v61  ;;  %990 = vst.msk [vmem:[#allocation2 + $0x140] sm:$0xf] %vm937_vm0, %v5422_v11 }
  0x46   : > { %1949 = vmatprep.subr.bf16.mxu0 %v5616_v7  ;;  %v6559_v7 = vpack.c.bf16 %v6247_v18, %v6240_v15  ;;  %2307 = vmatprep.subr.bf16.mxu1 %v5655_v3  ;;  %v5656_v15 = vld [vmem:[%s8840_s1 + $0xa8] ss:$16 sps:$4 sm:$0xff]   ;;  %v5658_v18 = vld [vmem:[%s8840_s1 + $0xac] ss:$16 sps:$4 sm:$0xff]   ;;  %v608_v3 = vld [vmem:[%s6228_s28 + $0x2c0] sm:$0xff] }
  0x47   : > { %2308 = vmatpush1.bf16.msra.mxu1 %v5653_v2  ;;  %v605_v61 = vld [vmem:[%s6228_s28 + $0x2a8] sm:$0xff]  ;;  %v607_v2 = vld [vmem:[%s6228_s28 + $0x2b8] sm:$0xff]  ;;  %992 = vst.msk [vmem:[#allocation2 + $0x14c] sm:$0xf] %vm937_vm0, %v5424_v17  ;;  %v612_v11 = vld [vmem:[%s6228_s28 + $0x2e0] sm:$0xff] }
  0x48   : > { %2215 = vmatmul.mubr.bf16.gmra.mxu1 %v5644_v49  ;;  %v604_v49 = vld [vmem:[%s6228_s28 + $0x2a0] sm:$0xff]  ;;  %2309 = vmatprep.subr.bf16.mxu1 %v5658_v18  ;;  %v6610_v18 = vpack.c.bf16 %v608_v3, %v605_v61 }
  0x49   : > { %1950 = vmatpush2.bf16.msra.mxu0 %v5618_v10  ;;  %2224 = vmatprep.mubr.bf16.mxu1 %v8878_v9  ;;  %v6582_v10 = vpack.c.bf16 %v601_v5, %v598_v40  ;;  %v5645_v40 = vld [vmem:[#allocation2 + $0xc8] ss:$12 sps:$4 sm:$0xff]   ;;  %v6612_v23 = vpack.c.bf16 %v607_v2, %v604_v49  ;;  %v5430_v49 = vpack.c.bf16 %v612_v11, %v612_v11  ;;  %v5646_v61 = vld [vmem:[#allocation2 + $0xe0] ss:$12 sps:$4 sm:$0xff]  }
  0x4a   : > { %2112 = vmatprep.subr.bf16.mxu0 %v6258_v21  ;;  %v6580_v21 = vpack.c.bf16 %v602_v30, %v599_v25  ;;  %v6599_v25 = vpack.c.bf16 %v6267_v24, %v6261_v22  ;;  %v6604_v30 = vpack.c.bf16 %v6291_v32, %v6281_v29  ;;  %v610_v24 = vld [vmem:[%s6228_s28 + $0x2d0] sm:$0xff]  ;;  %v611_v29 = vld [vmem:[%s6228_s28 + $0x2d8] sm:$0xff]  ;;  %v613_v32 = vld [vmem:[%s6228_s28 + $0x2e8] sm:$0xff] }
  0x4b   : > { %2310 = vmatpush1.bf16.msra.mxu1 %v5656_v15  ;;  %v5660_v15 = vld [vmem:[%s8840_s1 + $0x88] ss:$16 sps:$4 sm:$0xff]   ;;  %v6630_v17 = vpack.c.bf16 %v614_v27, %v611_v29  ;;  %998 = vst.msk [vmem:[#allocation2 + $0x170] sm:$0xf] %vm937_vm0, %v5430_v49  ;;  %v6682_v29 = vpack.c.bf16 %v6351_v47, %v6345_v45  ;;  %v5677_v27 = vld [vmem:[%s8840_s1 + $0x2ec] ss:$16 sps:$4 sm:$0xff]  }
  0x4c   : > { %1952 = vmatmul.mubr.bf16.vlgmr.msra.gmra.mxu0 %v6559_v7  ;;  %2311 = vmatprep.subr.bf16.mxu1 %v5662_v12  ;;  %v6632_v12 = vpack.c.bf16 %v613_v32, %v610_v24  ;;  %v5664_v2 = vld [vmem:[%s8840_s1 + $0x68] ss:$16 sps:$4 sm:$0xff]   ;;  %v5690_v11 = vld [vmem:[%s8840_s1 + $0x1cc] ss:$16 sps:$4 sm:$0xff]  }
  0x4d   : > { %2113 = vmatpush1.bf16.msra.mxu0 %v6253_v20  ;;  %1961 = vmatprep.mubr.bf16.mxu0 %v6564_v38  ;;  %v606_v20 = vld [vmem:[%s6228_s28 + $0x2b0] sm:$0xff]  ;;  %v5678_v32 = vld [vmem:[%s8840_s1 + $0x8] ss:$16 sps:$4 sm:$0xff]  }
  0x4e   : > { %2114 = vmatprep.subr.bf16.mxu0 %v6303_v34  ;;  %v609_v34 = vld [vmem:[%s6228_s28 + $0x2c8] sm:$0xff]  ;;  %v5426_v5 = vpack.c.bf16 %v606_v20, %v606_v20  ;;  %v543_v49 = vld [vmem:[%s6228_s28 + $0xb8] sm:$0xff] }
  0x4f   : > { %v5428_v22 = vpack.c.bf16 %v609_v34, %v609_v34  ;;  %2312 = vmatpush1.bf16.msra.mxu1 %v5660_v15  ;;  %v525_v20 = vld [vmem:[%s6228_s28 + $0x28] sm:$0xff]  ;;  %v6646_v34 = vpack.c.bf16 %v6288_v31, %v6278_v28  ;;  %v6651_v15 = vpack.c.bf16 %v6319_v39, %v6309_v36  ;;  %v5647_v31 = vld [vmem:[#allocation2 + $0xf8] ss:$12 sps:$4 sm:$0xff]  }
  0x50   : > { %994 = vst.msk [vmem:[#allocation2 + $0x158] sm:$0xf] %vm937_vm0, %v5426_v5  ;;  %2225 = vmatmul.mubr.bf16.gmra.mxu1 %v5645_v40  ;;  %v5669_v40 = vld [vmem:[%s8840_s1 + $0x4c] ss:$16 sps:$4 sm:$0xff]   ;;  %v5372_v5 = vpack.c.bf16 %v525_v20, %v525_v20  ;;  %v5671_v36 = vld [vmem:[%s8840_s1 + $0x28] ss:$16 sps:$4 sm:$0xff]  }
  0x51   : > { %2115 = vmatpush1.bf16.msra.mxu0 %v6298_v33  ;;  %996 = vst.msk [vmem:[#allocation2 + $0x164] sm:$0xf] %vm937_vm0, %v5428_v22  ;;  %v5666_v33 = vld [vmem:[%s8840_s1 + $0x6c] ss:$16 sps:$4 sm:$0xff]   ;;  %2234 = vmatprep.mubr.bf16.mxu1 %v8878_v9  ;;  %v5667_v22 = vld [vmem:[%s8840_s1 + $0x48] ss:$16 sps:$4 sm:$0xff]  }
  0x52   : > { %2116 = vmatprep.subr.bf16.mxu0 %v6328_v41  ;;  %v615_v41 = vld [vmem:[%s6228_s28 + $0x2f8] sm:$0xff]  ;;  %2313 = vmatprep.subr.bf16.mxu1 %v5666_v33  ;;  %940 = vst.msk [vmem:[#allocation2 + $0x14] sm:$0xf] %vm937_vm0, %v5372_v5  ;;  %v528_v39 = vld [vmem:[%s6228_s28 + $0x40] sm:$0xff]  ;;  %v537_v45 = vld [vmem:[%s6228_s28 + $0x88] sm:$0xff] }
  0x53   : > { %v5432_v3 = vpack.c.bf16 %v615_v41, %v615_v41  ;;  %2314 = vmatpush1.bf16.msra.mxu1 %v5664_v2  ;;  %v5673_v28 = vld [vmem:[%s8840_s1 + $0x2c] ss:$16 sps:$4 sm:$0xff]   ;;  %v5374_v24 = vpack.c.bf16 %v528_v39, %v528_v39  ;;  %v5681_v33 = vld [vmem:[%s8840_s1 + $0x1e8] ss:$16 sps:$4 sm:$0xff]   ;;  %v6719_v41 = vpack.c.bf16 %v6377_v55, %v6373_v53 }
  0x54   : > { %1962 = vmatmul.mubr.bf16.gmra.mxu0 %v6599_v25  ;;  %2315 = vmatprep.subr.bf16.mxu1 %v5669_v40  ;;  %v5688_v2 = vld [vmem:[%s8840_s1 + $0x1c8] ss:$16 sps:$4 sm:$0xff]   ;;  %v5703_v55 = vld [vmem:[%s8840_s1 + $0x18c] ss:$16 sps:$4 sm:$0xff]  }
  0x55   : > { %1971 = vmatprep.mubr.bf16.mxu0 %v6604_v30  ;;  %2117 = vmatpush1.bf16.msra.mxu0 %v6333_v42  ;;  %v522_v42 = vld [vmem:[%s6228_s28 + $0x10] sm:$0xff]  ;;  %1000 = vst.msk [vmem:[#allocation2 + $0x17c] sm:$0xf] %vm937_vm0, %v5432_v3  ;;  %942 = vst.msk [vmem:[#allocation2 + $0x20] sm:$0xf] %vm937_vm0, %v5374_v24  ;;  %v5384_v3 = vpack.c.bf16 %v543_v49, %v543_v49  ;;  %v549_v40 = vld [vmem:[%s6228_s28 + $0xe8] sm:$0xff] }
  0x56   : > { %2118 = vmatprep.subr.bf16.mxu0 %v6338_v43  ;;  %v5370_v43 = vpack.c.bf16 %v522_v42, %v522_v42  ;;  %v5695_v53 = vld [vmem:[%s8840_s1 + $0x1a8] ss:$16 sps:$4 sm:$0xff]   ;;  %v6744_v42 = vpack.c.bf16 %v6410_v1, %v6406_v63  ;;  %v552_v1 = vld [vmem:[%s6228_s28 + $0x100] sm:$0xff]  ;;  %v5720_v24 = vld [vmem:[%s8840_s1 + $0x12c] ss:$16 sps:$4 sm:$0xff]  }
  0x57   : > { %2316 = vmatpush1.bf16.msra.mxu1 %v5667_v22  ;;  %952 = vst.msk [vmem:[#allocation2 + $0x5c] sm:$0xf] %vm937_vm0, %v5384_v3  ;;  %v5701_v5 = vld [vmem:[%s8840_s1 + $0x188] ss:$16 sps:$4 sm:$0xff]   ;;  %v5710_v22 = vld [vmem:[%s8840_s1 + $0x16c] ss:$16 sps:$4 sm:$0xff]   ;;  %v5390_v39 = vpack.c.bf16 %v552_v1, %v552_v1 }
  0x58   : > { %938 = vst.msk [vmem:[#allocation2 + $0x8] sm:$0xf] %vm937_vm0, %v5370_v43  ;;  %2235 = vmatmul.mubr.bf16.gmra.mxu1 %v5646_v61  ;;  %2317 = vmatprep.subr.bf16.mxu1 %v5673_v28  ;;  %v5388_v43 = vpack.c.bf16 %v549_v40, %v549_v40  ;;  %v5708_v63 = vld [vmem:[%s8840_s1 + $0x168] ss:$16 sps:$4 sm:$0xff]  }
  0x59   : > { %2119 = vmatpush1.bf16.msra.mxu0 %v6363_v50  ;;  %2244 = vmatprep.mubr.bf16.mxu1 %v8878_v9  ;;  %v5680_v50 = vld [vmem:[%s8840_s1 + $0xc] ss:$16 sps:$4 sm:$0xff]   ;;  %958 = vst.msk [vmem:[#allocation2 + $0x80] sm:$0xf] %vm937_vm0, %v5390_v39  ;;  %v5743_v49 = vld [vmem:[%s8842_s3 + $0x50] ss:$8 sps:$4 sm:$0xff]  }
  0x5a   : > { %2120 = vmatprep.subr.bf16.mxu0 %v6369_v51  ;;  %v531_v51 = vld [vmem:[%s6228_s28 + $0x58] sm:$0xff]  ;;  %956 = vst.msk [vmem:[#allocation2 + $0x74] sm:$0xf] %vm937_vm0, %v5388_v43 }
  0x5b   : > { %2318 = vmatpush1.bf16.msra.mxu1 %v5671_v36  ;;  %v555_v28 = vld [vmem:[%s6228_s28 + $0x118] sm:$0xff] }
  0x5c   : > { %1972 = vmatmul.mubr.bf16.gmra.mxu0 %v6646_v34  ;;  %2319 = vmatprep.subr.bf16.mxu1 %v5680_v50  ;;  %v5713_v36 = vld [vmem:[%s8840_s1 + $0x14c] ss:$16 sps:$4 sm:$0xff]   ;;  %v5392_v50 = vpack.c.bf16 %v555_v28, %v555_v28  ;;  %v5755_v40 = vld [vmem:[%s8842_s3 + $0x30] ss:$8 sps:$4 sm:$0xff]  }
  0x5d   : > { %1981 = vmatprep.mubr.bf16.mxu0 %v6651_v15  ;;  %2121 = vmatpush1.bf16.msra.mxu0 %v6389_v58  ;;  %v6678_v58 = vpack.c.bf16 %v6312_v37, %v6306_v35  ;;  %v5683_v35 = vld [vmem:[%s8840_s1 + $0x1ec] ss:$16 sps:$4 sm:$0xff]   ;;  %v534_v37 = vld [vmem:[%s6228_s28 + $0x70] sm:$0xff] }
  0x5e   : > { %2122 = vmatprep.subr.bf16.mxu0 %v6395_v59  ;;  %v5376_v59 = vpack.c.bf16 %v531_v51, %v531_v51  ;;  %v5378_v47 = vpack.c.bf16 %v534_v37, %v534_v37  ;;  %v5711_v51 = vld [vmem:[%s8840_s1 + $0x148] ss:$16 sps:$4 sm:$0xff]   ;;  %960 = vst.msk [vmem:[#allocation2 + $0x8c] sm:$0xf] %vm937_vm0, %v5392_v50  ;;  %v5781_v28 = vld [vmem:[%s8842_s3 + $0xe4] ss:$8 sps:$4 sm:$0xff]  }
  0x5f   : > { %2320 = vmatpush1.bf16.msra.mxu1 %v5678_v32  ;;  %v5663_v32 = vld [vmem:[#allocation2 + $0x158] ss:$12 sps:$4 sm:$0xff]  }
  0x60   : > { %944 = vst.msk [vmem:[#allocation2 + $0x2c] sm:$0xf] %vm937_vm0, %v5376_v59  ;;  %2245 = vmatmul.mubr.bf16.gmra.mxu1 %v5647_v31  ;;  %946 = vst.msk [vmem:[#allocation2 + $0x38] sm:$0xf] %vm937_vm0, %v5378_v47  ;;  %2321 = vmatprep.subr.bf16.mxu1 %v5683_v35  ;;  %v5659_v31 = vld [vmem:[#allocation2 + $0x140] ss:$12 sps:$4 sm:$0xff]  }
  0x61   : > { %2123 = vmatpush1.bf16.msra.mxu0 %v6403_v62  ;;  %2254 = vmatprep.mubr.bf16.mxu1 %v8878_v9  ;;  %v5648_v62 = vld [vmem:[#allocation2 + $0x110] ss:$12 sps:$4 sm:$0xff]   ;;  %v5718_v59 = vld [vmem:[%s8840_s1 + $0x128] ss:$16 sps:$4 sm:$0xff]   ;;  %v5754_v50 = vld [vmem:[%s8842_s3 + $0x144] ss:$8 sps:$4 sm:$0xff]  }
  0x62   : > { %2124 = vmatprep.subr.bf16.mxu0 %v6418_v4  ;;  %v5380_v4 = vpack.c.bf16 %v537_v45, %v537_v45  ;;  %v5726_v35 = vld [vmem:[%s8840_s1 + $0x10c] ss:$16 sps:$4 sm:$0xff]   ;;  %v5724_v37 = vld [vmem:[%s8840_s1 + $0x108] ss:$16 sps:$4 sm:$0xff]   ;;  %v8880_v47 = vld [vmem:[#allocation5_spill] sm:$0xff] }
  0x63   : > { %2322 = vmatpush2.bf16.msra.mxu1 %v5681_v33  ;;  %v8879_v45 = vld [vmem:[#allocation4_spill] sm:$0xff]  ;;  %v5773_v1 = vld [vmem:[%s8842_s3 + $0xf0] ss:$8 sps:$4 sm:$0xff]  }
  0x64   : > { %1982 = vmatmul.mubr.bf16.gmra.mxu0 %v6678_v58  ;;  %948 = vst.msk [vmem:[#allocation2 + $0x44] sm:$0xf] %vm937_vm0, %v5380_v4  ;;  %2323 = vmatprep.subr.bf16.mxu1 %v5690_v11  ;;  %v8881_v4 = vld [vmem:[#allocation6_spill] sm:$0xff]  ;;  %v5739_v33 = vld [vmem:[%s8842_s3 + $0x64] ss:$8 sps:$4 sm:$0xff]  }
  0x65   : > { %1991 = vmatprep.mubr.bf16.mxu0 %v6682_v29  ;;  %2125 = vmatpush1.bf16.msra.mxu0 %v6438_v19  ;;  %v6714_v19 = vpack.c.bf16 %v6348_v46, %v6341_v44  ;;  %v5697_v44 = vld [vmem:[%s8840_s1 + $0x1ac] ss:$16 sps:$4 sm:$0xff]   ;;  %v5652_v46 = vld [vmem:[#allocation2 + $0x128] ss:$12 sps:$4 sm:$0xff]   ;;  %v5746_v39 = vld [vmem:[%s8842_s3 + $0x150] ss:$8 sps:$4 sm:$0xff]  }
  0x66   : > { %2126 = vmatprep.subr.bf16.mxu0 %v6451_v52  ;;  %v540_v52 = vld [vmem:[%s6228_s28 + $0xa0] sm:$0xff]  ;;  %v5698_v11 = vld [vmem:[%s8840_s1 + $0x288] ss:$16 sps:$4 sm:$0xff]  }
  0x67   : > { %v5382_v61 = vpack.c.bf16 %v540_v52, %v540_v52  ;;  %2324 = vmatpush2.bf16.msra.mxu1 %v5688_v2  ;;  %v5714_v2 = vld [vmem:[%s8840_s1 + $0x248] ss:$16 sps:$4 sm:$0xff]   ;;  %v6933_v43 = vld [vmem:[#allocation2 + $0x80] ss:$12 sps:$4 sm:$0xff]  }
  0x68   : > { %2255 = vmatmul.mubr.bf16.gmra.mxu1 %v5648_v62  ;;  %2325 = vmatprep.subr.bf16.mxu1 %v5697_v44  ;;  %v5670_v62 = vld [vmem:[#allocation2 + $0x170] ss:$12 sps:$4 sm:$0xff]  }
  0x69   : > { %2127 = vmatpush1.bf16.msra.mxu0 %v6476_v14  ;;  %950 = vst.msk [vmem:[#allocation2 + $0x50] sm:$0xf] %vm937_vm0, %v5382_v61  ;;  %2264 = vmatprep.mubr.bf16.mxu1 %v8878_v9  ;;  %v546_v14 = vld [vmem:[%s6228_s28 + $0xd0] sm:$0xff]  ;;  %v5730_v44 = vld [vmem:[%s8840_s1 + $0x20c] ss:$16 sps:$4 sm:$0xff]  }
  0x6a   : > { %2498 = vmatprep.subr.bf16.mxu0 %v5677_v27  ;;  %v5386_v20 = vpack.c.bf16 %v546_v14, %v546_v14  ;;  %v8882_v27 = vld [vmem:[#allocation3_spill] sm:$0xff]  ;;  %v5745_v61 = vld [vmem:[%s8842_s3 + $0x54] ss:$8 sps:$4 sm:$0xff]  }
  0x6b   : > { %2326 = vmatpush2.bf16.msra.mxu1 %v5695_v53  ;;  %v6867_v52 = vld [vmem:[#allocation2 + $0x38] ss:$12 sps:$4 sm:$0xff]  }
  0x6c   : > { %1992 = vmatmul.mubr.bf16.gmra.mxu0 %v6714_v19  ;;  %2327 = vmatprep.subr.bf16.mxu1 %v5703_v55  ;;  %954 = vst.msk [vmem:[#allocation2 + $0x68] sm:$0xf] %vm937_vm0, %v5386_v20  ;;  %v5751_v53 = vld [vmem:[%s8842_s3 + $0x44] ss:$8 sps:$4 sm:$0xff]   ;;  %v5728_v55 = vld [vmem:[%s8840_s1 + $0x208] ss:$16 sps:$4 sm:$0xff]  }
  0x6d   : > { %2001 = vmatprep.mubr.bf16.mxu0 %v6719_v41  ;;  %v5761_v20 = vld [vmem:[%s8842_s3 + $0x20] ss:$8 sps:$4 sm:$0xff]  }
  0x6f   : > { %2328 = vmatpush2.bf16.msra.mxu1 %v5701_v5  ;;  %v5772_v5 = vld [vmem:[%s8842_s3 + $0x4] ss:$8 sps:$4 sm:$0xff]  }
  0x70   : > { %2265 = vmatmul.mubr.bf16.gmra.mxu1 %v5652_v46  ;;  %2329 = vmatprep.subr.bf16.mxu1 %v5710_v22  ;;  %v6891_v3 = vld [vmem:[#allocation2 + $0x50] ss:$12 sps:$4 sm:$0xff]   ;;  %v5749_v46 = vld [vmem:[%s8842_s3 + $0x40] ss:$8 sps:$4 sm:$0xff]  }
  0x71   : > { %2274 = vmatprep.mubr.bf16.mxu1 %v8878_v9  ;;  %v5770_v22 = vld [vmem:[%s8842_s3] ss:$8 sps:$4 sm:$0xff]  }
  0x73   : > { %2330 = vmatpush2.bf16.msra.mxu1 %v5708_v63  ;;  %v6915_v14 = vld [vmem:[#allocation2 + $0x68] ss:$12 sps:$4 sm:$0xff]   ;;  %v5742_v63 = vld [vmem:[%s8842_s3 + $0x164] ss:$8 sps:$4 sm:$0xff]  }
  0x74   : > { %2002 = vmatmul.mubr.bf16.gmra.mxu0 %v6397_v60  ;;  %2331 = vmatprep.subr.bf16.mxu1 %v5713_v36  ;;  %v5784_v36 = vld [vmem:[%s8842_s3 + $0xd4] ss:$8 sps:$4 sm:$0xff]  }
  0x75   : > { %2011 = vmatprep.mubr.bf16.mxu0 %v6744_v42 }
  0x77   : > { %2332 = vmatpush2.bf16.msra.mxu1 %v5711_v51  ;;  %v5782_v51 = vld [vmem:[%s8842_s3 + $0xd0] ss:$8 sps:$4 sm:$0xff]  }
  0x78   : > { %2275 = vmatmul.mubr.bf16.gmra.mxu1 %v5659_v31  ;;  %2333 = vmatprep.subr.bf16.mxu1 %v5720_v24  ;;  %v5740_v31 = vld [vmem:[%s8842_s3 + $0x160] ss:$8 sps:$4 sm:$0xff]  }
  0x79   : > { %2284 = vmatprep.mubr.bf16.mxu1 %v8878_v9 }
  0x7b   : > { %2334 = vmatpush2.bf16.msra.mxu1 %v5718_v59  ;;  %v5790_v59 = vld [vmem:[%s8842_s3 + $0xc4] ss:$8 sps:$4 sm:$0xff]  }
  0x7c   : > { %2012 = vmatmul.mubr.bf16.gmra.mxu0 %v6430_v13  ;;  %2335 = vmatprep.subr.bf16.mxu1 %v5726_v35  ;;  %v5752_v35 = vld [vmem:[%s8842_s3 + $0x140] ss:$8 sps:$4 sm:$0xff]  }
  0x7d   : > { %2021 = vmatprep.mubr.bf16.mxu0 %v6460_v0 }
  0x7f   : > { %2336 = vmatpush2.bf16.msra.mxu1 %v5724_v37 }
  0x80   : > { %2285 = vmatmul.mubr.bf16.gmra.mxu1 %v5663_v32 }
  0x81   : > { %2294 = vmatprep.mubr.bf16.mxu1 %v8878_v9 }
  0x84   : > { %2022 = vmatmul.mubr.bf16.gmra.mxu0 %v8879_v45 }
  0x85   : > { %2031 = vmatprep.mubr.bf16.mxu0 %v8880_v47 }
  0x88   : > { %2295 = vmatmul.mubr.bf16.gmra.mxu1 %v5670_v62  ;;  %v5758_v62 = vld [vmem:[%s8842_s3 + $0x130] ss:$8 sps:$4 sm:$0xff]  }
  0x89   : > { %2337 = vmatprep.mubr.bf16.mxu1 %v8882_v27  ;;  %v5791_v27 = vld [vmem:[%s8842_s3 + $0xb0] ss:$8 sps:$4 sm:$0xff]  }
  0x8c   : > { %2032 = vmatmul.mubr.bf16.gmra.mxu0 %v8881_v4 }
  0x8d   : > { %2041 = vmatprep.mubr.bf16.mxu0 %v6494_v48 }
  0x90   : > { %2338 = vmatmul.mubr.bf16.vlgmr.msra.gmra.mxu1 %v6559_v7  ;;  %v6819_v7 = vld [vmem:[#allocation2 + $0x8] ss:$12 sps:$4 sm:$0xff]  }
  0x91   : > { %2347 = vmatprep.mubr.bf16.mxu1 %v6564_v38  ;;  %v5686_v38 = vld [vmem:[%s8840_s1 + $0x2cc] ss:$16 sps:$4 sm:$0xff]  }
  0x94   : > { %2042 = vmatmul.mubr.bf16.gmra.mxu0 %v6496_v6 }
  0x95   : > { %2051 = vmatprep.mubr.bf16.mxu0 %v6507_v8 }
  0x98   : > { %2348 = vmatmul.mubr.bf16.gmra.mxu1 %v6599_v25  ;;  %v5684_v25 = vld [vmem:[%s8840_s1 + $0x2c8] ss:$16 sps:$4 sm:$0xff]  }
  0x99   : > { %2357 = vmatprep.mubr.bf16.mxu1 %v6604_v30  ;;  %v5693_v30 = vld [vmem:[%s8840_s1 + $0x2ac] ss:$16 sps:$4 sm:$0xff]  }
  0x9c   : > { %2052 = vmatmul.mubr.bf16.gmra.mxu0 %v6509_v16 }
  0x9d   : > { %2061 = vmatprep.mubr.bf16.mxu0 %v6523_v56 }
  0xa0   : > { %2358 = vmatmul.mubr.bf16.gmra.mxu1 %v6646_v34  ;;  %v6843_v34 = vld [vmem:[#allocation2 + $0x20] ss:$12 sps:$4 sm:$0xff]  }
  0xa1   : > { %2367 = vmatprep.mubr.bf16.mxu1 %v6651_v15  ;;  %v5691_v15 = vld [vmem:[%s8840_s1 + $0x2a8] ss:$16 sps:$4 sm:$0xff]  }
  0xa4   : > { %2062 = vmatmul.mubr.bf16.gmra.mxu0 %v6525_v57 }
  0xa5   : > { %2071 = vmatprep.mubr.bf16.mxu0 %v6545_v54 }
  0xa8   : > { %2368 = vmatmul.mubr.bf16.gmra.mxu1 %v6678_v58  ;;  %v5700_v58 = vld [vmem:[%s8840_s1 + $0x28c] ss:$16 sps:$4 sm:$0xff]  }
  0xa9   : > { %2377 = vmatprep.mubr.bf16.mxu1 %v6682_v29  ;;  %v5737_v29 = vld [vmem:[%s8842_s3 + $0x60] ss:$8 sps:$4 sm:$0xff]  }
  0xac   : > { %2072 = vmatmul.mubr.bf16.gmra.mxu0 %v6547_v26 }
  0xad   : > { %2081 = vmatprep.mubr.bf16.mxu0 %v6580_v21 }
  0xb0   : > { %2378 = vmatmul.mubr.bf16.gmra.mxu1 %v6714_v19  ;;  %v5707_v19 = vld [vmem:[%s8840_s1 + $0x26c] ss:$16 sps:$4 sm:$0xff]  }
  0xb1   : > { %2387 = vmatprep.mubr.bf16.mxu1 %v6719_v41  ;;  %v5716_v41 = vld [vmem:[%s8840_s1 + $0x24c] ss:$16 sps:$4 sm:$0xff]  }
  0xb4   : > { %2082 = vmatmul.mubr.bf16.gmra.mxu0 %v6582_v10 }
  0xb5   : > { %2091 = vmatprep.mubr.bf16.mxu0 %v6610_v18 }
  0xb8   : > { %2388 = vmatmul.mubr.bf16.gmra.mxu1 %v6397_v60  ;;  %v5675_v60 = vld [vmem:[%s8840_s1 + $0x2e8] ss:$16 sps:$4 sm:$0xff]  }
  0xb9   : > { %2397 = vmatprep.mubr.bf16.mxu1 %v6744_v42  ;;  %v5763_v42 = vld [vmem:[%s8842_s3 + $0x24] ss:$8 sps:$4 sm:$0xff]  }
  0xbc   : > { %2092 = vmatmul.mubr.bf16.gmra.mxu0 %v6612_v23 }
  0xbd   : > { %2101 = vmatprep.mubr.bf16.mxu0 %v6630_v17 }
  0xc0   : > { %2398 = vmatmul.mubr.bf16.gmra.mxu1 %v6430_v13  ;;  %v5731_v13 = vld [vmem:[%s8842_s3 + $0x70] ss:$8 sps:$4 sm:$0xff]  }
  0xc1   : > { %2407 = vmatprep.mubr.bf16.mxu1 %v6460_v0  ;;  %v5733_v0 = vld [vmem:[%s8842_s3 + $0x74] ss:$8 sps:$4 sm:$0xff]  }
  0xc2   : > { %3279 = vmatprep.subr.bf16.mxu1 %v5733_v0  ;;  %v5767_v0 = vld [vmem:[%s8842_s3 + $0x120] ss:$8 sps:$4 sm:$0xff]  }
  0xc3   : > { %3280 = vmatpush1.bf16.msra.mxu1 %v5731_v13 }
  0xc4   : > { %2102 = vmatmul.mubr.bf16.gmra.mxu0 %v6632_v12  ;;  %3281 = vmatprep.subr.bf16.mxu1 %v5739_v33  ;;  %v5776_v33 = vld [vmem:[%s8842_s3 + $0x110] ss:$8 sps:$4 sm:$0xff]  }
  0xc5   : > { %2144 = vmatprep.mubr.bf16.mxu0 %v8878_v9 }
  0xc7   : > { %3282 = vmatpush1.bf16.msra.mxu1 %v5737_v29 }
  0xc8   : > { %2408 = vmatmul.mubr.bf16.gmra.mxu1 %v8879_v45  ;;  %3283 = vmatprep.subr.bf16.mxu1 %v5745_v61  ;;  %v5793_v45 = vld [vmem:[%s8842_s3 + $0xb4] ss:$8 sps:$4 sm:$0xff]  }
  0xc9   : > { %2417 = vmatprep.mubr.bf16.mxu1 %v8880_v47 }
  0xcb   : > { %3284 = vmatpush1.bf16.msra.mxu1 %v5743_v49  ;;  %v5808_v49 = vld [vmem:[%s8842_s3 + $0x84] ss:$8 sps:$4 sm:$0xff]  }
  0xcc   : > { %2145 = vmatmul.mubr.bf16.vlgmr.msra.gmra.mxu0 %v6819_v7  ;;  %3285 = vmatprep.subr.bf16.mxu1 %v5751_v53 }
  0xcd   : > { %2499 = vmatpush1.bf16.msra.mxu0 %v5675_v60  ;;  %2154 = vmatprep.mubr.bf16.mxu0 %v8878_v9 }
  0xce   : > { %2500 = vmatprep.subr.bf16.mxu0 %v5686_v38  ;;  %v5799_v38 = vld [vmem:[%s8842_s3 + $0xa4] ss:$8 sps:$4 sm:$0xff]  }
  0xcf   : > { %3286 = vmatpush1.bf16.msra.mxu1 %v5749_v46 }
  0xd0   : > { %2418 = vmatmul.mubr.bf16.gmra.mxu1 %v8881_v4  ;;  %v5769_v4 = vld [vmem:[%s8842_s3 + $0x124] ss:$8 sps:$4 sm:$0xff]  }
  0xd1   : > { %2501 = vmatpush1.bf16.msra.mxu0 %v5684_v25  ;;  %2427 = vmatprep.mubr.bf16.mxu1 %v6494_v48  ;;  %v5705_v48 = vld [vmem:[%s8840_s1 + $0x268] ss:$16 sps:$4 sm:$0xff]  }
  0xd2   : > { %2502 = vmatprep.subr.bf16.mxu0 %v5693_v30  ;;  %v5797_v30 = vld [vmem:[%s8842_s3 + $0xa0] ss:$8 sps:$4 sm:$0xff]  }
  0xd4   : > { %2155 = vmatmul.mubr.bf16.gmra.mxu0 %v6843_v34 }
  0xd5   : > { %2503 = vmatpush1.bf16.msra.mxu0 %v5691_v15  ;;  %2164 = vmatprep.mubr.bf16.mxu0 %v8878_v9 }
  0xd6   : > { %2504 = vmatprep.subr.bf16.mxu0 %v5700_v58  ;;  %v5802_v58 = vld [vmem:[%s8842_s3 + $0x94] ss:$8 sps:$4 sm:$0xff]  }
  0xd8   : > { %2428 = vmatmul.mubr.bf16.gmra.mxu1 %v6496_v6  ;;  %v5723_v6 = vld [vmem:[%s8840_s1 + $0x22c] ss:$16 sps:$4 sm:$0xff]  }
  0xd9   : > { %2505 = vmatpush1.bf16.msra.mxu0 %v5698_v11  ;;  %2437 = vmatprep.mubr.bf16.mxu1 %v6507_v8  ;;  %v5721_v8 = vld [vmem:[%s8840_s1 + $0x228] ss:$16 sps:$4 sm:$0xff]  }
  0xda   : > { %2506 = vmatprep.subr.bf16.mxu0 %v5707_v19  ;;  %v5787_v19 = vld [vmem:[%s8842_s3 + $0x104] ss:$8 sps:$4 sm:$0xff]  }
  0xdc   : > { %2165 = vmatmul.mubr.bf16.gmra.mxu0 %v6867_v52 }
  0xdd   : > { %2174 = vmatprep.mubr.bf16.mxu0 %v8878_v9  ;;  %2507 = vmatpush1.bf16.msra.mxu0 %v5705_v48 }
  0xde   : > { %2508 = vmatprep.subr.bf16.mxu0 %v5716_v41 }
  0xe0   : > { %2438 = vmatmul.mubr.bf16.gmra.mxu1 %v6509_v16  ;;  %v5736_v16 = vld [vmem:[%s8842_s3 + $0x174] ss:$8 sps:$4 sm:$0xff]  }
  0xe1   : > { %2509 = vmatpush1.bf16.msra.mxu0 %v5714_v2  ;;  %2447 = vmatprep.mubr.bf16.mxu1 %v6523_v56  ;;  %v5757_v56 = vld [vmem:[%s8842_s3 + $0x34] ss:$8 sps:$4 sm:$0xff]   ;;  %v5785_v2 = vld [vmem:[%s8842_s3 + $0x100] ss:$8 sps:$4 sm:$0xff]  }
  0xe2   : > { %2510 = vmatprep.subr.bf16.mxu0 %v5723_v6  ;;  %3287 = vmatprep.subr.bf16.mxu1 %v5757_v56  ;;  %v5805_v56 = vld [vmem:[%s8842_s3 + $0x1e4] ss:$8 sps:$4 sm:$0xff]  }
  0xe3   : > { %3288 = vmatpush1.bf16.msra.mxu1 %v5755_v40 }
  0xe4   : > { %2175 = vmatmul.mubr.bf16.gmra.mxu0 %v6891_v3  ;;  %3289 = vmatprep.subr.bf16.mxu1 %v5763_v42 }
  0xe5   : > { %2184 = vmatprep.mubr.bf16.mxu0 %v8878_v9  ;;  %2511 = vmatpush1.bf16.msra.mxu0 %v5721_v8  ;;  %v5806_v8 = vld [vmem:[%s8842_s3 + $0x80] ss:$8 sps:$4 sm:$0xff]  }
  0xe6   : > { %2512 = vmatprep.subr.bf16.mxu0 %v5730_v44 }
  0xe7   : > { %3290 = vmatpush1.bf16.msra.mxu1 %v5761_v20 }
  0xe8   : > { %2448 = vmatmul.mubr.bf16.gmra.mxu1 %v6525_v57  ;;  %v5766_v57 = vld [vmem:[%s8842_s3 + $0x14] ss:$8 sps:$4 sm:$0xff]  }
  0xe9   : > { %2513 = vmatpush1.bf16.msra.mxu0 %v5728_v55  ;;  %2457 = vmatprep.mubr.bf16.mxu1 %v6545_v54  ;;  %v5764_v54 = vld [vmem:[%s8842_s3 + $0x10] ss:$8 sps:$4 sm:$0xff]  }
  0xea   : > { %3472 = vmatprep.subr.bf16.mxu0 %v5736_v16  ;;  %3291 = vmatprep.subr.bf16.mxu1 %v5766_v57  ;;  %v5794_v55 = vld [vmem:[%s8842_s3 + $0x1f0] ss:$8 sps:$4 sm:$0xff]   ;;  %v5803_v57 = vld [vmem:[%s8842_s3 + $0x1e0] ss:$8 sps:$4 sm:$0xff]  }
  0xeb   : > { %3292 = vmatpush1.bf16.msra.mxu1 %v5764_v54 }
  0xec   : > { %2185 = vmatmul.mubr.bf16.gmra.mxu0 %v6915_v14  ;;  %3293 = vmatprep.subr.bf16.mxu1 %v5772_v5  ;;  %v5811_v5 = vld [vmem:[%s8842_s3 + $0x1d4] ss:$8 sps:$4 sm:$0xff]  }
  0xed   : > { %2194 = vmatprep.mubr.bf16.mxu0 %v8878_v9 }
  0xef   : > { %3294 = vmatpush1.bf16.msra.mxu1 %v5770_v22 }
  0xf0   : > { %2458 = vmatmul.mubr.bf16.gmra.mxu1 %v6547_v26  ;;  %v5775_v26 = vld [vmem:[%s8842_s3 + $0xf4] ss:$8 sps:$4 sm:$0xff]  }
  0xf1   : > { %2467 = vmatprep.mubr.bf16.mxu1 %v6580_v21  ;;  %v5734_v21 = vld [vmem:[%s8842_s3 + $0x170] ss:$8 sps:$4 sm:$0xff]   ;;  %3295 = vmatprep.subr.bf16.mxu1 %v5775_v26 }
  0xf3   : > { %3296 = vmatpush2.bf16.msra.mxu1 %v5773_v1 }
  0xf4   : > { %2195 = vmatmul.mubr.bf16.gmra.mxu0 %v6933_v43  ;;  %3297 = vmatprep.subr.bf16.mxu1 %v5781_v28 }
  0xf5   : > { %2530 = vmatprep.mubr.bf16.mxu0 %v8878_v9 }
  0xf8   : > { %2468 = vmatmul.mubr.bf16.gmra.mxu1 %v6582_v10  ;;  %v5748_v10 = vld [vmem:[%s8842_s3 + $0x154] ss:$8 sps:$4 sm:$0xff]  }
  0xf9   : > { %2477 = vmatprep.mubr.bf16.mxu1 %v6610_v18  ;;  %v5779_v18 = vld [vmem:[%s8842_s3 + $0xe0] ss:$8 sps:$4 sm:$0xff]  }
  0xfa   : > { %3298 = vmatpush2.bf16.msra.mxu1 %v5779_v18  ;;  %v5814_v18 = vld [vmem:[%s8842_s3 + $0x1c4] ss:$8 sps:$4 sm:$0xff]  }
  0xfb   : > { %3299 = vmatprep.subr.bf16.mxu1 %v5784_v36 }
  0xfc   : > { %2531 = vmatmul.mubr.bf16.vlgmr.msra.gmra.mxu0 %v6819_v7 }
  0xfd   : > { %2540 = vmatprep.mubr.bf16.mxu0 %v8878_v9  ;;  %3473 = vmatpush1.bf16.msra.mxu0 %v5734_v21  ;;  %v5809_v21 = vld [vmem:[%s8842_s3 + $0x1d0] ss:$8 sps:$4 sm:$0xff]  }
  0xfe   : > { %3474 = vmatprep.subr.bf16.mxu0 %v5742_v63  ;;  %3300 = vmatpush2.bf16.msra.mxu1 %v5782_v51 }
  0xff   : > { %v6991_v24 = vpop.f32.mrf.mxu1  ;;  %3301 = vmatprep.subr.bf16.mxu1 %v5790_v59 }
 0x100   : > { %2478 = vmatmul.mubr.bf16.gmra.mxu1 %v6612_v23  ;;  %v5760_v23 = vld [vmem:[%s8842_s3 + $0x134] ss:$8 sps:$4 sm:$0xff]  }
 0x101   : > { %3475 = vmatpush1.bf16.msra.mxu0 %v5740_v31  ;;  %2487 = vmatprep.mubr.bf16.mxu1 %v6630_v17  ;;  %v7000_v32 = vpop.f32.mrf.mxu1  ;;  %v5788_v17 = vld [vmem:[%s8842_s3 + $0xc0] ss:$8 sps:$4 sm:$0xff]  }
 0x102   : > { %3476 = vmatprep.subr.bf16.mxu0 %v5748_v10  ;;  %3302 = vmatpush2.bf16.msra.mxu1 %v5788_v17  ;;  %v5812_v10 = vld [vmem:[%s8842_s3 + $0x1c0] ss:$8 sps:$4 sm:$0xff]  }
 0x103   : > { %v7011_v37 = vpop.f32.mrf.mxu1  ;;  %3303 = vmatprep.subr.bf16.mxu1 %v5793_v45  ;;  %v5815_v45 = vld [vmem:[%s8842_s3 + $0x1b0] ss:$8 sps:$4 sm:$0xff]  }
 0x104   : > { %2541 = vmatmul.mubr.bf16.gmra.mxu0 %v6843_v34 }
 0x105   : > { %2550 = vmatprep.mubr.bf16.mxu0 %v8878_v9  ;;  %3477 = vmatpush1.bf16.msra.mxu0 %v5746_v39  ;;  %v7016_v47 = vpop.f32.mrf.mxu1 }
 0x106   : > { %3478 = vmatprep.subr.bf16.mxu0 %v5754_v50  ;;  %3304 = vmatpush2.bf16.msra.mxu1 %v5791_v27  ;;  %v1163_v27 = vlaneseq }
 0x107   : > { %3305 = vmatprep.subr.bf16.mxu1 %v5799_v38 }
 0x108   : > { %v7027_v7 = vpop.f32.mrf.mxu1  ;;  %2488 = vmatmul.mubr.bf16.gmra.mxu1 %v6632_v12  ;;  %v5778_v12 = vld [vmem:[%s8842_s3 + $0x114] ss:$8 sps:$4 sm:$0xff]  }
 0x109   : > { %3479 = vmatpush1.bf16.msra.mxu0 %v5752_v35 }
 0x10a   : > { %3480 = vmatprep.subr.bf16.mxu0 %v5760_v23  ;;  %v7037_v13 = vpop.f32.mrf.mxu1  ;;  %3306 = vmatpush2.bf16.msra.mxu1 %v5797_v30  ;;  %v6035_v23 = vld [vmem:[#allocation2 + $0x98] ss:$12 sps:$4 sm:$0xff]  }
 0x10b   : > { %3307 = vmatprep.subr.bf16.mxu1 %v5802_v58  ;;  %v7180_v58 = vshrl.u32 %v1163_v27, 7  ;;  %v6037_v27 = vld [vmem:[#allocation2 + $0xc8] ss:$12 sps:$4 sm:$0xff]  }
 0x10c   : > { %v7030_v60 = vpop.f32.mrf.mxu0  ;;  %2551 = vmatmul.mubr.bf16.gmra.mxu0 %v6867_v52  ;;  %v7050_v34 = vpop.f32.mrf.mxu1  ;;  %v5800_v52 = vld [vmem:[%s8842_s3 + $0x90] ss:$8 sps:$4 sm:$0xff]  }
 0x10d   : > { %2560 = vmatprep.mubr.bf16.mxu0 %v8878_v9  ;;  %3481 = vmatpush1.bf16.msra.mxu0 %v5758_v62  ;;  %v5817_v62 = vld [vmem:[%s8842_s3 + $0x1b4] ss:$8 sps:$4 sm:$0xff]   ;;  %8888 = vst [vmem:[#allocation8_spill] sm:$0xff] %v7180_v58 }
 0x10e   : > { %v7042_v25 = vpop.f32.mrf.mxu0  ;;  %3482 = vmatprep.subr.bf16.mxu0 %v5769_v4  ;;  %v7057_v29 = vpop.f32.mrf.mxu1  ;;  %3308 = vmatpush2.bf16.msra.mxu1 %v5800_v52  ;;  %v6036_v52 = vld [vmem:[#allocation2 + $0xb0] ss:$12 sps:$4 sm:$0xff]  }
 0x10f   : > { %3309 = vmatprep.subr.bf16.mxu1 %v5808_v49 }
 0x110   : > { %v7052_v15 = vpop.f32.mrf.mxu0  ;;  %v7070_v48 = vpop.f32.mrf.mxu1 }
 0x111   : > { %3483 = vmatpush1.bf16.msra.mxu0 %v5767_v0 }
 0x112   : > { %v7062_v11 = vpop.f32.mrf.mxu0  ;;  %3484 = vmatprep.subr.bf16.mxu0 %v5778_v12  ;;  %v7079_v61 = vpop.f32.mrf.mxu1  ;;  %3310 = vmatpush2.bf16.msra.mxu1 %v5806_v8 }
 0x114   : > { %v7072_v41 = vpop.f32.mrf.mxu0  ;;  %2561 = vmatmul.mubr.bf16.gmra.mxu0 %v6891_v3  ;;  %v5796_v3 = vld [vmem:[%s8842_s3 + $0x1f4] ss:$8 sps:$4 sm:$0xff]   ;;  %v7092_v44 = vpop.f32.mrf.mxu1 }
 0x115   : > { %2570 = vmatprep.mubr.bf16.mxu0 %v8878_v9  ;;  %3485 = vmatpush1.bf16.msra.mxu0 %v5776_v33 }
 0x116   : > { %v7084_v6 = vpop.f32.mrf.mxu0  ;;  %3486 = vmatprep.subr.bf16.mxu0 %v5787_v19  ;;  %v7096_v53 = vpop.f32.mrf.mxu1 }
 0x118   : > { %v7094_v46 = vpop.f32.mrf.mxu0  ;;  %v7106_v40 = vpop.f32.mrf.mxu1 }
 0x119   : > { %3487 = vmatpush1.bf16.msra.mxu0 %v5785_v2  ;;  %v5818_v2 = vld [vmem:[%s8842_s3 + $0x1a0] ss:$8 sps:$4 sm:$0xff]  }
 0x11a   : > { %v7101_v16 = vpop.f32.mrf.mxu0  ;;  %3488 = vmatprep.subr.bf16.mxu0 %v5796_v3  ;;  %v7112_v20 = vpop.f32.mrf.mxu1  ;;  %v5820_v3 = vld [vmem:[%s8842_s3 + $0x1a4] ss:$8 sps:$4 sm:$0xff]  }
 0x11c   : > { %v7108_v42 = vpop.f32.mrf.mxu0  ;;  %2571 = vmatmul.mubr.bf16.gmra.mxu0 %v6915_v14  ;;  %v7122_v22 = vpop.f32.mrf.mxu1 }
 0x11d   : > { %2580 = vmatprep.mubr.bf16.mxu0 %v8878_v9  ;;  %3489 = vmatpush2.bf16.msra.mxu0 %v5794_v55  ;;  %v8857_v55 = vsub.s32 0, %v7180_v58 }
 0x11e   : > { %v7117_v54 = vpop.f32.mrf.mxu0  ;;  %3490 = vmatprep.subr.bf16.mxu0 %v5805_v56  ;;  %v7126_v14 = vpop.f32.mrf.mxu1 }
 0x120   : > { %v7124_v26 = vpop.f32.mrf.mxu0  ;;  %v7133_v1 = vpop.f32.mrf.mxu1 }
 0x121   : > { %3491 = vmatpush2.bf16.msra.mxu0 %v5803_v57  ;;  %v7203_v57 = vld [vmem:[%s8841_s2] sm:$0xf] }
 0x122   : > { %v7131_v63 = vpop.f32.mrf.mxu0  ;;  %3492 = vmatprep.subr.bf16.mxu0 %v5811_v5  ;;  %v7139_v31 = vpop.f32.mrf.mxu1  ;;  %8891 = vst [vmem:[#allocation11_spill] sm:$0xff] %v7203_v57 }
 0x124   : > { %v7135_v28 = vpop.f32.mrf.mxu0  ;;  %2581 = vmatmul.mubr.bf16.gmra.mxu0 %v6933_v43  ;;  %v7149_v39 = vpop.f32.mrf.mxu1 }
 0x125   : > { %2590 = vmatprep.mubr.bf16.mxu0 %v8878_v9  ;;  %3493 = vmatpush2.bf16.msra.mxu0 %v5809_v21  ;;  %v8858_v21 = vsub.s32 1, %v7180_v58 }
 0x126   : > { %v7147_v36 = vpop.f32.mrf.mxu0  ;;  %3494 = vmatprep.subr.bf16.mxu0 %v5814_v18  ;;  %v7153_v43 = vpop.f32.mrf.mxu1 }
 0x127   : > { %8883 = vst [vmem:[#allocation4_spill] sm:$0xff] %v7153_v43 }
 0x128   : > { %v7151_v50 = vpop.f32.mrf.mxu0  ;;  %v7157_v59 = vpop.f32.mrf.mxu1 }
 0x129   : > { %3495 = vmatpush2.bf16.msra.mxu0 %v5812_v10 }
 0x12a   : > { %v7155_v51 = vpop.f32.mrf.mxu0  ;;  %v7162_v17 = vpop.f32.mrf.mxu1  ;;  %3496 = vmatprep.subr.bf16.mxu0 %v5817_v62 }
 0x12c   : > { %v7159_v35 = vpop.f32.mrf.mxu0  ;;  %2591 = vmatmul.mubr.bf16.gmra.mxu0 %v6035_v23  ;;  %v7172_v38 = vpop.f32.mrf.mxu1  ;;  %v7215_v23 = vrot.slane %v7203_v57, %v8857_v55  ;;  %v5821_v55 = vld [vmem:[%s8842_s3 + $0x190] ss:$8 sps:$4 sm:$0xff]  }
 0x12d   : > { %2600 = vmatprep.mubr.bf16.mxu0 %v8878_v9  ;;  %3497 = vmatpush2.bf16.msra.mxu0 %v5815_v45 }
 0x12e   : > { %v7170_v4 = vpop.f32.mrf.mxu0  ;;  %v7176_v12 = vpop.f32.mrf.mxu1  ;;  %3498 = vmatprep.subr.bf16.mxu0 %v5820_v3 }
 0x12f   : > { %8884 = vst [vmem:[#allocation5_spill] sm:$0xff] %v7170_v4  ;;  %8886 = vst [vmem:[#allocation3_spill] sm:$0xff] %v7176_v12 }
 0x130   : > { %v7174_v0 = vpop.f32.mrf.mxu0  ;;  %v7182_v33 = vpop.f32.mrf.mxu1 }
 0x131   : > { %8885 = vst [vmem:[#allocation6_spill] sm:$0xff] %v7174_v0  ;;  %3499 = vmatpush2.bf16.msra.mxu0 %v5818_v2 }
 0x132   : > { %v7178_v30 = vpop.f32.mrf.mxu0  ;;  %v7187_v49 = vpop.f32.mrf.mxu1 }
 0x133   : > { %8887 = vst [vmem:[#allocation7_spill] sm:$0xff] %v7178_v30 }
 0x134   : > { %v7184_v19 = vpop.f32.mrf.mxu0  ;;  %2601 = vmatmul.mubr.bf16.gmra.mxu0 %v6036_v52  ;;  %v7198_v56 = vpop.f32.mrf.mxu1  ;;  %v7222_v52 = vrot.slane %v7203_v57, %v8858_v21 }
 0x135   : > { %8889 = vst [vmem:[#allocation9_spill] sm:$0xff] %v7184_v19  ;;  %2610 = vmatprep.mubr.bf16.mxu0 %v8878_v9 }
 0x136   : > { %v7195_v8 = vpop.f32.mrf.mxu0  ;;  %v7208_v10 = vpop.f32.mrf.mxu1 }
 0x137   : > { %8890 = vst [vmem:[#allocation10_spill] sm:$0xff] %v7195_v8  ;;  %8893 = vst [vmem:[#allocation13_spill] sm:$0xff] %v7208_v10  ;;  %v5823_v10 = vld [vmem:[%s8842_s3 + $0x194] ss:$8 sps:$4 sm:$0xff]  }
 0x138   : > { %v7205_v5 = vpop.f32.mrf.mxu0  ;;  %v7217_v45 = vpop.f32.mrf.mxu1  ;;  %3500 = vmatprep.subr.bf16.mxu0 %v5823_v10 }
 0x139   : > { %8892 = vst [vmem:[#allocation12_spill] sm:$0xff] %v7205_v5  ;;  %3501 = vmatpush2.bf16.msra.mxu0 %v5821_v55  ;;  %v5826_v55 = vld [vmem:[%s8842_s3 + $0x184] ss:$8 sps:$4 sm:$0xff]  }
 0x13a   : > { %v7210_v18 = vpop.f32.mrf.mxu0  ;;  %v7226_v3 = vpop.f32.mrf.mxu1  ;;  %3502 = vmatprep.subr.bf16.mxu0 %v5826_v55 }
 0x13b   : > { %8894 = vst [vmem:[#allocation14_spill] sm:$0xff] %v7210_v18 }
 0x13c   : > { %v2013_v62 = vpop.f32.mrf.mxu0  ;;  %2611 = vmatmul.mubr.bf16.gmra.mxu0 %v6037_v27  ;;  %v7236_v43 = vpop.f32.mrf.mxu1 }
 0x13d   : > { %v2014_v2 = vadd.f32 %v2013_v62, %v7215_v23  ;;  %2620 = vmatprep.mubr.bf16.mxu0 %v8878_v9 }
 0x13e   : > { %v2015_v27 = vpop.f32.mrf.mxu0  ;;  %v7240_v5 = vpop.f32.mrf.mxu1 }
 0x13f   : > { %v2016_v12 = vadd.f32 %v2015_v27, %v7222_v52  ;;  %v2207_v21 = vadd.f32 %v6991_v24, %v2014_v2  ;;  %8895 = vst [vmem:[#allocation15_spill] sm:$0xff] %v7240_v5  ;;  %v6038_v24 = vld [vmem:[#allocation2 + $0xe0] ss:$12 sps:$4 sm:$0xff]  }
 0x140   : > { %v2017_v62 = vpop.f32.mrf.mxu0  ;;  %v7244_v30 = vpop.f32.mrf.mxu1 }
 0x141   : > { %v2018_v57 = vadd.f32 %v2017_v62, %v7215_v23  ;;  %v2209_v18 = vadd.f32 %v7000_v32, %v2016_v12  ;;  %v2739_v10 = vmax.f32 %v2207_v21, 0.0 }
 0x142   : > { %v2019_v58 = vpop.f32.mrf.mxu0 }
 0x143   : > { %v2020_v8 = vadd.f32 %v2019_v58, %v7222_v52  ;;  %v2211_v19 = vadd.f32 %v7011_v37, %v2018_v57  ;;  %v7252_v58 = vpop.f32.mrf.mxu1  ;;  %v5824_v37 = vld [vmem:[%s8842_s3 + $0x180] ss:$8 sps:$4 sm:$0xff]   ;;  %v2740_v57 = vmax.f32 %v2209_v18, 0.0 }
 0x144   : > { %v2023_v27 = vpop.f32.mrf.mxu0  ;;  %2621 = vmatmul.mubr.bf16.gmra.mxu0 %v6038_v24 }
 0x145   : > { %v2743_v2 = vmax.f32 %v2211_v19, 0.0  ;;  %v2024_v32 = vadd.f32 %v2023_v27, %v7215_v23  ;;  %v2213_v12 = vadd.f32 %v7016_v47, %v2020_v8  ;;  %2630 = vmatprep.mubr.bf16.mxu0 %v8878_v9  ;;  %v7261_v27 = vpop.f32.mrf.mxu1  ;;  %3503 = vmatpush2.bf16.msra.mxu0 %v5824_v37 }
 0x146   : > { %v2025_v62 = vpop.f32.mrf.mxu0 }
 0x147   : > { %v7257_v24 = vpack.c.bf16 %v2743_v2, %v2739_v10  ;;  %v2744_v5 = vmax.f32 %v2213_v12, 0.0  ;;  %v2026_v19 = vadd.f32 %v2025_v62, %v7222_v52  ;;  %v2217_v21 = vadd.f32 %v7027_v7, %v2024_v32  ;;  %v7265_v4 = vpop.f32.mrf.mxu1  ;;  %v6039_v32 = vld [vmem:[#allocation2 + $0xf8] ss:$12 sps:$4 sm:$0xff]  }
 0x148   : > { %v2027_v47 = vpop.f32.mrf.mxu0  ;;  %8896 = vst [vmem:[#allocation16_spill] sm:$0xff] %v7265_v4 }
 0x149   : > { %v2028_v8 = vadd.f32 %v2027_v47, %v7215_v23  ;;  %v2219_v0 = vadd.f32 %v7037_v13, %v2026_v19  ;;  %v7267_v18 = vpack.c.bf16 %v2744_v5, %v2740_v57  ;;  %v7271_v12 = vpop.f32.mrf.mxu1  ;;  %v2747_v37 = vmax.f32 %v2217_v21, 0.0 }
 0x14a   : > { %v2029_v55 = vpop.f32.mrf.mxu0 }
 0x14b   : > { %v2030_v10 = vadd.f32 %v2029_v55, %v7222_v52  ;;  %v2221_v2 = vadd.f32 %v7050_v34, %v2028_v8  ;;  %v7276_v5 = vpop.f32.mrf.mxu1  ;;  %v2748_v57 = vmax.f32 %v2219_v0, 0.0 }
 0x14c   : > { %v2033_v7 = vpop.f32.mrf.mxu0  ;;  %2631 = vmatmul.mubr.bf16.gmra.mxu0 %v6039_v32 }
 0x14d   : > { %v2751_v62 = vmax.f32 %v2221_v2, 0.0  ;;  %v2034_v47 = vadd.f32 %v2033_v7, %v7215_v23  ;;  %v2223_v13 = vadd.f32 %v7057_v29, %v2030_v10  ;;  %2640 = vmatprep.mubr.bf16.mxu0 %v8878_v9  ;;  %v7282_v32 = vpop.f32.mrf.mxu1 }
 0x14e   : > { %v2035_v19 = vpop.f32.mrf.mxu0 }
 0x14f   : > { %v7278_v55 = vpack.c.bf16 %v2751_v62, %v2747_v37  ;;  %v2752_v34 = vmax.f32 %v2223_v13, 0.0  ;;  %v2036_v8 = vadd.f32 %v2035_v19, %v7222_v52  ;;  %v2227_v4 = vadd.f32 %v7070_v48, %v2034_v47  ;;  %v7286_v10 = vpop.f32.mrf.mxu1  ;;  %v6040_v48 = vld [vmem:[#allocation2 + $0x110] ss:$12 sps:$4 sm:$0xff]  }
 0x150   : > { %v2037_v21 = vpop.f32.mrf.mxu0  ;;  %8898 = vst [vmem:[#allocation18_spill] sm:$0xff] %v7286_v10 }
 0x151   : > { %8897 = vst [vmem:[#allocation17_spill] sm:$0xff] %v7278_v55  ;;  %v2038_v2 = vadd.f32 %v2037_v21, %v7215_v23  ;;  %v2229_v29 = vadd.f32 %v7079_v61, %v2036_v8  ;;  %v7288_v7 = vpack.c.bf16 %v2752_v34, %v2748_v57  ;;  %v7292_v13 = vpop.f32.mrf.mxu1  ;;  %v2755_v47 = vmax.f32 %v2227_v4, 0.0 }
 0x152   : > { %v2039_v0 = vpop.f32.mrf.mxu0 }
 0x153   : > { %v2040_v37 = vadd.f32 %v2039_v0, %v7222_v52  ;;  %v2231_v62 = vadd.f32 %v7092_v44, %v2038_v2  ;;  %v7297_v57 = vpop.f32.mrf.mxu1  ;;  %v2756_v34 = vmax.f32 %v2229_v29, 0.0 }
 0x154   : > { %v2043_v19 = vpop.f32.mrf.mxu0  ;;  %2641 = vmatmul.mubr.bf16.gmra.mxu0 %v6040_v48 }
 0x155   : > { %v2759_v55 = vmax.f32 %v2231_v62, 0.0  ;;  %v2044_v21 = vadd.f32 %v2043_v19, %v7215_v23  ;;  %v2233_v61 = vadd.f32 %v7096_v53, %v2040_v37  ;;  %2650 = vmatprep.mubr.bf16.mxu0 %v8878_v9  ;;  %v7303_v48 = vpop.f32.mrf.mxu1 }
 0x156   : > { %v2045_v8 = vpop.f32.mrf.mxu0 }
 0x157   : > { %v7299_v0 = vpack.c.bf16 %v2759_v55, %v2755_v47  ;;  %v2760_v44 = vmax.f32 %v2233_v61, 0.0  ;;  %v2046_v2 = vadd.f32 %v2045_v8, %v7222_v52  ;;  %v2237_v10 = vadd.f32 %v7106_v40, %v2044_v21  ;;  %v7307_v37 = vpop.f32.mrf.mxu1  ;;  %v6041_v40 = vld [vmem:[#allocation2 + $0x128] ss:$12 sps:$4 sm:$0xff]  }
 0x158   : > { %v2047_v4 = vpop.f32.mrf.mxu0 }
 0x159   : > { %8899 = vst [vmem:[#allocation19_spill] sm:$0xff] %v7299_v0  ;;  %v2048_v62 = vadd.f32 %v2047_v4, %v7215_v23  ;;  %v2239_v53 = vadd.f32 %v7112_v20, %v2046_v2  ;;  %v7309_v19 = vpack.c.bf16 %v2760_v44, %v2756_v34  ;;  %v7313_v61 = vpop.f32.mrf.mxu1  ;;  %v2763_v21 = vmax.f32 %v2237_v10, 0.0 }
 0x15a   : > { %v2049_v29 = vpop.f32.mrf.mxu0 }
 0x15b   : > { %8900 = vst [vmem:[#allocation20_spill] sm:$0xff] %v7309_v19  ;;  %v2050_v55 = vadd.f32 %v2049_v29, %v7222_v52  ;;  %v2241_v47 = vadd.f32 %v7122_v22, %v2048_v62  ;;  %v7318_v34 = vpop.f32.mrf.mxu1  ;;  %v2764_v44 = vmax.f32 %v2239_v53, 0.0 }
 0x15c   : > { %v2053_v8 = vpop.f32.mrf.mxu0  ;;  %2651 = vmatmul.mubr.bf16.gmra.mxu0 %v6041_v40 }
 0x15d   : > { %v2767_v0 = vmax.f32 %v2241_v47, 0.0  ;;  %v2054_v4 = vadd.f32 %v2053_v8, %v7215_v23  ;;  %v2243_v20 = vadd.f32 %v7126_v14, %v2050_v55  ;;  %2660 = vmatprep.mubr.bf16.mxu0 %v8878_v9  ;;  %v7324_v40 = vpop.f32.mrf.mxu1 }
 0x15e   : > { %v2055_v2 = vpop.f32.mrf.mxu0 }
 0x15f   : > { %v7320_v29 = vpack.c.bf16 %v2767_v0, %v2763_v21  ;;  %v2768_v22 = vmax.f32 %v2243_v20, 0.0  ;;  %v2056_v62 = vadd.f32 %v2055_v2, %v7222_v52  ;;  %v2247_v19 = vadd.f32 %v7133_v1, %v2054_v4  ;;  %v7330_v55 = vpop.f32.mrf.mxu1  ;;  %v6042_v1 = vld [vmem:[#allocation2 + $0x140] ss:$12 sps:$4 sm:$0xff]  }
 0x160   : > { %v2057_v10 = vpop.f32.mrf.mxu0 }
 0x161   : > { %8901 = vst [vmem:[#allocation21_spill] sm:$0xff] %v7320_v29  ;;  %v2058_v47 = vadd.f32 %v2057_v10, %v7215_v23  ;;  %v7328_v14 = vadd.f32 %v7139_v31, %v2056_v62  ;;  %v7332_v8 = vpack.c.bf16 %v2768_v22, %v2764_v44  ;;  %v7337_v21 = vpop.f32.mrf.mxu1  ;;  %v2771_v4 = vmax.f32 %v2247_v19, 0.0 }
 0x162   : > { %v7334_v53 = vpop.f32.mrf.mxu0 }
 0x163   : > { %8902 = vst [vmem:[#allocation22_spill] sm:$0xff] %v7328_v14  ;;  %8903 = vst [vmem:[#allocation23_spill] sm:$0xff] %v7332_v8  ;;  %v2251_v0 = vadd.f32 %v7149_v39, %v2058_v47  ;;  %v7341_v31 = vpop.f32.mrf.mxu1  ;;  %v6044_v8 = vld [vmem:[#allocation2 + $0x170] ss:$12 sps:$4 sm:$0xff]  }
 0x164   : > { %v2063_v20 = vpop.f32.mrf.mxu0  ;;  %2661 = vmatmul.mubr.bf16.gmra.mxu0 %v6042_v1 }
 0x165   : > { %v2775_v2 = vmax.f32 %v2251_v0, 0.0  ;;  %v2064_v10 = vadd.f32 %v2063_v20, %v7215_v23  ;;  %2670 = vmatprep.mubr.bf16.mxu0 %v8878_v9  ;;  %v7347_v47 = vpop.f32.mrf.mxu1 }
 0x166   : > { %v2065_v62 = vpop.f32.mrf.mxu0 }
 0x167   : > { %v7343_v44 = vpack.c.bf16 %v2775_v2, %v2771_v4  ;;  %v2066_v22 = vadd.f32 %v2065_v62, %v7222_v52  ;;  %v2257_v39 = vadd.f32 %v7157_v59, %v2064_v10  ;;  %v7353_v0 = vpop.f32.mrf.mxu1  ;;  %v6043_v62 = vld [vmem:[#allocation2 + $0x158] ss:$12 sps:$4 sm:$0xff]  }
 0x168   : > { %v2067_v29 = vpop.f32.mrf.mxu0 }
 0x169   : > { %8904 = vst [vmem:[#allocation24_spill] sm:$0xff] %v7343_v44  ;;  %v2068_v1 = vadd.f32 %v2067_v29, %v7215_v23  ;;  %v7351_v19 = vadd.f32 %v7162_v17, %v2066_v22  ;;  %v7358_v4 = vpop.f32.mrf.mxu1  ;;  %v2779_v59 = vmax.f32 %v2257_v39, 0.0 }
 0x16a   : > { %v7355_v20 = vpop.f32.mrf.mxu0 }
 0x16b   : > { %8905 = vst [vmem:[#allocation25_spill] sm:$0xff] %v7351_v19  ;;  %8906 = vst [vmem:[#allocation26_spill] sm:$0xff] %v7355_v20  ;;  %v2261_v14 = vadd.f32 %v7172_v38, %v2068_v1  ;;  %v7362_v17 = vpop.f32.mrf.mxu1 }
 0x16c   : > { %v2073_v2 = vpop.f32.mrf.mxu0  ;;  %2671 = vmatmul.mubr.bf16.gmra.mxu0 %v6043_v62 }
 0x16d   : > { %v2783_v10 = vmax.f32 %v2261_v14, 0.0  ;;  %v2074_v44 = vadd.f32 %v2073_v2, %v7215_v23  ;;  %2680 = vmatprep.mubr.bf16.mxu0 %v8878_v9  ;;  %v7374_v39 = vpop.f32.mrf.mxu1 }
 0x16e   : > { %v2075_v29 = vpop.f32.mrf.mxu0 }
 0x16f   : > { %v7364_v22 = vpack.c.bf16 %v2783_v10, %v2779_v59  ;;  %v2076_v19 = vadd.f32 %v2075_v29, %v7222_v52  ;;  %v2267_v38 = vadd.f32 %v7182_v33, %v2074_v44  ;;  %v7378_v44 = vpop.f32.mrf.mxu1 }
 0x170   : > { %v2077_v1 = vpop.f32.mrf.mxu0 }
 0x171   : > { %8907 = vst [vmem:[#allocation27_spill] sm:$0xff] %v7364_v22  ;;  %v2078_v20 = vadd.f32 %v2077_v1, %v7215_v23  ;;  %v7370_v62 = vadd.f32 %v7187_v49, %v2076_v19  ;;  %v2787_v59 = vmax.f32 %v2267_v38, 0.0 }
 0x172   : > { %v7372_v14 = vpop.f32.mrf.mxu0 }
 0x173   : > { %8908 = vst [vmem:[#allocation28_spill] sm:$0xff] %v7370_v62  ;;  %v2271_v9 = vadd.f32 %v7198_v56, %v2078_v20  ;;  %v7390_v20 = vpop.f32.mrf.mxu1 }
 0x174   : > { %v2083_v2 = vpop.f32.mrf.mxu0  ;;  %2681 = vmatmul.mubr.bf16.gmra.mxu0 %v6044_v8 }
 0x175   : > { %v2791_v10 = vmax.f32 %v2271_v9, 0.0  ;;  %v2084_v29 = vadd.f32 %v2083_v2, %v7215_v23 }
 0x176   : > { %v2085_v33 = vpop.f32.mrf.mxu0 }
 0x177   : > { %v7380_v1 = vpack.c.bf16 %v2791_v10, %v2787_v59  ;;  %v2086_v49 = vadd.f32 %v2085_v33, %v7222_v52  ;;  %v2277_v19 = vadd.f32 %v7217_v45, %v2084_v29 }
 0x178   : > { %v2087_v22 = vpop.f32.mrf.mxu0 }
 0x179   : > { %8909 = vst [vmem:[#allocation29_spill] sm:$0xff] %v7380_v1  ;;  %v2088_v62 = vadd.f32 %v2087_v22, %v7215_v23  ;;  %v7386_v56 = vadd.f32 %v7226_v3, %v2086_v49  ;;  %v2795_v2 = vmax.f32 %v2277_v19, 0.0  ;;  %v7394_v1 = vpop.f32.mrf.mxu1 }
 0x17a   : > { %v7388_v8 = vpop.f32.mrf.mxu0 }
 0x17b   : > { %8910 = vst [vmem:[#allocation30_spill] sm:$0xff] %v7386_v56  ;;  %8911 = vst [vmem:[#allocation31_spill] sm:$0xff] %v7388_v8  ;;  %v2281_v38 = vadd.f32 %v7236_v43, %v2088_v62  ;;  %v7406_v62 = vpop.f32.mrf.mxu1 }
 0x17c   : > { %v2093_v9 = vpop.f32.mrf.mxu0 }
 0x17d   : > { %v2799_v59 = vmax.f32 %v2281_v38, 0.0  ;;  %v2094_v10 = vadd.f32 %v2093_v9, %v7215_v23 }
 0x17e   : > { %v2095_v33 = vpop.f32.mrf.mxu0 }
 0x17f   : > { %v7396_v45 = vpack.c.bf16 %v2799_v59, %v2795_v2  ;;  %v2096_v22 = vadd.f32 %v2095_v33, %v7222_v52  ;;  %v2287_v3 = vadd.f32 %v7244_v30, %v2094_v10 }
 0x180   : > { %v2097_v29 = vpop.f32.mrf.mxu0 }
 0x181   : > { %8912 = vst [vmem:[#allocation32_spill] sm:$0xff] %v7396_v45  ;;  %v2098_v49 = vadd.f32 %v2097_v29, %v7215_v23  ;;  %v7402_v56 = vadd.f32 %v7252_v58, %v2096_v22  ;;  %v2803_v9 = vmax.f32 %v2287_v3, 0.0  ;;  %v7410_v45 = vpop.f32.mrf.mxu1 }
 0x182   : > { %v7404_v43 = vpop.f32.mrf.mxu0 }
 0x183   : > { %8913 = vst [vmem:[#allocation33_spill] sm:$0xff] %v7402_v56  ;;  %8914 = vst [vmem:[#allocation34_spill] sm:$0xff] %v7404_v43  ;;  %v2291_v19 = vadd.f32 %v7261_v27, %v2098_v49  ;;  %v7422_v3 = vpop.f32.mrf.mxu1 }
 0x184   : > { %v2103_v38 = vpop.f32.mrf.mxu0 }
 0x185   : > { %v2807_v2 = vmax.f32 %v2291_v19, 0.0  ;;  %v2104_v59 = vadd.f32 %v2103_v38, %v7215_v23  ;;  %v1954_v38 = vadd.f32 %v7030_v60, %v7215_v23 }
 0x186   : > { %v2105_v33 = vpop.f32.mrf.mxu0 }
 0x187   : > { %v7412_v30 = vpack.c.bf16 %v2807_v2, %v2803_v9  ;;  %v2106_v10 = vadd.f32 %v2105_v33, %v7222_v52  ;;  %v2297_v58 = vadd.f32 %v7271_v12, %v2104_v59  ;;  %v7427_v12 = vpop.f32.mrf.mxu1  ;;  %v1956_v59 = vadd.f32 %v7042_v25, %v7222_v52 }
 0x188   : > { %v2107_v22 = vpop.f32.mrf.mxu0  ;;  %v1964_v25 = vadd.f32 %v7072_v41, %v7215_v23 }
 0x189   : > { %8915 = vst [vmem:[#allocation35_spill] sm:$0xff] %v7412_v30  ;;  %v2108_v29 = vadd.f32 %v2107_v22, %v7215_v23  ;;  %v7418_v56 = vadd.f32 %v7276_v5, %v2106_v10  ;;  %v2811_v9 = vmax.f32 %v2297_v58, 0.0  ;;  %v1958_v5 = vadd.f32 %v7052_v15, %v7215_v23 }
 0x18a   : > { %v7420_v27 = vpop.f32.mrf.mxu0 }
 0x18b   : > { %8916 = vst [vmem:[#allocation36_spill] sm:$0xff] %v7418_v56  ;;  %8917 = vst [vmem:[#allocation37_spill] sm:$0xff] %v7420_v27  ;;  %v2301_v49 = vadd.f32 %v7282_v32, %v2108_v29  ;;  %v1960_v32 = vadd.f32 %v7062_v11, %v7222_v52  ;;  %v1966_v11 = vadd.f32 %v7084_v6, %v7222_v52 }
 0x18c   : > { %v2146_v19 = vpop.f32.mrf.mxu0 }
 0x18d   : > { %v2815_v2 = vmax.f32 %v2301_v49, 0.0  ;;  %v2147_v22 = vadd.f32 %v2146_v19, %v1954_v38  ;;  %v7437_v49 = vpop.f32.mrf.mxu1 }
 0x18e   : > { %v2148_v33 = vpop.f32.mrf.mxu0 }
 0x18f   : > { %v7433_v10 = vpack.c.bf16 %v2815_v2, %v2811_v9  ;;  %v2149_v29 = vadd.f32 %v2148_v33, %v1956_v59  ;;  %v2691_v56 = vmax.f32 %v2147_v22, 0.0  ;;  %v7441_v38 = vpop.f32.mrf.mxu1  ;;  %v1970_v22 = vadd.f32 %v7101_v16, %v7222_v52  ;;  %v5827_v16 = vld [vmem:[%s8844_s5 + $0x78] sm:$0xff]  }
 0x190   : > { %v2150_v30 = vpop.f32.mrf.mxu0  ;;  %5433 = vmatprep.subr.bf16.mxu1 %v5827_v16 }
 0x191   : > { %v2151_v60 = vadd.f32 %v2150_v30, %v1958_v5  ;;  %v2692_v15 = vmax.f32 %v2149_v29, 0.0  ;;  %v1968_v30 = vadd.f32 %v7094_v46, %v7215_v23  ;;  %v1974_v46 = vadd.f32 %v7108_v42, %v7215_v23 }
 0x192   : > { %v2152_v58 = vpop.f32.mrf.mxu0  ;;  %v1978_v42 = vadd.f32 %v7124_v26, %v7215_v23  ;;  %v1984_v26 = vadd.f32 %v7135_v28, %v7215_v23 }
 0x193   : > { %v2695_v27 = vmax.f32 %v2151_v60, 0.0  ;;  %v2153_v43 = vadd.f32 %v2152_v58, %v1960_v32 }
 0x194   : > { %v2156_v8 = vpop.f32.mrf.mxu0 }
 0x195   : > { %v2819_v9 = vpack.c.bf16 %v2695_v27, %v2691_v56  ;;  %v2696_v2 = vmax.f32 %v2153_v43, 0.0  ;;  %v2157_v33 = vadd.f32 %v2156_v8, %v1964_v25  ;;  %v7449_v43 = vpop.f32.mrf.mxu1 }
 0x196   : > { %v2158_v19 = vpop.f32.mrf.mxu0 }
 0x197   : > { %v2820_v59 = vpack.c.bf16 %v2696_v2, %v2692_v15  ;;  %v2159_v32 = vadd.f32 %v2158_v19, %v1966_v11  ;;  %v2699_v27 = vmax.f32 %v2157_v33, 0.0  ;;  %v5828_v15 = vld [vmem:[%s8844_s5 + $0x38] sm:$0xff]   ;;  %v7459_v2 = vpop.f32.mrf.mxu1  ;;  %v1976_v19 = vadd.f32 %v7117_v54, %v7222_v52 }
 0x198   : > { %v2160_v5 = vpop.f32.mrf.mxu0 }
 0x199   : > { %v2161_v41 = vadd.f32 %v2160_v5, %v1968_v30  ;;  %3311 = vmatprep.mubr.bf16.mxu1 %v2820_v59  ;;  %v2700_v8 = vmax.f32 %v2159_v32, 0.0  ;;  %v1980_v59 = vadd.f32 %v7131_v63, %v7222_v52  ;;  %v1986_v63 = vadd.f32 %v7147_v36, %v7222_v52 }
 0x19a   : > { %v2162_v56 = vpop.f32.mrf.mxu0  ;;  %3312 = vmatmul.mubr.bf16.vlgmr.msra.gmra.mxu1 %v2819_v9 }
 0x19b   : > { %v2703_v29 = vmax.f32 %v2161_v41, 0.0  ;;  %v2163_v60 = vadd.f32 %v2162_v56, %v1970_v22  ;;  %5434 = vmatpush3.bf16.msra.mxu1 %v5828_v15  ;;  %v7467_v41 = vpop.f32.mrf.mxu1 }
 0x19c   : > { %v2166_v6 = vpop.f32.mrf.mxu0 }
 0x19d   : > { %v2823_v58 = vpack.c.bf16 %v2703_v29, %v2699_v27  ;;  %v2704_v25 = vmax.f32 %v2163_v60, 0.0  ;;  %v2167_v11 = vadd.f32 %v2166_v6, %v1974_v46 }
 0x19e   : > { %v2168_v9 = vpop.f32.mrf.mxu0 }
 0x19f   : > { %v2824_v30 = vpack.c.bf16 %v2704_v25, %v2700_v8  ;;  %v2169_v5 = vadd.f32 %v2168_v9, %v1976_v19  ;;  %v2707_v56 = vmax.f32 %v2167_v11, 0.0  ;;  %v7471_v25 = vpop.f32.mrf.mxu1  ;;  %v1990_v19 = vadd.f32 %v7155_v51, %v7222_v52  ;;  %v5829_v51 = vld [vmem:[%s8844_s5 + $0x70] sm:$0xff]  }
 0x1a0   : > { %v2170_v33 = vpop.f32.mrf.mxu0  ;;  %5435 = vmatprep.subr.bf16.mxu1 %v5829_v51  ;;  %v8922_v51 = vld [vmem:[#allocation10_spill] sm:$0xff] }
 0x1a1   : > { %v2171_v22 = vadd.f32 %v2170_v33, %v1978_v42  ;;  %3321 = vmatprep.mubr.bf16.mxu1 %v2824_v30  ;;  %v2708_v60 = vmax.f32 %v2169_v5, 0.0  ;;  %v7479_v30 = vpop.f32.mrf.mxu1 }
 0x1a2   : > { %v2172_v32 = vpop.f32.mrf.mxu0  ;;  %3322 = vmatmul.mubr.bf16.gmra.mxu1 %v2823_v58  ;;  %v1988_v58 = vadd.f32 %v7151_v50, %v7215_v23  ;;  %v1994_v50 = vadd.f32 %v7159_v35, %v7215_v23 }
 0x1a3   : > { %v2711_v54 = vmax.f32 %v2171_v22, 0.0  ;;  %v2173_v27 = vadd.f32 %v2172_v32, %v1980_v59 }
 0x1a4   : > { %v2176_v29 = vpop.f32.mrf.mxu0 }
 0x1a5   : > { %v2827_v6 = vpack.c.bf16 %v2711_v54, %v2707_v56  ;;  %v2712_v46 = vmax.f32 %v2173_v27, 0.0  ;;  %v2177_v16 = vadd.f32 %v2176_v29, %v1984_v26  ;;  %v5830_v54 = vld [vmem:[%s8844_s5 + $0x30] sm:$0xff]   ;;  %v7489_v29 = vpop.f32.mrf.mxu1 }
 0x1a6   : > { %v2178_v8 = vpop.f32.mrf.mxu0  ;;  %v8918_v26 = vld [vmem:[#allocation5_spill] sm:$0xff]  ;;  %5436 = vmatpush3.bf16.msra.mxu1 %v5830_v54  ;;  %v2006_v54 = vadd.f32 %v8922_v51, %v7222_v52 }
 0x1a7   : > { %v2828_v15 = vpack.c.bf16 %v2712_v46, %v2708_v60  ;;  %v2179_v42 = vadd.f32 %v2178_v8, %v1986_v63  ;;  %v2715_v33 = vmax.f32 %v2177_v16, 0.0  ;;  %v1996_v60 = vadd.f32 %v8918_v26, %v7222_v52 }
 0x1a8   : > { %v2180_v9 = vpop.f32.mrf.mxu0 }
 0x1a9   : > { %v2181_v28 = vadd.f32 %v2180_v9, %v1988_v58  ;;  %3331 = vmatprep.mubr.bf16.mxu1 %v2828_v15  ;;  %v2716_v22 = vmax.f32 %v2179_v42, 0.0  ;;  %v8920_v58 = vld [vmem:[#allocation7_spill] sm:$0xff]  ;;  %v7497_v42 = vpop.f32.mrf.mxu1 }
 0x1aa   : > { %v2182_v11 = vpop.f32.mrf.mxu0  ;;  %3332 = vmatmul.mubr.bf16.gmra.mxu1 %v2827_v6  ;;  %v8919_v6 = vld [vmem:[#allocation6_spill] sm:$0xff]  ;;  %v2000_v16 = vadd.f32 %v8920_v58, %v7222_v52 }
 0x1ab   : > { %v2719_v59 = vmax.f32 %v2181_v28, 0.0  ;;  %v2183_v5 = vadd.f32 %v2182_v11, %v1990_v19  ;;  %v1998_v35 = vadd.f32 %v8919_v6, %v7215_v23  ;;  %v7504_v6 = vpop.f32.mrf.mxu1 }
 0x1ac   : > { %v2186_v36 = vpop.f32.mrf.mxu0 }
 0x1ad   : > { %v2831_v32 = vpack.c.bf16 %v2719_v59, %v2715_v33  ;;  %v2720_v56 = vmax.f32 %v2183_v5, 0.0  ;;  %v2187_v46 = vadd.f32 %v2186_v36, %v1994_v50  ;;  %v8921_v5 = vld [vmem:[#allocation9_spill] sm:$0xff] }
 0x1ae   : > { %v2188_v27 = vpop.f32.mrf.mxu0  ;;  %v2004_v36 = vadd.f32 %v8921_v5, %v7215_v23  ;;  %v7514_v5 = vpop.f32.mrf.mxu1 }
 0x1af   : > { %v2832_v8 = vpack.c.bf16 %v2720_v56, %v2716_v22  ;;  %v2189_v15 = vadd.f32 %v2188_v27, %v1996_v60  ;;  %v2723_v28 = vmax.f32 %v2187_v46, 0.0  ;;  %v8923_v27 = vld [vmem:[#allocation8_spill] sm:$0xff] }
 0x1b0   : > { %v2190_v63 = vpop.f32.mrf.mxu0  ;;  %v1173_v26 = vsub.s32 2, %v8923_v27 }
 0x1b1   : > { %v2191_v9 = vadd.f32 %v2190_v63, %v1998_v35  ;;  %3341 = vmatprep.mubr.bf16.mxu1 %v2832_v8  ;;  %v2724_v50 = vmax.f32 %v2189_v15, 0.0  ;;  %v1177_v8 = vsub.s32 3, %v8923_v27 }
 0x1b2   : > { %v2192_v19 = vpop.f32.mrf.mxu0  ;;  %3342 = vmatmul.mubr.bf16.gmra.mxu1 %v2831_v32  ;;  %v8924_v32 = vld [vmem:[#allocation12_spill] sm:$0xff] }
 0x1b3   : > { %v2727_v11 = vmax.f32 %v2191_v9, 0.0  ;;  %v2193_v33 = vadd.f32 %v2192_v19, %v2000_v16  ;;  %v2008_v35 = vadd.f32 %v8924_v32, %v7215_v23  ;;  %v8925_v16 = vld [vmem:[#allocation14_spill] sm:$0xff] }
 0x1b4   : > { %v2196_v59 = vpop.f32.mrf.mxu0  ;;  %v2010_v15 = vadd.f32 %v8925_v16, %v7222_v52 }
 0x1b5   : > { %v2835_v22 = vpack.c.bf16 %v2727_v11, %v2723_v28  ;;  %v2728_v56 = vmax.f32 %v2193_v33, 0.0  ;;  %v2197_v46 = vadd.f32 %v2196_v59, %v2004_v36  ;;  %v8926_v28 = vld [vmem:[#allocation11_spill] sm:$0xff] }
 0x1b6   : > { %v2198_v60 = vpop.f32.mrf.mxu0  ;;  %v7512_v11 = vrot.slane %v8926_v28, %v1173_v26  ;;  %v7517_v23 = vrot.slane %v8926_v28, %v1177_v8 }
 0x1b7   : > { %v2836_v63 = vpack.c.bf16 %v2728_v56, %v2724_v50  ;;  %v2199_v9 = vadd.f32 %v2198_v60, %v2006_v54  ;;  %v2731_v51 = vmax.f32 %v2197_v46, 0.0  ;;  %v5831_v54 = vld [vmem:[%s8844_s5 + $0x68] sm:$0xff]  }
 0x1b8   : > { %v2200_v58 = vpop.f32.mrf.mxu0  ;;  %v2340_v26 = vadd.f32 %v7292_v13, %v7512_v11  ;;  %v2342_v46 = vadd.f32 %v7297_v57, %v7517_v23  ;;  %v2344_v8 = vadd.f32 %v7303_v48, %v7512_v11  ;;  %5437 = vmatprep.subr.bf16.mxu1 %v5831_v54  ;;  %v5833_v57 = vld [vmem:[%s8844_s5 + $0x60] sm:$0xff]   ;;  %v2350_v54 = vadd.f32 %v7313_v61, %v7512_v11 }
 0x1b9   : > { %v2201_v19 = vadd.f32 %v2200_v58, %v2008_v35  ;;  %3351 = vmatprep.mubr.bf16.mxu1 %v2836_v63  ;;  %v2732_v56 = vmax.f32 %v2199_v9, 0.0  ;;  %v7527_v35 = vpop.f32.mrf.mxu1  ;;  %v5834_v48 = vld [vmem:[%s8844_s5 + $0x20] sm:$0xff]  }
 0x1ba   : > { %v2202_v33 = vpop.f32.mrf.mxu0  ;;  %3352 = vmatmul.mubr.bf16.gmra.mxu1 %v2835_v22  ;;  %v5832_v22 = vld [vmem:[%s8844_s5 + $0x28] sm:$0xff]  }
 0x1bb   : > { %v2735_v59 = vmax.f32 %v2201_v19, 0.0  ;;  %v2203_v36 = vadd.f32 %v2202_v33, %v2010_v15  ;;  %5438 = vmatpush3.bf16.msra.mxu1 %v5832_v22  ;;  %v2346_v15 = vadd.f32 %v7307_v37, %v7517_v23  ;;  %v7535_v33 = vpop.f32.mrf.mxu1  ;;  %v5835_v37 = vld [vmem:[%s8844_s5 + $0x58] sm:$0xff]  }
 0x1bc   : > { %v2532_v50 = vpop.f32.mrf.mxu0  ;;  %5439 = vmatprep.subr.bf16.mxu1 %v5833_v57 }
 0x1bd   : > { %v2839_v32 = vpack.c.bf16 %v2735_v59, %v2731_v51  ;;  %v2736_v16 = vmax.f32 %v2203_v36, 0.0  ;;  %v2533_v13 = vadd.f32 %v2532_v50, %v2340_v26  ;;  %v7552_v26 = vpop.f32.mrf.mxu1 }
 0x1be   : > { %v2534_v60 = vpop.f32.mrf.mxu0 }
 0x1bf   : > { %v2840_v63 = vpack.c.bf16 %v2736_v16, %v2732_v56  ;;  %v2535_v9 = vadd.f32 %v2534_v60, %v2342_v46  ;;  %5440 = vmatpush3.bf16.msra.mxu1 %v5834_v48  ;;  %v2693_v16 = vmax.f32 %v2533_v13, 0.0  ;;  %v2354_v60 = vadd.f32 %v7324_v40, %v7512_v11  ;;  %v7561_v13 = vpop.f32.mrf.mxu1 }
 0x1c0   : > { %v2536_v58 = vpop.f32.mrf.mxu0  ;;  %5441 = vmatprep.subr.bf16.mxu1 %v5835_v37 }
 0x1c1   : > { %v2537_v19 = vadd.f32 %v2536_v58, %v2344_v8  ;;  %3361 = vmatprep.mubr.bf16.mxu1 %v2840_v63  ;;  %v2694_v50 = vmax.f32 %v2535_v9, 0.0  ;;  %v2356_v58 = vadd.f32 %v7330_v55, %v7517_v23  ;;  %v2360_v55 = vadd.f32 %v7337_v21, %v7512_v11 }
 0x1c2   : > { %v2538_v28 = vpop.f32.mrf.mxu0  ;;  %3362 = vmatmul.mubr.bf16.gmra.mxu1 %v2839_v32  ;;  %v5836_v32 = vld [vmem:[%s8844_s5 + $0x18] sm:$0xff]  }
 0x1c3   : > { %v2539_v51 = vadd.f32 %v2538_v28, %v2346_v15  ;;  %3371 = vmatprep.mubr.bf16.mxu1 %v7267_v18  ;;  %v2697_v59 = vmax.f32 %v2537_v19, 0.0  ;;  %v2352_v18 = vadd.f32 %v7318_v34, %v7517_v23  ;;  %5442 = vmatpush3.bf16.msra.mxu1 %v5836_v32  ;;  %v2366_v32 = vadd.f32 %v7353_v0, %v7517_v23 }
 0x1c4   : > { %v2542_v36 = vpop.f32.mrf.mxu0 }
 0x1c5   : > { %v2698_v56 = vmax.f32 %v2539_v51, 0.0  ;;  %v2821_v8 = vpack.c.bf16 %v2697_v59, %v2693_v16  ;;  %v2543_v61 = vadd.f32 %v2542_v36, %v2350_v54  ;;  %v7566_v59 = vpop.f32.mrf.mxu1  ;;  %v2364_v36 = vadd.f32 %v7347_v47, %v7512_v11 }
 0x1c6   : > { %v2544_v22 = vpop.f32.mrf.mxu0  ;;  %v2060_v47 = vadd.f32 %v7334_v53, %v7222_v52 }
 0x1c7   : > { %v2822_v46 = vpack.c.bf16 %v2698_v56, %v2694_v50  ;;  %v2545_v15 = vadd.f32 %v2544_v22, %v2352_v18  ;;  %v2701_v37 = vmax.f32 %v2543_v61, 0.0  ;;  %v8927_v18 = vld [vmem:[#allocation17_spill] sm:$0xff] }
 0x1c8   : > { %v2546_v63 = vpop.f32.mrf.mxu0 }
 0x1c9   : > { %v2547_v9 = vadd.f32 %v2546_v63, %v2354_v60  ;;  %3504 = vmatprep.mubr.bf16.mxu0 %v2822_v46  ;;  %v2702_v57 = vmax.f32 %v2545_v15, 0.0  ;;  %v7575_v60 = vpop.f32.mrf.mxu1  ;;  %v8928_v46 = vld [vmem:[#allocation20_spill] sm:$0xff] }
 0x1ca   : > { %v2548_v19 = vpop.f32.mrf.mxu0  ;;  %3372 = vmatmul.mubr.bf16.gmra.mxu1 %v7257_v24  ;;  %3505 = vmatmul.mubr.bf16.vlgmr.msra.gmra.mxu0 %v2821_v8  ;;  %v2362_v24 = vadd.f32 %v7341_v31, %v7517_v23 }
 0x1cb   : > { %v2549_v34 = vadd.f32 %v2548_v19, %v2356_v58  ;;  %3381 = vmatprep.mubr.bf16.mxu1 %v7288_v7  ;;  %v2705_v40 = vmax.f32 %v2547_v9, 0.0  ;;  %v2370_v9 = vadd.f32 %v7358_v4, %v7512_v11  ;;  %v7582_v19 = vpop.f32.mrf.mxu1 }
 0x1cc   : > { %v2552_v28 = vpop.f32.mrf.mxu0 }
 0x1cd   : > { %v2706_v48 = vmax.f32 %v2549_v34, 0.0  ;;  %v2825_v56 = vpack.c.bf16 %v2705_v40, %v2701_v37  ;;  %v2553_v22 = vadd.f32 %v2552_v28, %v2360_v55  ;;  %v2372_v34 = vadd.f32 %v7362_v17, %v7517_v23  ;;  %v7592_v17 = vpop.f32.mrf.mxu1 }
 0x1ce   : > { %v2554_v51 = vpop.f32.mrf.mxu0  ;;  %v2374_v40 = vadd.f32 %v7374_v39, %v7512_v11  ;;  %v2376_v55 = vadd.f32 %v7378_v44, %v7517_v23  ;;  %v8931_v39 = vld [vmem:[#allocation23_spill] sm:$0xff] }
 0x1cf   : > { %v2826_v50 = vpack.c.bf16 %v2706_v48, %v2702_v57  ;;  %v2555_v16 = vadd.f32 %v2554_v51, %v2362_v24  ;;  %v2709_v15 = vmax.f32 %v2553_v22, 0.0  ;;  %v8929_v57 = vld [vmem:[#allocation4_spill] sm:$0xff] }
 0x1d0   : > { %v2556_v7 = vpop.f32.mrf.mxu0  ;;  %v2253_v53 = vadd.f32 %v8929_v57, %v2060_v47  ;;  %v2380_v47 = vadd.f32 %v7390_v20, %v7512_v11  ;;  %v2386_v57 = vadd.f32 %v7410_v45, %v7517_v23 }
 0x1d1   : > { %v2557_v54 = vadd.f32 %v2556_v7, %v2364_v36  ;;  %3514 = vmatprep.mubr.bf16.mxu0 %v2826_v50  ;;  %v2710_v58 = vmax.f32 %v2555_v16, 0.0  ;;  %v8930_v50 = vld [vmem:[#allocation19_spill] sm:$0xff] }
 0x1d2   : > { %v2558_v21 = vpop.f32.mrf.mxu0  ;;  %3382 = vmatmul.mubr.bf16.gmra.mxu1 %v8927_v18  ;;  %3515 = vmatmul.mubr.bf16.gmra.mxu0 %v2825_v56  ;;  %v2776_v7 = vmax.f32 %v2253_v53, 0.0  ;;  %v8933_v18 = vld [vmem:[#allocation22_spill] sm:$0xff] }
 0x1d3   : > { %v2559_v31 = vadd.f32 %v2558_v21, %v2366_v32  ;;  %3391 = vmatprep.mubr.bf16.mxu1 %v8928_v46  ;;  %v2713_v8 = vmax.f32 %v2557_v54, 0.0  ;;  %v8932_v54 = vld [vmem:[#allocation26_spill] sm:$0xff] }
 0x1d4   : > { %v2562_v63 = vpop.f32.mrf.mxu0  ;;  %v2070_v22 = vadd.f32 %v8932_v54, %v7222_v52 }
 0x1d5   : > { %v2714_v0 = vmax.f32 %v2559_v31, 0.0  ;;  %v2829_v48 = vpack.c.bf16 %v2713_v8, %v2709_v15  ;;  %v2563_v4 = vadd.f32 %v2562_v63, %v2370_v9  ;;  %v2772_v31 = vmax.f32 %v8933_v18, 0.0  ;;  %v7600_v63 = vpop.f32.mrf.mxu1 }
 0x1d6   : > { %v2564_v61 = vpop.f32.mrf.mxu0 }
 0x1d7   : > { %v2830_v28 = vpack.c.bf16 %v2714_v0, %v2710_v58  ;;  %v2565_v51 = vadd.f32 %v2564_v61, %v2372_v34  ;;  %v2717_v46 = vmax.f32 %v2563_v4, 0.0  ;;  %v2382_v58 = vadd.f32 %v7394_v1, %v7517_v23  ;;  %v7610_v1 = vpop.f32.mrf.mxu1 }
 0x1d8   : > { %v2566_v37 = vpop.f32.mrf.mxu0  ;;  %v2384_v0 = vadd.f32 %v7406_v62, %v7512_v11  ;;  %v2860_v34 = vpack.c.bf16 %v2776_v7, %v2772_v31 }
 0x1d9   : > { %v2567_v24 = vadd.f32 %v2566_v37, %v2374_v40  ;;  %3524 = vmatprep.mubr.bf16.mxu0 %v2830_v28  ;;  %v2718_v44 = vmax.f32 %v2565_v51, 0.0  ;;  %v8934_v40 = vld [vmem:[#allocation3_spill] sm:$0xff]  ;;  %v2080_v51 = vadd.f32 %v7372_v14, %v7222_v52  ;;  %v2394_v14 = vadd.f32 %v7437_v49, %v7512_v11 }
 0x1da   : > { %v2568_v36 = vpop.f32.mrf.mxu0  ;;  %3392 = vmatmul.mubr.bf16.gmra.mxu1 %v8930_v50  ;;  %3525 = vmatmul.mubr.bf16.gmra.mxu0 %v2829_v48  ;;  %v2263_v28 = vadd.f32 %v8934_v40, %v2070_v22  ;;  %v2392_v22 = vadd.f32 %v7427_v12, %v7517_v23  ;;  %v5838_v12 = vld [vmem:[%s8844_s5 + $0x10] sm:$0xff]  }
 0x1db   : > { %v2569_v56 = vadd.f32 %v2568_v36, %v2376_v55  ;;  %3401 = vmatprep.mubr.bf16.mxu1 %v8931_v39  ;;  %v2721_v32 = vmax.f32 %v2567_v24, 0.0  ;;  %v8935_v55 = vld [vmem:[#allocation21_spill] sm:$0xff]  ;;  %v2390_v39 = vadd.f32 %v7422_v3, %v7512_v11 }
 0x1dc   : > { %v2572_v16 = vpop.f32.mrf.mxu0  ;;  %v2784_v36 = vmax.f32 %v2263_v28, 0.0 }
 0x1dd   : > { %v2722_v21 = vmax.f32 %v2569_v56, 0.0  ;;  %v2833_v9 = vpack.c.bf16 %v2721_v32, %v2717_v46  ;;  %v2573_v48 = vadd.f32 %v2572_v16, %v2380_v47  ;;  %v7616_v32 = vpop.f32.mrf.mxu1  ;;  %v8936_v16 = vld [vmem:[#allocation25_spill] sm:$0xff]  ;;  %v2396_v47 = vadd.f32 %v7441_v38, %v7517_v23 }
 0x1de   : > { %v2574_v8 = vpop.f32.mrf.mxu0  ;;  %v2780_v54 = vmax.f32 %v8936_v16, 0.0  ;;  %v8941_v16 = vld [vmem:[#allocation15_spill] sm:$0xff] }
 0x1df   : > { %v2834_v15 = vpack.c.bf16 %v2722_v21, %v2718_v44  ;;  %v2575_v53 = vadd.f32 %v2574_v8, %v2382_v58  ;;  %v2725_v56 = vmax.f32 %v2573_v48, 0.0  ;;  %v8937_v21 = vld [vmem:[#allocation13_spill] sm:$0xff] }
 0x1e0   : > { %v2576_v61 = vpop.f32.mrf.mxu0  ;;  %v2273_v18 = vadd.f32 %v8937_v21, %v2080_v51  ;;  %v2864_v58 = vpack.c.bf16 %v2784_v36, %v2780_v54  ;;  %v2400_v51 = vadd.f32 %v7449_v43, %v7512_v11  ;;  %v2402_v36 = vadd.f32 %v7459_v2, %v7517_v23 }
 0x1e1   : > { %v2577_v20 = vadd.f32 %v2576_v61, %v2384_v0  ;;  %3534 = vmatprep.mubr.bf16.mxu0 %v2834_v15  ;;  %v2726_v50 = vmax.f32 %v2575_v53, 0.0  ;;  %v5837_v0 = vld [vmem:[%s8844_s5 + $0x50] sm:$0xff]   ;;  %v7633_v61 = vpop.f32.mrf.mxu1 }
 0x1e2   : > { %v2578_v37 = vpop.f32.mrf.mxu0  ;;  %3402 = vmatmul.mubr.bf16.gmra.mxu1 %v8935_v55  ;;  %3535 = vmatmul.mubr.bf16.gmra.mxu0 %v2833_v9  ;;  %v8938_v9 = vld [vmem:[#allocation24_spill] sm:$0xff] }
 0x1e3   : > { %v2579_v62 = vadd.f32 %v2578_v37, %v2386_v57  ;;  %3411 = vmatprep.mubr.bf16.mxu1 %v2860_v34  ;;  %v2729_v24 = vmax.f32 %v2577_v20, 0.0  ;;  %5443 = vmatprep.subr.bf16.mxu1 %v5837_v0  ;;  %v2792_v34 = vmax.f32 %v2273_v18, 0.0  ;;  %v8939_v57 = vld [vmem:[#allocation31_spill] sm:$0xff]  ;;  %v8940_v37 = vld [vmem:[#allocation28_spill] sm:$0xff] }
 0x1e4   : > { %v2582_v4 = vpop.f32.mrf.mxu0  ;;  %5444 = vmatpush3.bf16.msra.mxu1 %v5838_v12  ;;  %v2090_v53 = vadd.f32 %v8939_v57, %v7222_v52  ;;  %v2788_v55 = vmax.f32 %v8940_v37, 0.0  ;;  %v8942_v18 = vld [vmem:[#allocation27_spill] sm:$0xff]  ;;  %v2410_v12 = vadd.f32 %v7479_v30, %v7512_v11  ;;  %v8945_v57 = vld [vmem:[#allocation16_spill] sm:$0xff]  ;;  %v2416_v37 = vadd.f32 %v7504_v6, %v7517_v23 }
 0x1e5   : > { %v2730_v45 = vmax.f32 %v2579_v62, 0.0  ;;  %v2837_v31 = vpack.c.bf16 %v2729_v24, %v2725_v56  ;;  %v2583_v49 = vadd.f32 %v2582_v4, %v2390_v39  ;;  %v7640_v4 = vpop.f32.mrf.mxu1 }
 0x1e6   : > { %v2584_v7 = vpop.f32.mrf.mxu0  ;;  %v2283_v54 = vadd.f32 %v8941_v16, %v2090_v53 }
 0x1e7   : > { %v2838_v44 = vpack.c.bf16 %v2730_v45, %v2726_v50  ;;  %v2585_v3 = vadd.f32 %v2584_v7, %v2392_v22  ;;  %v2733_v62 = vmax.f32 %v2583_v49, 0.0  ;;  %v2404_v50 = vadd.f32 %v7467_v41, %v7512_v11  ;;  %v7650_v2 = vpop.f32.mrf.mxu1 }
 0x1e8   : > { %v2586_v46 = vpop.f32.mrf.mxu0  ;;  %v2868_v7 = vpack.c.bf16 %v2792_v34, %v2788_v55  ;;  %v2406_v22 = vadd.f32 %v7471_v25, %v7517_v23  ;;  %v2412_v34 = vadd.f32 %v7489_v29, %v7517_v23  ;;  %v5840_v29 = vld [vmem:[%s8844_s5 + $0x8] sm:$0xff]  }
 0x1e9   : > { %v2587_v8 = vadd.f32 %v2586_v46, %v2394_v14  ;;  %3544 = vmatprep.mubr.bf16.mxu0 %v2838_v44  ;;  %v2734_v20 = vmax.f32 %v2585_v3, 0.0 }
 0x1ea   : > { %v2588_v15 = vpop.f32.mrf.mxu0  ;;  %3412 = vmatmul.mubr.bf16.gmra.mxu1 %v8938_v9  ;;  %3545 = vmatmul.mubr.bf16.gmra.mxu0 %v2837_v31  ;;  %v8943_v31 = vld [vmem:[#allocation34_spill] sm:$0xff] }
 0x1eb   : > { %v2589_v38 = vadd.f32 %v2588_v15, %v2396_v47  ;;  %3421 = vmatprep.mubr.bf16.mxu1 %v2864_v58  ;;  %v2737_v40 = vmax.f32 %v2587_v8, 0.0  ;;  %v2100_v46 = vadd.f32 %v8943_v31, %v7222_v52  ;;  %v2800_v8 = vmax.f32 %v2283_v54, 0.0  ;;  %v7656_v15 = vpop.f32.mrf.mxu1  ;;  %v8944_v9 = vld [vmem:[#allocation30_spill] sm:$0xff] }
 0x1ec   : > { %v2592_v28 = vpop.f32.mrf.mxu0  ;;  %v2422_v31 = vadd.f32 %v7527_v35, %v7517_v23 }
 0x1ed   : > { %v2738_v48 = vmax.f32 %v2589_v38, 0.0  ;;  %v2841_v56 = vpack.c.bf16 %v2737_v40, %v2733_v62  ;;  %v2593_v44 = vadd.f32 %v2592_v28, %v2400_v51  ;;  %v2796_v38 = vmax.f32 %v8944_v9, 0.0  ;;  %v5839_v51 = vld [vmem:[%s8844_s5 + $0x48] sm:$0xff]  }
 0x1ee   : > { %v2594_v24 = vpop.f32.mrf.mxu0  ;;  %v2414_v40 = vadd.f32 %v7497_v42, %v7512_v11  ;;  %v2293_v53 = vadd.f32 %v8945_v57, %v2100_v46  ;;  %5445 = vmatprep.subr.bf16.mxu1 %v5839_v51  ;;  %v2424_v46 = vadd.f32 %v7535_v33, %v7512_v11  ;;  %v2434_v51 = vadd.f32 %v7575_v60, %v7512_v11 }
 0x1ef   : > { %v2842_v45 = vpack.c.bf16 %v2738_v48, %v2734_v20  ;;  %v2595_v14 = vadd.f32 %v2594_v24, %v2402_v36  ;;  %v2741_v0 = vmax.f32 %v2593_v44, 0.0  ;;  %v2872_v62 = vpack.c.bf16 %v2800_v8, %v2796_v38  ;;  %v8946_v36 = vld [vmem:[#allocation29_spill] sm:$0xff]  ;;  %5446 = vmatpush3.bf16.msra.mxu1 %v5840_v29  ;;  %v8950_v38 = vld [vmem:[#allocation32_spill] sm:$0xff] }
 0x1f0   : > { %v2596_v39 = vpop.f32.mrf.mxu0 }
 0x1f1   : > { %v2597_v43 = vadd.f32 %v2596_v39, %v2404_v50  ;;  %3554 = vmatprep.mubr.bf16.mxu0 %v2842_v45  ;;  %v2742_v58 = vmax.f32 %v2595_v14, 0.0  ;;  %v7673_v50 = vpop.f32.mrf.mxu1  ;;  %v2808_v45 = vmax.f32 %v2293_v53, 0.0  ;;  %v8948_v14 = vld [vmem:[#allocation33_spill] sm:$0xff] }
 0x1f2   : > { %v2598_v21 = vpop.f32.mrf.mxu0  ;;  %3422 = vmatmul.mubr.bf16.gmra.mxu1 %v8942_v18  ;;  %3555 = vmatmul.mubr.bf16.gmra.mxu0 %v2841_v56 }
 0x1f3   : > { %v2599_v41 = vadd.f32 %v2598_v21, %v2406_v22  ;;  %3431 = vmatprep.mubr.bf16.mxu1 %v2868_v7  ;;  %v2745_v47 = vmax.f32 %v2597_v43, 0.0  ;;  %v8947_v7 = vld [vmem:[#allocation37_spill] sm:$0xff]  ;;  %v2804_v43 = vmax.f32 %v8948_v14, 0.0  ;;  %v2420_v21 = vadd.f32 %v7514_v5, %v7512_v11 }
 0x1f4   : > { %v2602_v3 = vpop.f32.mrf.mxu0  ;;  %v2110_v16 = vadd.f32 %v8947_v7, %v7222_v52  ;;  %v8952_v7 = vld [vmem:[#allocation35_spill] sm:$0xff] }
 0x1f5   : > { %v2746_v25 = vmax.f32 %v2599_v41, 0.0  ;;  %v2845_v20 = vpack.c.bf16 %v2745_v47, %v2741_v0  ;;  %v2603_v42 = vadd.f32 %v2602_v3, %v2410_v12  ;;  %v7680_v41 = vpop.f32.mrf.mxu1  ;;  %v2876_v8 = vpack.c.bf16 %v2808_v45, %v2804_v43 }
 0x1f6   : > { %v2604_v49 = vpop.f32.mrf.mxu0  ;;  %v2426_v0 = vadd.f32 %v7552_v26, %v7517_v23  ;;  %v2430_v26 = vadd.f32 %v7561_v13, %v7512_v11 }
 0x1f7   : > { %v2846_v28 = vpack.c.bf16 %v2746_v25, %v2742_v58  ;;  %v2605_v30 = vadd.f32 %v2604_v49, %v2412_v34  ;;  %v2749_v44 = vmax.f32 %v2603_v42, 0.0  ;;  %v8949_v58 = vld [vmem:[#allocation18_spill] sm:$0xff]  ;;  %v7690_v35 = vpop.f32.mrf.mxu1 }
 0x1f8   : > { %v2606_v48 = vpop.f32.mrf.mxu0  ;;  %v2303_v25 = vadd.f32 %v8949_v58, %v2110_v16  ;;  %v2446_v58 = vadd.f32 %v7616_v32, %v7517_v23 }
 0x1f9   : > { %v2607_v55 = vadd.f32 %v2606_v48, %v2414_v40  ;;  %3564 = vmatprep.mubr.bf16.mxu0 %v2846_v28  ;;  %v2750_v54 = vmax.f32 %v2605_v30, 0.0  ;;  %v8951_v30 = vld [vmem:[#allocation36_spill] sm:$0xff] }
 0x1fa   : > { %v2608_v24 = vpop.f32.mrf.mxu0  ;;  %3432 = vmatmul.mubr.bf16.gmra.mxu1 %v8946_v36  ;;  %3565 = vmatmul.mubr.bf16.gmra.mxu0 %v2845_v20  ;;  %v2816_v28 = vmax.f32 %v2303_v25, 0.0  ;;  %v2436_v36 = vadd.f32 %v7582_v19, %v7517_v23 }
 0x1fb   : > { %v2609_v6 = vadd.f32 %v2608_v24, %v2416_v37  ;;  %3441 = vmatprep.mubr.bf16.mxu1 %v2872_v62  ;;  %v2753_v56 = vmax.f32 %v2607_v55, 0.0  ;;  %v7694_v37 = vpop.f32.mrf.mxu1  ;;  %v2812_v55 = vmax.f32 %v8951_v30, 0.0  ;;  %v2432_v62 = vadd.f32 %v7566_v59, %v7517_v23  ;;  %v5842_v59 = vld [vmem:[%s8844_s5] sm:$0xff]  }
 0x1fc   : > { %v2612_v39 = vpop.f32.mrf.mxu0 }
 0x1fd   : > { %v2754_v22 = vmax.f32 %v2609_v6, 0.0  ;;  %v2849_v3 = vpack.c.bf16 %v2753_v56, %v2749_v44  ;;  %v2613_v49 = vadd.f32 %v2612_v39, %v2420_v21  ;;  %v2880_v13 = vpack.c.bf16 %v2816_v28, %v2812_v55  ;;  %v5841_v56 = vld [vmem:[%s8844_s5 + $0x40] sm:$0xff]   ;;  %v7710_v16 = vpop.f32.mrf.mxu1 }
 0x1fe   : > { %v2614_v18 = vpop.f32.mrf.mxu0  ;;  %5447 = vmatprep.subr.bf16.mxu1 %v5841_v56  ;;  %v2440_v21 = vadd.f32 %v7592_v17, %v7512_v11  ;;  %v2452_v28 = vadd.f32 %v7640_v4, %v7517_v23 }
 0x1ff   : > { %v2850_v47 = vpack.c.bf16 %v2754_v22, %v2750_v54  ;;  %v2615_v12 = vadd.f32 %v2614_v18, %v2422_v31  ;;  %v2757_v20 = vmax.f32 %v2613_v49, 0.0  ;;  %5448 = vmatpush3.bf16.msra.mxu1 %v5842_v59  ;;  %v7714_v31 = vpop.f32.mrf.mxu1 }
 0x200   : > { %v2616_v52 = vpop.f32.mrf.mxu0 }
 0x201   : > { %v2617_v5 = vadd.f32 %v2616_v52, %v2424_v46  ;;  %3574 = vmatprep.mubr.bf16.mxu0 %v2850_v47  ;;  %v2758_v57 = vmax.f32 %v2615_v12, 0.0  ;;  %v2442_v46 = vadd.f32 %v7600_v63, %v7517_v23  ;;  %v2444_v47 = vadd.f32 %v7610_v1, %v7512_v11 }
 0x202   : > { %v2618_v9 = vpop.f32.mrf.mxu0  ;;  %3442 = vmatmul.mubr.bf16.gmra.mxu1 %v8950_v38  ;;  %3575 = vmatmul.mubr.bf16.gmra.mxu0 %v2849_v3 }
 0x203   : > { %v2619_v33 = vadd.f32 %v2618_v9, %v2426_v0  ;;  %3451 = vmatprep.mubr.bf16.mxu1 %v2876_v8  ;;  %v2761_v34 = vmax.f32 %v2617_v5, 0.0  ;;  %v2473_v5 = vpop.f32.mrf.mxu1 }
 0x204   : > { %v2622_v40 = vpop.f32.mrf.mxu0 }
 0x205   : > { %v2762_v53 = vmax.f32 %v2619_v33, 0.0  ;;  %v2853_v42 = vpack.c.bf16 %v2761_v34, %v2757_v20  ;;  %v2623_v39 = vadd.f32 %v2622_v40, %v2430_v26  ;;  %v2450_v34 = vadd.f32 %v7633_v61, %v7512_v11  ;;  %v2475_v32 = vpop.f32.mrf.mxu1 }
 0x206   : > { %v2624_v48 = vpop.f32.mrf.mxu0  ;;  %v2456_v26 = vadd.f32 %v7656_v15, %v7517_v23  ;;  %v2462_v15 = vadd.f32 %v7680_v41, %v7517_v23 }
 0x207   : > { %v2854_v29 = vpack.c.bf16 %v2762_v53, %v2758_v57  ;;  %v2625_v6 = vadd.f32 %v2624_v48, %v2432_v62  ;;  %v2765_v44 = vmax.f32 %v2623_v39, 0.0  ;;  %v2454_v57 = vadd.f32 %v7650_v2, %v7512_v11  ;;  %v2479_v61 = vpop.f32.mrf.mxu1 }
 0x208   : > { %v2626_v24 = vpop.f32.mrf.mxu0  ;;  %v2460_v2 = vadd.f32 %v7673_v50, %v7512_v11 }
 0x209   : > { %v2627_v45 = vadd.f32 %v2626_v24, %v2434_v51  ;;  %3584 = vmatprep.mubr.bf16.mxu0 %v2854_v29  ;;  %v2766_v14 = vmax.f32 %v2625_v6, 0.0 }
 0x20a   : > { %v2628_v60 = vpop.f32.mrf.mxu0  ;;  %3452 = vmatmul.mubr.bf16.gmra.mxu1 %v8952_v7  ;;  %3585 = vmatmul.mubr.bf16.gmra.mxu0 %v2853_v42 }
 0x20b   : > { %v2629_v19 = vadd.f32 %v2628_v60, %v2436_v36  ;;  %3461 = vmatprep.mubr.bf16.mxu1 %v2880_v13  ;;  %v2769_v54 = vmax.f32 %v2627_v45, 0.0  ;;  %v2481_v45 = vpop.f32.mrf.mxu1  ;;  %v2464_v13 = vadd.f32 %v7690_v35, %v7512_v11  ;;  %v2466_v60 = vadd.f32 %v7694_v37, %v7517_v23 }
 0x20c   : > { %v2632_v22 = vpop.f32.mrf.mxu0  ;;  %v2470_v35 = vadd.f32 %v7710_v16, %v7512_v11  ;;  %v2472_v37 = vadd.f32 %v7714_v31, %v7517_v23 }
 0x20d   : > { %v2770_v43 = vmax.f32 %v2629_v19, 0.0  ;;  %v2857_v52 = vpack.c.bf16 %v2769_v54, %v2765_v44  ;;  %v2633_v12 = vadd.f32 %v2632_v22, %v2440_v21  ;;  %v2483_v50 = vpop.f32.mrf.mxu1 }
 0x20e   : > { %v2634_v18 = vpop.f32.mrf.mxu0 }
 0x20f   : > { %v2858_v3 = vpack.c.bf16 %v2770_v43, %v2766_v14  ;;  %v2635_v25 = vadd.f32 %v2634_v18, %v2442_v46  ;;  %v2773_v33 = vmax.f32 %v2633_v12, 0.0 }
 0x210   : > { %v2636_v8 = vpop.f32.mrf.mxu0 }
 0x211   : > { %v2637_v0 = vadd.f32 %v2636_v8, %v2444_v47  ;;  %3594 = vmatprep.mubr.bf16.mxu0 %v2858_v3  ;;  %v2774_v38 = vmax.f32 %v2635_v25, 0.0  ;;  %v2485_v47 = vpop.f32.mrf.mxu1  ;;  %v2474_v3 = vadd.f32 %v2473_v5, %v7512_v11  ;;  %v2476_v25 = vadd.f32 %v2475_v32, %v7517_v23 }
 0x212   : > { %v2638_v17 = vpop.f32.mrf.mxu0  ;;  %3462 = vmatmul.mubr.bf16.gmra.mxu1 %v7433_v10  ;;  %3595 = vmatmul.mubr.bf16.gmra.mxu0 %v2857_v52  ;;  %v2480_v5 = vadd.f32 %v2479_v61, %v7512_v11  ;;  %v2484_v32 = vadd.f32 %v2483_v50, %v7512_v11 }
 0x213   : > { %v2639_v49 = vadd.f32 %v2638_v17, %v2446_v58  ;;  %v2777_v63 = vmax.f32 %v2637_v0, 0.0 }
 0x214   : > { %v2642_v9 = vpop.f32.mrf.mxu0 }
 0x215   : > { %v2778_v1 = vmax.f32 %v2639_v49, 0.0  ;;  %v2861_v53 = vpack.c.bf16 %v2777_v63, %v2773_v33  ;;  %v2643_v55 = vadd.f32 %v2642_v9, %v2450_v34  ;;  %v2489_v63 = vpop.f32.mrf.mxu1 }
 0x216   : > { %v2644_v40 = vpop.f32.mrf.mxu0 }
 0x217   : > { %v2862_v10 = vpack.c.bf16 %v2778_v1, %v2774_v38  ;;  %v2645_v48 = vadd.f32 %v2644_v40, %v2452_v28  ;;  %v2781_v36 = vmax.f32 %v2643_v55, 0.0  ;;  %v2491_v40 = vpop.f32.mrf.mxu1  ;;  %v2482_v28 = vadd.f32 %v2481_v45, %v7517_v23 }
 0x218   : > { %v2646_v20 = vpop.f32.mrf.mxu0  ;;  %v2492_v45 = vadd.f32 %v2491_v40, %v7517_v23  ;;  %v8953_v40 = vsub.s32 1, %v8923_v27 }
 0x219   : > { %v2647_v30 = vadd.f32 %v2646_v20, %v2454_v57  ;;  %3604 = vmatprep.mubr.bf16.mxu0 %v2862_v10  ;;  %v2782_v4 = vmax.f32 %v2645_v48, 0.0  ;;  %v2486_v20 = vadd.f32 %v2485_v47, %v7517_v23  ;;  %v2493_v55 = vpop.f32.mrf.mxu1 }
 0x21a   : > { %v2648_v62 = vpop.f32.mrf.mxu0  ;;  %3605 = vmatmul.mubr.bf16.gmra.mxu0 %v2861_v53 }
 0x21b   : > { %v2649_v51 = vadd.f32 %v2648_v62, %v2456_v26  ;;  %v2785_v29 = vmax.f32 %v2647_v30, 0.0 }
 0x21c   : > { %v2652_v42 = vpop.f32.mrf.mxu0 }
 0x21d   : > { %v2786_v24 = vmax.f32 %v2649_v51, 0.0  ;;  %v2865_v59 = vpack.c.bf16 %v2785_v29, %v2781_v36  ;;  %v2653_v54 = vadd.f32 %v2652_v42, %v2460_v2  ;;  %v2490_v36 = vadd.f32 %v2489_v63, %v7512_v11  ;;  %v2495_v2 = vpop.f32.mrf.mxu1 }
 0x21e   : > { %v2654_v6 = vpop.f32.mrf.mxu0 }
 0x21f   : > { %v2866_v56 = vpack.c.bf16 %v2786_v24, %v2782_v4  ;;  %v2655_v7 = vadd.f32 %v2654_v6, %v2462_v15  ;;  %v2789_v18 = vmax.f32 %v2653_v54, 0.0  ;;  %v2494_v15 = vadd.f32 %v2493_v55, %v7512_v11 }
 0x220   : > { %v2656_v39 = vpop.f32.mrf.mxu0 }
 0x221   : > { %v2657_v19 = vadd.f32 %v2656_v39, %v2464_v13  ;;  %3614 = vmatprep.mubr.bf16.mxu0 %v2866_v56  ;;  %v2790_v41 = vmax.f32 %v2655_v7, 0.0  ;;  %v2496_v39 = vadd.f32 %v2495_v2, %v7517_v23 }
 0x222   : > { %v2658_v22 = vpop.f32.mrf.mxu0  ;;  %3615 = vmatmul.mubr.bf16.gmra.mxu0 %v2865_v59 }
 0x223   : > { %v2659_v14 = vadd.f32 %v2658_v22, %v2466_v60  ;;  %v2793_v43 = vmax.f32 %v2657_v19, 0.0 }
 0x224   : > { %v2662_v44 = vpop.f32.mrf.mxu0 }
 0x225   : > { %v2794_v21 = vmax.f32 %v2659_v14, 0.0  ;;  %v2869_v8 = vpack.c.bf16 %v2793_v43, %v2789_v18  ;;  %v2663_v17 = vadd.f32 %v2662_v44, %v2470_v35 }
 0x226   : > { %v2664_v46 = vpop.f32.mrf.mxu0 }
 0x227   : > { %v2870_v52 = vpack.c.bf16 %v2794_v21, %v2790_v41  ;;  %v2665_v0 = vadd.f32 %v2664_v46, %v2472_v37  ;;  %v2797_v31 = vmax.f32 %v2663_v17, 0.0 }
 0x228   : > { %v2666_v58 = vpop.f32.mrf.mxu0 }
 0x229   : > { %v2667_v12 = vadd.f32 %v2666_v58, %v2474_v3  ;;  %3624 = vmatprep.mubr.bf16.mxu0 %v2870_v52  ;;  %v2798_v1 = vmax.f32 %v2665_v0, 0.0 }
 0x22a   : > { %v2668_v49 = vpop.f32.mrf.mxu0  ;;  %3625 = vmatmul.mubr.bf16.gmra.mxu0 %v2869_v8 }
 0x22b   : > { %v2669_v16 = vadd.f32 %v2668_v49, %v2476_v25  ;;  %v2801_v9 = vmax.f32 %v2667_v12, 0.0 }
 0x22c   : > { %v2672_v38 = vpop.f32.mrf.mxu0 }
 0x22d   : > { %v2802_v33 = vmax.f32 %v2669_v16, 0.0  ;;  %v2873_v10 = vpack.c.bf16 %v2801_v9, %v2797_v31  ;;  %v2673_v30 = vadd.f32 %v2672_v38, %v2480_v5  ;;  %v2947_v5 = vld [vmem:[%s8843_s4] sm:$0x3] }
 0x22e   : > { %v2674_v34 = vpop.f32.mrf.mxu0 }
 0x22f   : > { %v2874_v57 = vpack.c.bf16 %v2802_v33, %v2798_v1  ;;  %v2675_v26 = vadd.f32 %v2674_v34, %v2482_v28  ;;  %v2805_v24 = vmax.f32 %v2673_v30, 0.0  ;;  %v7790_v28 = vrot.slane %v2947_v5, %v8953_v40 }
 0x230   : > { %v2676_v53 = vpop.f32.mrf.mxu0 }
 0x231   : > { %v2677_v48 = vadd.f32 %v2676_v53, %v2484_v32  ;;  %3634 = vmatprep.mubr.bf16.mxu0 %v2874_v57  ;;  %v2806_v42 = vmax.f32 %v2675_v26, 0.0  ;;  %v8954_v32 = vsub.s32 0, %v8923_v27 }
 0x232   : > { %v2678_v62 = vpop.f32.mrf.mxu0  ;;  %3635 = vmatmul.mubr.bf16.gmra.mxu0 %v2873_v10 }
 0x233   : > { %v2679_v51 = vadd.f32 %v2678_v62, %v2486_v20  ;;  %v2809_v61 = vmax.f32 %v2677_v48, 0.0  ;;  %v7794_v57 = vrot.slane %v2947_v5, %v8954_v32 }
 0x234   : > { %v2682_v29 = vpop.f32.mrf.mxu0 }
 0x235   : > { %v2810_v4 = vmax.f32 %v2679_v51, 0.0  ;;  %v2877_v56 = vpack.c.bf16 %v2809_v61, %v2805_v24  ;;  %v2683_v19 = vadd.f32 %v2682_v29, %v2490_v36 }
 0x236   : > { %v2684_v6 = vpop.f32.mrf.mxu0 }
 0x237   : > { %v2878_v13 = vpack.c.bf16 %v2810_v4, %v2806_v42  ;;  %v2685_v60 = vadd.f32 %v2684_v6, %v2492_v45  ;;  %v2813_v44 = vmax.f32 %v2683_v19, 0.0 }
 0x238   : > { %v2686_v59 = vpop.f32.mrf.mxu0 }
 0x239   : > { %v2687_v7 = vadd.f32 %v2686_v59, %v2494_v15  ;;  %3644 = vmatprep.mubr.bf16.mxu0 %v2878_v13  ;;  %v2814_v14 = vmax.f32 %v2685_v60, 0.0 }
 0x23a   : > { %v2688_v54 = vpop.f32.mrf.mxu0  ;;  %3645 = vmatmul.mubr.bf16.gmra.mxu0 %v2877_v56 }
 0x23b   : > { %v2689_v22 = vadd.f32 %v2688_v54, %v2496_v39  ;;  %v2817_v50 = vmax.f32 %v2687_v7, 0.0 }
 0x23d   : > { %v2818_v43 = vmax.f32 %v2689_v22, 0.0  ;;  %v2881_v21 = vpack.c.bf16 %v2817_v50, %v2813_v44 }
 0x23f   : > { %v2882_v41 = vpack.c.bf16 %v2818_v43, %v2814_v14 }
 0x241   : > { %3654 = vmatprep.mubr.bf16.mxu0 %v2882_v41 }
 0x242   : > { %3655 = vmatmul.mubr.bf16.gmra.mxu0 %v2881_v21 }
 0x25a   : > { %v3313_v11 = vpop.f32.mrf.mxu1 }
 0x25b   : > { %v3314_v55 = vadd.f32 %v3313_v11, %v7794_v57 }
 0x25c   : > { %v3315_v18 = vpop.f32.mrf.mxu1 }
 0x25d   : > { %v3316_v48 = vadd.f32 %v3315_v18, %v7790_v28 }
 0x25e   : > { %v3317_v35 = vpop.f32.mrf.mxu1 }
 0x25f   : > { %v3318_v30 = vadd.f32 %v3317_v35, %v7794_v57 }
 0x260   : > { %v3319_v46 = vpop.f32.mrf.mxu1 }
 0x261   : > { %v3320_v61 = vadd.f32 %v3319_v46, %v7790_v28 }
 0x262   : > { %v3323_v23 = vpop.f32.mrf.mxu1 }
 0x263   : > { %v3324_v54 = vadd.f32 %v3323_v23, %v7794_v57 }
 0x264   : > { %v3325_v47 = vpop.f32.mrf.mxu1 }
 0x265   : > { %v3326_v60 = vadd.f32 %v3325_v47, %v7790_v28 }
 0x266   : > { %v3327_v37 = vpop.f32.mrf.mxu1 }
 0x267   : > { %v3328_v7 = vadd.f32 %v3327_v37, %v7794_v57 }
 0x268   : > { %v3329_v3 = vpop.f32.mrf.mxu1 }
 0x269   : > { %v3330_v43 = vadd.f32 %v3329_v3, %v7790_v28 }
 0x26a   : > { %v7753_v52 = vpop.f32.mrf.mxu1 }
 0x26c   : > { %v7755_v8 = vpop.f32.mrf.mxu1 }
 0x26d   : > { %v3336_v3 = vadd.f32 %v7755_v8, %v7790_v28 }
 0x26e   : > { %v7757_v58 = vpop.f32.mrf.mxu1 }
 0x270   : > { %v7759_v25 = vpop.f32.mrf.mxu1 }
 0x272   : > { %v7761_v0 = vpop.f32.mrf.mxu1 }
 0x274   : > { %v7763_v12 = vpop.f32.mrf.mxu1 }
 0x276   : > { %v7765_v17 = vpop.f32.mrf.mxu1 }
 0x278   : > { %v7767_v49 = vpop.f32.mrf.mxu1 }
 0x27a   : > { %v7769_v63 = vpop.f32.mrf.mxu1 }
 0x27c   : > { %v7771_v16 = vpop.f32.mrf.mxu1 }
 0x27e   : > { %v7773_v9 = vpop.f32.mrf.mxu1 }
 0x280   : > { %v7775_v38 = vpop.f32.mrf.mxu1 }
 0x282   : > { %v7777_v1 = vpop.f32.mrf.mxu1 }
 0x284   : > { %v7779_v33 = vpop.f32.mrf.mxu1 }
 0x286   : > { %v7781_v31 = vpop.f32.mrf.mxu1 }
 0x288   : > { %v7786_v34 = vpop.f32.mrf.mxu1 }
 0x28a   : > { %v7796_v10 = vpop.f32.mrf.mxu1  ;;  %v3506_v53 = vpop.f32.mrf.mxu0 }
 0x28b   : > { %v3507_v42 = vadd.f32 %v3506_v53, %v3314_v55 }
 0x28c   : > { %v7798_v20 = vpop.f32.mrf.mxu1  ;;  %v3508_v26 = vpop.f32.mrf.mxu0 }
 0x28d   : > { %v3509_v27 = vadd.f32 %v3508_v26, %v3316_v48  ;;  %v3665_v56 = vmax.f32 %v3507_v42, 0.0  ;;  %v3338_v26 = vadd.f32 %v7757_v58, %v7794_v57 }
 0x28e   : > { %v7803_v62 = vpop.f32.mrf.mxu1  ;;  %v3510_v51 = vpop.f32.mrf.mxu0 }
 0x28f   : > { %v3511_v29 = vadd.f32 %v3510_v51, %v3318_v30  ;;  %v3666_v15 = vmax.f32 %v3509_v27, 0.0  ;;  %v3334_v30 = vadd.f32 %v7753_v52, %v7794_v57  ;;  %v3340_v27 = vadd.f32 %v7759_v25, %v7790_v28 }
 0x290   : > { %v7806_v4 = vpop.f32.mrf.mxu1  ;;  %v3512_v24 = vpop.f32.mrf.mxu0  ;;  %v3346_v25 = vadd.f32 %v7763_v12, %v7790_v28 }
 0x291   : > { %v3513_v36 = vadd.f32 %v3512_v24, %v3320_v61  ;;  %v3667_v2 = vmax.f32 %v3511_v29, 0.0 }
 0x292   : > { %v7808_v6 = vpop.f32.mrf.mxu1  ;;  %v3516_v45 = vpop.f32.mrf.mxu0 }
 0x293   : > { %v3668_v13 = vmax.f32 %v3513_v36, 0.0  ;;  %v3729_v22 = vpack.c.bf16 %v3667_v2, %v3665_v56  ;;  %v3517_v21 = vadd.f32 %v3516_v45, %v3324_v54  ;;  %v3344_v54 = vadd.f32 %v7761_v0, %v7794_v57 }
 0x294   : > { %v7810_v59 = vpop.f32.mrf.mxu1  ;;  %v3518_v39 = vpop.f32.mrf.mxu0 }
 0x295   : > { %v3730_v19 = vpack.c.bf16 %v3668_v13, %v3666_v15  ;;  %v3519_v44 = vadd.f32 %v3518_v39, %v3326_v60  ;;  %v3669_v40 = vmax.f32 %v3517_v21, 0.0 }
 0x296   : > { %v7815_v50 = vpop.f32.mrf.mxu1  ;;  %v3520_v14 = vpop.f32.mrf.mxu0 }
 0x297   : > { %v3521_v41 = vadd.f32 %v3520_v14, %v3328_v7  ;;  %3928 = vmatprep.mubr.bf16.mxu1 %v3730_v19  ;;  %v3670_v23 = vmax.f32 %v3519_v44, 0.0  ;;  %v3348_v7 = vadd.f32 %v7765_v17, %v7794_v57  ;;  %v3350_v44 = vadd.f32 %v7767_v49, %v7790_v28 }
 0x298   : > { %v7818_v11 = vpop.f32.mrf.mxu1  ;;  %v3522_v18 = vpop.f32.mrf.mxu0  ;;  %3929 = vmatmul.mubr.bf16.vlgmr.msra.gmra.mxu1 %v3729_v22  ;;  %v3356_v49 = vadd.f32 %v7771_v16, %v7790_v28 }
 0x299   : > { %v3523_v35 = vadd.f32 %v3522_v18, %v3330_v43  ;;  %v3671_v46 = vmax.f32 %v3521_v41, 0.0 }
 0x29a   : > { %v7820_v47 = vpop.f32.mrf.mxu1  ;;  %v3526_v37 = vpop.f32.mrf.mxu0 }
 0x29b   : > { %v3672_v5 = vmax.f32 %v3523_v35, 0.0  ;;  %v3731_v55 = vpack.c.bf16 %v3671_v46, %v3669_v40  ;;  %v3527_v24 = vadd.f32 %v3526_v37, %v3334_v30  ;;  %v3354_v30 = vadd.f32 %v7769_v63, %v7794_v57 }
 0x29c   : > { %v7822_v32 = vpop.f32.mrf.mxu1  ;;  %v3528_v53 = vpop.f32.mrf.mxu0 }
 0x29d   : > { %v3732_v48 = vpack.c.bf16 %v3672_v5, %v3670_v23  ;;  %v3529_v29 = vadd.f32 %v3528_v53, %v3336_v3  ;;  %v3673_v56 = vmax.f32 %v3527_v24, 0.0 }
 0x29e   : > { %v7830_v51 = vpop.f32.mrf.mxu1  ;;  %v3530_v61 = vpop.f32.mrf.mxu0 }
 0x29f   : > { %v3531_v42 = vadd.f32 %v3530_v61, %v3338_v26  ;;  %3936 = vmatprep.mubr.bf16.mxu1 %v3732_v48  ;;  %v3674_v15 = vmax.f32 %v3529_v29, 0.0  ;;  %v3358_v26 = vadd.f32 %v7773_v9, %v7794_v57 }
 0x2a0   : > { %v7834_v36 = vpop.f32.mrf.mxu1  ;;  %v3532_v8 = vpop.f32.mrf.mxu0  ;;  %3937 = vmatmul.mubr.bf16.gmra.mxu1 %v3731_v55 }
 0x2a1   : > { %v3533_v58 = vadd.f32 %v3532_v8, %v3340_v27  ;;  %v3675_v2 = vmax.f32 %v3531_v42, 0.0  ;;  %v3360_v27 = vadd.f32 %v7775_v38, %v7790_v28  ;;  %v3366_v38 = vadd.f32 %v7779_v33, %v7790_v28 }
 0x2a2   : > { %v7836_v45 = vpop.f32.mrf.mxu1  ;;  %v3536_v52 = vpop.f32.mrf.mxu0 }
 0x2a3   : > { %v3676_v13 = vmax.f32 %v3533_v58, 0.0  ;;  %v3733_v22 = vpack.c.bf16 %v3675_v2, %v3673_v56  ;;  %v3537_v18 = vadd.f32 %v3536_v52, %v3344_v54 }
 0x2a4   : > { %v7838_v39 = vpop.f32.mrf.mxu1  ;;  %v3538_v60 = vpop.f32.mrf.mxu0 }
 0x2a5   : > { %v3734_v19 = vpack.c.bf16 %v3676_v13, %v3674_v15  ;;  %v3539_v41 = vadd.f32 %v3538_v60, %v3346_v25  ;;  %v3677_v40 = vmax.f32 %v3537_v18, 0.0  ;;  %v3368_v60 = vadd.f32 %v7781_v31, %v7794_v57 }
 0x2a6   : > { %v7846_v14 = vpop.f32.mrf.mxu1  ;;  %v3540_v43 = vpop.f32.mrf.mxu0 }
 0x2a7   : > { %v3541_v21 = vadd.f32 %v3540_v43, %v3348_v7  ;;  %3944 = vmatprep.mubr.bf16.mxu1 %v3734_v19  ;;  %v3678_v23 = vmax.f32 %v3539_v41, 0.0  ;;  %v3364_v7 = vadd.f32 %v7777_v1, %v7794_v57 }
 0x2a8   : > { %v7850_v35 = vpop.f32.mrf.mxu1  ;;  %v3542_v12 = vpop.f32.mrf.mxu0  ;;  %3945 = vmatmul.mubr.bf16.gmra.mxu1 %v3733_v22  ;;  %v3370_v22 = vadd.f32 %v7786_v34, %v7790_v28  ;;  %v3376_v34 = vadd.f32 %v7798_v20, %v7790_v28 }
 0x2a9   : > { %v3543_v17 = vadd.f32 %v3542_v12, %v3350_v44  ;;  %v3679_v46 = vmax.f32 %v3541_v21, 0.0 }
 0x2aa   : > { %v7852_v37 = vpop.f32.mrf.mxu1  ;;  %v3546_v0 = vpop.f32.mrf.mxu0 }
 0x2ab   : > { %v3680_v5 = vmax.f32 %v3543_v17, 0.0  ;;  %v3735_v55 = vpack.c.bf16 %v3679_v46, %v3677_v40  ;;  %v3547_v24 = vadd.f32 %v3546_v0, %v3354_v30 }
 0x2ac   : > { %v7854_v53 = vpop.f32.mrf.mxu1  ;;  %v3548_v3 = vpop.f32.mrf.mxu0 }
 0x2ad   : > { %v3736_v48 = vpack.c.bf16 %v3680_v5, %v3678_v23  ;;  %v3549_v29 = vadd.f32 %v3548_v3, %v3356_v49  ;;  %v3681_v13 = vmax.f32 %v3547_v24, 0.0  ;;  %v3378_v5 = vadd.f32 %v7803_v62, %v7794_v57 }
 0x2ae   : > { %v3550_v61 = vpop.f32.mrf.mxu0  ;;  %v7864_v8 = vpop.f32.mrf.mxu1  ;;  %v3374_v3 = vadd.f32 %v7796_v10, %v7794_v57 }
 0x2af   : > { %v3551_v42 = vadd.f32 %v3550_v61, %v3358_v26  ;;  %3952 = vmatprep.mubr.bf16.mxu1 %v3736_v48  ;;  %v3682_v52 = vmax.f32 %v3549_v29, 0.0  ;;  %v3380_v48 = vadd.f32 %v7806_v4, %v7790_v28  ;;  %v3386_v4 = vadd.f32 %v7810_v59, %v7790_v28 }
 0x2b0   : > { %v3552_v58 = vpop.f32.mrf.mxu0  ;;  %3953 = vmatmul.mubr.bf16.gmra.mxu1 %v3735_v55  ;;  %v7866_v63 = vpop.f32.mrf.mxu1 }
 0x2b1   : > { %v3553_v16 = vadd.f32 %v3552_v58, %v3360_v27  ;;  %v3683_v2 = vmax.f32 %v3551_v42, 0.0 }
 0x2b2   : > { %v3556_v9 = vpop.f32.mrf.mxu0  ;;  %v7876_v41 = vpop.f32.mrf.mxu1 }
 0x2b3   : > { %v3684_v15 = vmax.f32 %v3553_v16, 0.0  ;;  %v3737_v19 = vpack.c.bf16 %v3683_v2, %v3681_v13  ;;  %v3557_v21 = vadd.f32 %v3556_v9, %v3364_v7  ;;  %v3388_v9 = vadd.f32 %v7815_v50, %v7794_v57 }
 0x2b4   : > { %v3558_v56 = vpop.f32.mrf.mxu0  ;;  %v7878_v1 = vpop.f32.mrf.mxu1 }
 0x2b5   : > { %v3738_v25 = vpack.c.bf16 %v3684_v15, %v3682_v52  ;;  %v3559_v43 = vadd.f32 %v3558_v56, %v3366_v38  ;;  %v3685_v0 = vmax.f32 %v3557_v21, 0.0  ;;  %v3384_v15 = vadd.f32 %v7808_v6, %v7794_v57 }
 0x2b6   : > { %v3560_v54 = vpop.f32.mrf.mxu0  ;;  %v7888_v61 = vpop.f32.mrf.mxu1  ;;  %v3390_v38 = vadd.f32 %v7818_v11, %v7790_v28  ;;  %v3396_v11 = vadd.f32 %v7822_v32, %v7790_v28 }
 0x2b7   : > { %v3561_v44 = vadd.f32 %v3560_v54, %v3368_v60  ;;  %3960 = vmatprep.mubr.bf16.mxu1 %v3738_v25  ;;  %v3686_v17 = vmax.f32 %v3559_v43, 0.0 }
 0x2b8   : > { %v3562_v18 = vpop.f32.mrf.mxu0  ;;  %3961 = vmatmul.mubr.bf16.gmra.mxu1 %v3737_v19  ;;  %v7890_v16 = vpop.f32.mrf.mxu1 }
 0x2b9   : > { %v3563_v33 = vadd.f32 %v3562_v18, %v3370_v22  ;;  %v3687_v12 = vmax.f32 %v3561_v44, 0.0 }
 0x2ba   : > { %v3566_v31 = vpop.f32.mrf.mxu0  ;;  %v7900_v7 = vpop.f32.mrf.mxu1 }
 0x2bb   : > { %v3688_v46 = vmax.f32 %v3563_v33, 0.0  ;;  %v3739_v49 = vpack.c.bf16 %v3687_v12, %v3685_v0  ;;  %v3567_v27 = vadd.f32 %v3566_v31, %v3374_v3  ;;  %v3398_v33 = vadd.f32 %v7830_v51, %v7794_v57 }
 0x2bc   : > { %v3568_v23 = vpop.f32.mrf.mxu0  ;;  %v7902_v21 = vpop.f32.mrf.mxu1  ;;  %v3394_v31 = vadd.f32 %v7820_v47, %v7794_v57  ;;  %v3400_v0 = vadd.f32 %v7834_v36, %v7790_v28  ;;  %v3406_v36 = vadd.f32 %v7838_v39, %v7790_v28 }
 0x2bd   : > { %v3740_v40 = vpack.c.bf16 %v3688_v46, %v3686_v17  ;;  %v3569_v30 = vadd.f32 %v3568_v23, %v3376_v34  ;;  %v3689_v10 = vmax.f32 %v3567_v27, 0.0  ;;  %v3408_v27 = vadd.f32 %v7846_v14, %v7794_v57 }
 0x2be   : > { %v3570_v26 = vpop.f32.mrf.mxu0 }
 0x2bf   : > { %v3571_v55 = vadd.f32 %v3570_v26, %v3378_v5  ;;  %3968 = vmatprep.mubr.bf16.mxu1 %v3740_v40  ;;  %v3690_v24 = vmax.f32 %v3569_v30, 0.0  ;;  %v7912_v5 = vpop.f32.mrf.mxu1 }
 0x2c0   : > { %v3572_v29 = vpop.f32.mrf.mxu0  ;;  %3969 = vmatmul.mubr.bf16.gmra.mxu1 %v3739_v49 }
 0x2c1   : > { %v3573_v20 = vadd.f32 %v3572_v29, %v3380_v48  ;;  %v3691_v42 = vmax.f32 %v3571_v55, 0.0  ;;  %v7914_v30 = vpop.f32.mrf.mxu1 }
 0x2c2   : > { %v3576_v62 = vpop.f32.mrf.mxu0 }
 0x2c3   : > { %v3692_v58 = vmax.f32 %v3573_v20, 0.0  ;;  %v3741_v13 = vpack.c.bf16 %v3691_v42, %v3689_v10  ;;  %v3577_v19 = vadd.f32 %v3576_v62, %v3384_v15  ;;  %v3404_v20 = vadd.f32 %v7836_v45, %v7794_v57 }
 0x2c4   : > { %v3578_v2 = vpop.f32.mrf.mxu0 }
 0x2c5   : > { %v3742_v52 = vpack.c.bf16 %v3692_v58, %v3690_v24  ;;  %v3579_v60 = vadd.f32 %v3578_v2, %v3386_v4  ;;  %v3693_v6 = vmax.f32 %v3577_v19, 0.0  ;;  %v3410_v24 = vadd.f32 %v7850_v35, %v7790_v28  ;;  %v7924_v2 = vpop.f32.mrf.mxu1 }
 0x2c6   : > { %v3580_v56 = vpop.f32.mrf.mxu0  ;;  %v3416_v35 = vadd.f32 %v7854_v53, %v7790_v28  ;;  %v3414_v19 = vadd.f32 %v7852_v37, %v7794_v57 }
 0x2c7   : > { %v3581_v25 = vadd.f32 %v3580_v56, %v3388_v9  ;;  %3976 = vmatprep.mubr.bf16.mxu1 %v3742_v52  ;;  %v3694_v43 = vmax.f32 %v3579_v60, 0.0  ;;  %v7926_v56 = vpop.f32.mrf.mxu1  ;;  %v3418_v60 = vadd.f32 %v7864_v8, %v7794_v57 }
 0x2c8   : > { %v3582_v54 = vpop.f32.mrf.mxu0  ;;  %3977 = vmatmul.mubr.bf16.gmra.mxu1 %v3741_v13 }
 0x2c9   : > { %v3583_v59 = vadd.f32 %v3582_v54, %v3390_v38  ;;  %v3695_v22 = vmax.f32 %v3581_v25, 0.0 }
 0x2ca   : > { %v3586_v50 = vpop.f32.mrf.mxu0 }
 0x2cb   : > { %v3696_v44 = vmax.f32 %v3583_v59, 0.0  ;;  %v3743_v17 = vpack.c.bf16 %v3695_v22, %v3693_v6  ;;  %v3587_v40 = vadd.f32 %v3586_v50, %v3394_v31  ;;  %v3420_v22 = vadd.f32 %v7866_v63, %v7790_v28 }
 0x2cc   : > { %v3588_v18 = vpop.f32.mrf.mxu0  ;;  %v3428_v63 = vadd.f32 %v7888_v61, %v7794_v57 }
 0x2cd   : > { %v3744_v12 = vpack.c.bf16 %v3696_v44, %v3694_v43  ;;  %v3589_v23 = vadd.f32 %v3588_v18, %v3396_v11  ;;  %v3697_v47 = vmax.f32 %v3587_v40, 0.0  ;;  %v3447_v44 = vpop.f32.mrf.mxu1 }
 0x2ce   : > { %v3590_v46 = vpop.f32.mrf.mxu0 }
 0x2cf   : > { %v3591_v34 = vadd.f32 %v3590_v46, %v3398_v33  ;;  %3984 = vmatprep.mubr.bf16.mxu1 %v3744_v12  ;;  %v3698_v26 = vmax.f32 %v3589_v23, 0.0  ;;  %v3449_v31 = vpop.f32.mrf.mxu1  ;;  %v3426_v46 = vadd.f32 %v7878_v1, %v7790_v28  ;;  %v3424_v23 = vadd.f32 %v7876_v41, %v7794_v57 }
 0x2d0   : > { %v3592_v3 = vpop.f32.mrf.mxu0  ;;  %3985 = vmatmul.mubr.bf16.gmra.mxu1 %v3743_v17 }
 0x2d1   : > { %v3593_v32 = vadd.f32 %v3592_v3, %v3400_v0  ;;  %v3699_v49 = vmax.f32 %v3591_v34, 0.0  ;;  %v3430_v3 = vadd.f32 %v7890_v16, %v7790_v28  ;;  %v3438_v16 = vadd.f32 %v7912_v5, %v7794_v57 }
 0x2d2   : > { %v3596_v51 = vpop.f32.mrf.mxu0 }
 0x2d3   : > { %v3700_v48 = vmax.f32 %v3593_v32, 0.0  ;;  %v3745_v42 = vpack.c.bf16 %v3699_v49, %v3697_v47  ;;  %v3597_v4 = vadd.f32 %v3596_v51, %v3404_v20  ;;  %v3453_v51 = vpop.f32.mrf.mxu1  ;;  %v3436_v20 = vadd.f32 %v7902_v21, %v7790_v28 }
 0x2d4   : > { %v3598_v55 = vpop.f32.mrf.mxu0 }
 0x2d5   : > { %v3746_v29 = vpack.c.bf16 %v3700_v48, %v3698_v26  ;;  %v3599_v58 = vadd.f32 %v3598_v55, %v3406_v36  ;;  %v3701_v45 = vmax.f32 %v3597_v4, 0.0 }
 0x2d6   : > { %v3600_v62 = vpop.f32.mrf.mxu0 }
 0x2d7   : > { %v3601_v10 = vadd.f32 %v3600_v62, %v3408_v27  ;;  %3992 = vmatprep.mubr.bf16.mxu1 %v3746_v29  ;;  %v3702_v15 = vmax.f32 %v3599_v58, 0.0  ;;  %v3455_v27 = vpop.f32.mrf.mxu1  ;;  %v3434_v62 = vadd.f32 %v7900_v7, %v7794_v57 }
 0x2d8   : > { %v3602_v9 = vpop.f32.mrf.mxu0  ;;  %3993 = vmatmul.mubr.bf16.gmra.mxu1 %v3745_v42 }
 0x2d9   : > { %v3603_v39 = vadd.f32 %v3602_v9, %v3410_v24  ;;  %v3703_v52 = vmax.f32 %v3601_v10, 0.0  ;;  %v3440_v10 = vadd.f32 %v7914_v30, %v7790_v28  ;;  %v3448_v30 = vadd.f32 %v3447_v44, %v7794_v57 }
 0x2da   : > { %v3606_v14 = vpop.f32.mrf.mxu0 }
 0x2db   : > { %v3704_v13 = vmax.f32 %v3603_v39, 0.0  ;;  %v3747_v54 = vpack.c.bf16 %v3703_v52, %v3701_v45  ;;  %v3607_v6 = vadd.f32 %v3606_v14, %v3414_v19  ;;  %v3457_v39 = vpop.f32.mrf.mxu1  ;;  %v3444_v19 = vadd.f32 %v7924_v2, %v7794_v57 }
 0x2dc   : > { %v3608_v38 = vpop.f32.mrf.mxu0  ;;  %v3456_v2 = vadd.f32 %v3455_v27, %v7790_v28 }
 0x2dd   : > { %v3748_v25 = vpack.c.bf16 %v3704_v13, %v3702_v15  ;;  %v3609_v50 = vadd.f32 %v3608_v38, %v3416_v35  ;;  %v3705_v17 = vmax.f32 %v3607_v6, 0.0  ;;  %v3459_v38 = vpop.f32.mrf.mxu1 }
 0x2de   : > { %v3610_v59 = vpop.f32.mrf.mxu0 }
 0x2df   : > { %v3611_v43 = vadd.f32 %v3610_v59, %v3418_v60  ;;  %4000 = vmatprep.mubr.bf16.mxu1 %v3748_v25  ;;  %v3706_v8 = vmax.f32 %v3609_v50, 0.0  ;;  %v3446_v60 = vadd.f32 %v7926_v56, %v7790_v28  ;;  %v3463_v6 = vpop.f32.mrf.mxu1 }
 0x2e0   : > { %v3612_v18 = vpop.f32.mrf.mxu0  ;;  %4001 = vmatmul.mubr.bf16.gmra.mxu1 %v3747_v54 }
 0x2e1   : > { %v3613_v53 = vadd.f32 %v3612_v18, %v3420_v22  ;;  %v3707_v11 = vmax.f32 %v3611_v43, 0.0  ;;  %v3450_v22 = vadd.f32 %v3449_v31, %v7790_v28 }
 0x2e2   : > { %v3616_v33 = vpop.f32.mrf.mxu0 }
 0x2e3   : > { %v3708_v12 = vmax.f32 %v3613_v53, 0.0  ;;  %v3749_v34 = vpack.c.bf16 %v3707_v11, %v3705_v17  ;;  %v3617_v26 = vadd.f32 %v3616_v33, %v3424_v23 }
 0x2e4   : > { %v3618_v37 = vpop.f32.mrf.mxu0 }
 0x2e5   : > { %v3750_v0 = vpack.c.bf16 %v3708_v12, %v3706_v8  ;;  %v3619_v32 = vadd.f32 %v3618_v37, %v3426_v46  ;;  %v3709_v29 = vmax.f32 %v3617_v26, 0.0  ;;  %v3465_v12 = vpop.f32.mrf.mxu1  ;;  %v3458_v46 = vadd.f32 %v3457_v39, %v7794_v57 }
 0x2e6   : > { %v3620_v40 = vpop.f32.mrf.mxu0 }
 0x2e7   : > { %v3621_v49 = vadd.f32 %v3620_v40, %v3428_v63  ;;  %4008 = vmatprep.mubr.bf16.mxu1 %v3750_v0  ;;  %v3710_v61 = vmax.f32 %v3619_v32, 0.0  ;;  %v3454_v63 = vadd.f32 %v3453_v51, %v7794_v57  ;;  %v3467_v32 = vpop.f32.mrf.mxu1  ;;  %v3466_v51 = vadd.f32 %v3465_v12, %v7790_v28 }
 0x2e8   : > { %v3622_v48 = vpop.f32.mrf.mxu0  ;;  %4009 = vmatmul.mubr.bf16.gmra.mxu1 %v3749_v34  ;;  %v3460_v34 = vadd.f32 %v3459_v38, %v7790_v28 }
 0x2e9   : > { %v3623_v1 = vadd.f32 %v3622_v48, %v3430_v3  ;;  %v3711_v47 = vmax.f32 %v3621_v49, 0.0 }
 0x2ea   : > { %v3626_v55 = vpop.f32.mrf.mxu0 }
 0x2eb   : > { %v3712_v36 = vmax.f32 %v3623_v1, 0.0  ;;  %v3751_v24 = vpack.c.bf16 %v3711_v47, %v3709_v29  ;;  %v3627_v52 = vadd.f32 %v3626_v55, %v3434_v62 }
 0x2ec   : > { %v3628_v41 = vpop.f32.mrf.mxu0 }
 0x2ed   : > { %v3752_v42 = vpack.c.bf16 %v3712_v36, %v3710_v61  ;;  %v3629_v4 = vadd.f32 %v3628_v41, %v3436_v20  ;;  %v3713_v35 = vmax.f32 %v3627_v52, 0.0  ;;  %v3469_v36 = vpop.f32.mrf.mxu1  ;;  %v3468_v41 = vadd.f32 %v3467_v32, %v7794_v57  ;;  %v4062_v32 = vld [vmem:[%s7973_s15 + $0x28] sm:$0xff] }
 0x2ee   : > { %v3630_v58 = vpop.f32.mrf.mxu0  ;;  %vm4094_vm7 = vcmp.eq.s32.totalorder %v4062_v32, 0 }
 0x2ef   : > { %v3631_v9 = vadd.f32 %v3630_v58, %v3438_v16  ;;  %4016 = vmatprep.mubr.bf16.mxu1 %v3752_v42  ;;  %v3714_v5 = vmax.f32 %v3629_v4, 0.0  ;;  %v3464_v16 = vadd.f32 %v3463_v6, %v7794_v57  ;;  %v4057_v57 = vld [vmem:[%s7973_s15] sm:$0xff] }
 0x2f0   : > { %v3632_v14 = vpop.f32.mrf.mxu0  ;;  %4017 = vmatmul.mubr.bf16.gmra.mxu1 %v3751_v24  ;;  %v3470_v24 = vadd.f32 %v3469_v36, %v7790_v28  ;;  %vm4089_vm1 = vcmp.eq.s32.totalorder %v4057_v57, 0 }
 0x2f1   : > { %v3633_v21 = vadd.f32 %v3632_v14, %v3440_v10  ;;  %v3715_v15 = vmax.f32 %v3631_v9, 0.0 }
 0x2f2   : > { %v3636_v13 = vpop.f32.mrf.mxu0 }
 0x2f3   : > { %v3716_v45 = vmax.f32 %v3633_v21, 0.0  ;;  %v3753_v54 = vpack.c.bf16 %v3715_v15, %v3713_v35  ;;  %v3637_v18 = vadd.f32 %v3636_v13, %v3444_v19 }
 0x2f4   : > { %v3638_v7 = vpop.f32.mrf.mxu0 }
 0x2f5   : > { %v3754_v25 = vpack.c.bf16 %v3716_v45, %v3714_v5  ;;  %v3639_v50 = vadd.f32 %v3638_v7, %v3446_v60  ;;  %v3717_v17 = vmax.f32 %v3637_v18, 0.0  ;;  %v7979_v45 = vld [vmem:[%s8845_s6] ss:$0 sm:$0xff] }
 0x2f6   : > { %v3640_v59 = vpop.f32.mrf.mxu0 }
 0x2f7   : > { %v3641_v43 = vadd.f32 %v3640_v59, %v3448_v30  ;;  %4024 = vmatprep.mubr.bf16.mxu1 %v3754_v25  ;;  %v3718_v8 = vmax.f32 %v3639_v50, 0.0  ;;  %v4058_v30 = vld [vmem:[%s7973_s15 + $0x8] sm:$0xff] }
 0x2f8   : > { %v3642_v53 = vpop.f32.mrf.mxu0  ;;  %4025 = vmatmul.mubr.bf16.gmra.mxu1 %v3753_v54  ;;  %vm4090_vm3 = vcmp.eq.s32.totalorder %v4058_v30, 0  ;;  %v4067_v30 = vld [vmem:[%s7973_s15 + $0x50] sm:$0xff] }
 0x2f9   : > { %v3643_v11 = vadd.f32 %v3642_v53, %v3450_v22  ;;  %v3719_v33 = vmax.f32 %v3641_v43, 0.0  ;;  %v4059_v43 = vld [vmem:[%s7973_s15 + $0x10] sm:$0xff]  ;;  %vm4099_vm12 = vcmp.eq.s32.totalorder %v4067_v30, 0 }
 0x2fa   : > { %v3646_v56 = vpop.f32.mrf.mxu0  ;;  %vm4091_vm4 = vcmp.eq.s32.totalorder %v4059_v43, 0 }
 0x2fb   : > { %v3720_v44 = vmax.f32 %v3643_v11, 0.0  ;;  %v3755_v0 = vpack.c.bf16 %v3719_v33, %v3717_v17  ;;  %v3647_v49 = vadd.f32 %v3646_v56, %v3454_v63 }
 0x2fc   : > { %v3648_v37 = vpop.f32.mrf.mxu0 }
 0x2fd   : > { %v3756_v31 = vpack.c.bf16 %v3720_v44, %v3718_v8  ;;  %v3649_v40 = vadd.f32 %v3648_v37, %v3456_v2  ;;  %v3721_v27 = vmax.f32 %v3647_v49, 0.0  ;;  %v4060_v8 = vld [vmem:[%s7973_s15 + $0x18] sm:$0xff] }
 0x2fe   : > { %v3650_v23 = vpop.f32.mrf.mxu0  ;;  %vm4092_vm5 = vcmp.eq.s32.totalorder %v4060_v8, 0 }
 0x2ff   : > { %v3651_v3 = vadd.f32 %v3650_v23, %v3458_v46  ;;  %4032 = vmatprep.mubr.bf16.mxu1 %v3756_v31  ;;  %v3722_v55 = vmax.f32 %v3649_v40, 0.0  ;;  %v4061_v31 = vld [vmem:[%s7973_s15 + $0x20] sm:$0xff] }
 0x300   : > { %v3652_v26 = vpop.f32.mrf.mxu0  ;;  %4033 = vmatmul.mubr.bf16.gmra.mxu1 %v3755_v0  ;;  %vm4093_vm6 = vcmp.eq.s32.totalorder %v4061_v31, 0 }
 0x301   : > { %v3653_v48 = vadd.f32 %v3652_v26, %v3460_v34  ;;  %v3723_v1 = vmax.f32 %v3651_v3, 0.0 }
 0x302   : > { %v3656_v47 = vpop.f32.mrf.mxu0 }
 0x303   : > { %v3724_v61 = vmax.f32 %v3653_v48, 0.0  ;;  %v3757_v42 = vpack.c.bf16 %v3723_v1, %v3721_v27  ;;  %v3657_v4 = vadd.f32 %v3656_v47, %v3464_v16  ;;  %v4064_v16 = vld [vmem:[%s7973_s15 + $0x38] sm:$0xff] }
 0x304   : > { %v3658_v29 = vpop.f32.mrf.mxu0  ;;  %vm4096_vm9 = vcmp.eq.s32.totalorder %v4064_v16, 0 }
 0x305   : > { %v3758_v20 = vpack.c.bf16 %v3724_v61, %v3722_v55  ;;  %v3659_v58 = vadd.f32 %v3658_v29, %v3466_v51  ;;  %v3725_v15 = vmax.f32 %v3657_v4, 0.0  ;;  %v4063_v61 = vld [vmem:[%s7973_s15 + $0x30] sm:$0xff] }
 0x306   : > { %v3660_v62 = vpop.f32.mrf.mxu0  ;;  %vm4095_vm8 = vcmp.eq.s32.totalorder %v4063_v61, 0 }
 0x307   : > { %v3661_v10 = vadd.f32 %v3660_v62, %v3468_v41  ;;  %4040 = vmatprep.mubr.bf16.mxu1 %v3758_v20  ;;  %v3726_v14 = vmax.f32 %v3659_v58, 0.0 }
 0x308   : > { %v3662_v9 = vpop.f32.mrf.mxu0  ;;  %4041 = vmatmul.mubr.bf16.gmra.mxu1 %v3757_v42 }
 0x309   : > { %v3663_v39 = vadd.f32 %v3662_v9, %v3470_v24  ;;  %v3727_v52 = vmax.f32 %v3661_v10, 0.0  ;;  %v4065_v9 = vld [vmem:[%s7973_s15 + $0x40] sm:$0xff] }
 0x30a   : > { %vm4097_vm10 = vcmp.eq.s32.totalorder %v4065_v9, 0  ;;  %v4073_v9 = vld [vmem:[%s7973_s15 + $0x80] sm:$0xff] }
 0x30b   : > { %v3728_v21 = vmax.f32 %v3663_v39, 0.0  ;;  %v3759_v5 = vpack.c.bf16 %v3727_v52, %v3725_v15 }
 0x30d   : > { %v3760_v13 = vpack.c.bf16 %v3728_v21, %v3726_v14 }
 0x30f   : > { %4048 = vmatprep.mubr.bf16.mxu1 %v3760_v13 }
 0x310   : > { %4049 = vmatmul.mubr.bf16.gmra.mxu1 %v3759_v5  ;;  %v4066_v5 = vld [vmem:[%s7973_s15 + $0x48] sm:$0xff] }
 0x311   : > { %vm4098_vm11 = vcmp.eq.s32.totalorder %v4066_v5, 0 }
 0x358   : > { %v5449_v28 = vpop.f32.mrf.mxu1 }
 0x35a   : > { %v5450_v38 = vpop.f32.mrf.mxu1 }
 0x35b   : > { %v5451_v35 = vadd.f32 %v5450_v38, %v5449_v28 }
 0x35c   : > { %v5452_v7 = vpop.f32.mrf.mxu1 }
 0x35d   : > { %v3931_v60 = vadd.f32 %v5451_v35, %v7979_v45 }
 0x35e   : > { %v5453_v25 = vpop.f32.mrf.mxu1 }
 0x35f   : > { %v5454_v19 = vadd.f32 %v5453_v25, %v5452_v7  ;;  %v7989_v54 = vsel %vm4089_vm1, -1e+09, %v3931_v60 }
 0x360   : > { %v5455_v59 = vpop.f32.mrf.mxu1  ;;  %v4186_v22 = vsel %vm4153_vm2, %v7989_v54, -inf  ;;  %4154 = vst.msk [vmem:[%s7986_s19] sm:$0xff] %vm4153_vm2, %v7989_v54 }
 0x361   : > { %v3934_v50 = vadd.f32 %v5454_v19, %v7979_v45  ;;  %4187 = vmax.xlane.f32.xlu0 %v4186_v22 }
 0x362   : > { %v5456_v6 = vpop.f32.mrf.mxu1 }
 0x363   : > { %v5457_v18 = vadd.f32 %v5456_v6, %v5455_v59  ;;  %v7998_v53 = vsel %vm4090_vm3, -1e+09, %v3934_v50  ;;  %v4068_v6 = vld [vmem:[%s7973_s15 + $0x58] sm:$0xff]  ;;  %vm4105_vm3 = vcmp.eq.s32.totalorder %v4073_v9, 0 }
 0x364   : > { %v5458_v11 = vpop.f32.mrf.mxu1  ;;  %4155 = vst.msk [vmem:[%s7986_s19 + $0x8] sm:$0xff] %vm4153_vm2, %v7998_v53  ;;  %v4189_v33 = vsel %vm4153_vm2, %v7998_v53, -inf  ;;  %vm4100_vm13 = vcmp.eq.s32.totalorder %v4068_v6, 0 }
 0x365   : > { %v3939_v56 = vadd.f32 %v5457_v18, %v7979_v45  ;;  %4190 = vmax.xlane.f32.xlu0 %v4189_v33 }
 0x366   : > { %v5459_v44 = vpop.f32.mrf.mxu1 }
 0x367   : > { %v5460_v12 = vadd.f32 %v5459_v44, %v5458_v11  ;;  %v8007_v17 = vsel %vm4091_vm4, -1e+09, %v3939_v56 }
 0x368   : > { %v5461_v37 = vpop.f32.mrf.mxu1  ;;  %v4192_v2 = vsel %vm4153_vm2, %v8007_v17, -inf  ;;  %4156 = vst.msk [vmem:[%s7986_s19 + $0x10] sm:$0xff] %vm4153_vm2, %v8007_v17 }
 0x369   : > { %v3942_v46 = vadd.f32 %v5460_v12, %v7979_v45  ;;  %4193 = vmax.xlane.f32.xlu1 %v4192_v2  ;;  %v4069_v12 = vld [vmem:[%s7973_s15 + $0x60] sm:$0xff] }
 0x36a   : > { %v5462_v63 = vpop.f32.mrf.mxu1  ;;  %vm4101_vm14 = vcmp.eq.s32.totalorder %v4069_v12, 0 }
 0x36b   : > { %v5463_v0 = vadd.f32 %v5462_v63, %v5461_v37  ;;  %v8016_v23 = vsel %vm4092_vm5, -1e+09, %v3942_v46 }
 0x36c   : > { %v5464_v34 = vpop.f32.mrf.mxu1  ;;  %4157 = vst.msk [vmem:[%s7986_s19 + $0x18] sm:$0xff] %vm4153_vm2, %v8016_v23  ;;  %v4195_v40 = vsel %vm4153_vm2, %v8016_v23, -inf }
 0x36d   : > { %v3947_v3 = vadd.f32 %v5463_v0, %v7979_v45  ;;  %4196 = vmax.xlane.f32.xlu1 %v4195_v40 }
 0x36e   : > { %v5465_v49 = vpop.f32.mrf.mxu1 }
 0x36f   : > { %v5466_v26 = vadd.f32 %v5465_v49, %v5464_v34  ;;  %v8025_v48 = vsel %vm4093_vm6, -1e+09, %v3947_v3  ;;  %v4070_v34 = vld [vmem:[%s7973_s15 + $0x68] sm:$0xff] }
 0x370   : > { %v5467_v1 = vpop.f32.mrf.mxu1  ;;  %4158 = vst.msk [vmem:[%s7986_s19 + $0x20] sm:$0xff] %vm4153_vm2, %v8025_v48  ;;  %v4198_v47 = vsel %vm4153_vm2, %v8025_v48, -inf  ;;  %vm4102_vm15 = vcmp.eq.s32.totalorder %v4070_v34, 0 }
 0x371   : > { %v3950_v55 = vadd.f32 %v5466_v26, %v7979_v45  ;;  %4199 = vmax.xlane.f32.xlu0 %v4198_v47  ;;  %v4071_v47 = vld [vmem:[%s7973_s15 + $0x70] sm:$0xff] }
 0x372   : > { %v5468_v36 = vpop.f32.mrf.mxu1  ;;  %vm4103_vm0 = vcmp.eq.s32.totalorder %v4071_v47, 0 }
 0x373   : > { %v5469_v27 = vadd.f32 %v5468_v36, %v5467_v1  ;;  %v8034_v29 = vsel %vm4094_vm7, -1e+09, %v3950_v55 }
 0x374   : > { %v5470_v51 = vpop.f32.mrf.mxu1  ;;  %4159 = vst.msk [vmem:[%s7986_s19 + $0x28] sm:$0xff] %vm4153_vm2, %v8034_v29  ;;  %v4201_v41 = vsel %vm4153_vm2, %v8034_v29, -inf }
 0x375   : > { %v3955_v20 = vadd.f32 %v5469_v27, %v7979_v45  ;;  %4202 = vmax.xlane.f32.xlu1 %v4201_v41 }
 0x376   : > { %v5471_v42 = vpop.f32.mrf.mxu1 }
 0x377   : > { %v5472_v62 = vadd.f32 %v5471_v42, %v5470_v51  ;;  %v8043_v24 = vsel %vm4095_vm8, -1e+09, %v3955_v20  ;;  %v4072_v20 = vld [vmem:[%s7973_s15 + $0x78] sm:$0xff] }
 0x378   : > { %v5473_v58 = vpop.f32.mrf.mxu1  ;;  %4160 = vst.msk [vmem:[%s7986_s19 + $0x30] sm:$0xff] %vm4153_vm2, %v8043_v24  ;;  %v4204_v10 = vsel %vm4153_vm2, %v8043_v24, -inf  ;;  %vm4104_vm1 = vcmp.eq.s32.totalorder %v4072_v20, 0  ;;  %v4079_v20 = vld [vmem:[%s7973_s15 + $0xb0] sm:$0xff] }
 0x379   : > { %v3958_v4 = vadd.f32 %v5472_v62, %v7979_v45  ;;  %4205 = vmax.xlane.f32.xlu0 %v4204_v10 }
 0x37a   : > { %v5474_v39 = vpop.f32.mrf.mxu1 }
 0x37b   : > { %v5475_v52 = vadd.f32 %v5474_v39, %v5473_v58  ;;  %v8052_v14 = vsel %vm4096_vm9, -1e+09, %v3958_v4  ;;  %vm4111_vm9 = vcmp.eq.s32.totalorder %v4079_v20, 0  ;;  %v4085_v20 = vld [vmem:[%s7973_s15 + $0xe0] sm:$0xff] }
 0x37c   : > { %v5476_v21 = vpop.f32.mrf.mxu1  ;;  %4161 = vst.msk [vmem:[%s7986_s19 + $0x38] sm:$0xff] %vm4153_vm2, %v8052_v14  ;;  %v4207_v15 = vsel %vm4153_vm2, %v8052_v14, -inf }
 0x37d   : > { %v3963_v13 = vadd.f32 %v5475_v52, %v7979_v45  ;;  %4208 = vmax.xlane.f32.xlu1 %v4207_v15 }
 0x37e   : > { %v5477_v28 = vpop.f32.mrf.mxu1 }
 0x37f   : > { %v5478_v57 = vadd.f32 %v5477_v28, %v5476_v21  ;;  %v8061_v38 = vsel %vm4097_vm10, -1e+09, %v3963_v13  ;;  %v4074_v28 = vld [vmem:[%s7973_s15 + $0x88] sm:$0xff] }
 0x380   : > { %v5479_v35 = vpop.f32.mrf.mxu1  ;;  %4162 = vst.msk [vmem:[%s7986_s19 + $0x40] sm:$0xff] %vm4153_vm2, %v8061_v38  ;;  %v4210_v7 = vsel %vm4153_vm2, %v8061_v38, -inf  ;;  %vm4106_vm4 = vcmp.eq.s32.totalorder %v4074_v28, 0 }
 0x381   : > { %v3966_v60 = vadd.f32 %v5478_v57, %v7979_v45  ;;  %4211 = vmax.xlane.f32.xlu0 %v4210_v7 }
 0x382   : > { %v5480_v25 = vpop.f32.mrf.mxu1 }
 0x383   : > { %v5481_v19 = vadd.f32 %v5480_v25, %v5479_v35  ;;  %v8070_v59 = vsel %vm4098_vm11, -1e+09, %v3966_v60 }
 0x384   : > { %v5482_v22 = vpop.f32.mrf.mxu1  ;;  %4163 = vst.msk [vmem:[%s7986_s19 + $0x48] sm:$0xff] %vm4153_vm2, %v8070_v59  ;;  %v4213_v50 = vsel %vm4153_vm2, %v8070_v59, -inf }
 0x385   : > { %v3971_v43 = vadd.f32 %v5481_v19, %v7979_v45  ;;  %4214 = vmax.xlane.f32.xlu1 %v4213_v50  ;;  %v4075_v19 = vld [vmem:[%s7973_s15 + $0x90] sm:$0xff] }
 0x386   : > { %v5483_v18 = vpop.f32.mrf.mxu1  ;;  %vm4107_vm5 = vcmp.eq.s32.totalorder %v4075_v19, 0 }
 0x387   : > { %v5484_v11 = vadd.f32 %v5483_v18, %v5482_v22  ;;  %v8079_v33 = vsel %vm4099_vm12, -1e+09, %v3971_v43 }
 0x388   : > { %v5485_v56 = vpop.f32.mrf.mxu1  ;;  %4164 = vst.msk [vmem:[%s7986_s19 + $0x50] sm:$0xff] %vm4153_vm2, %v8079_v33  ;;  %v4216_v8 = vsel %vm4153_vm2, %v8079_v33, -inf }
 0x389   : > { %v3974_v44 = vadd.f32 %v5484_v11, %v7979_v45  ;;  %4217 = vmax.xlane.f32.xlu0 %v4216_v8 }
 0x38a   : > { %v5486_v37 = vpop.f32.mrf.mxu1 }
 0x38b   : > { %v5487_v2 = vadd.f32 %v5486_v37, %v5485_v56  ;;  %v8088_v46 = vsel %vm4100_vm13, -1e+09, %v3974_v44  ;;  %v4076_v56 = vld [vmem:[%s7973_s15 + $0x98] sm:$0xff] }
 0x38c   : > { %v5488_v31 = vpop.f32.mrf.mxu1  ;;  %4165 = vst.msk [vmem:[%s7986_s19 + $0x58] sm:$0xff] %vm4153_vm2, %v8088_v46  ;;  %v4219_v63 = vsel %vm4153_vm2, %v8088_v46, -inf  ;;  %vm4108_vm6 = vcmp.eq.s32.totalorder %v4076_v56, 0 }
 0x38d   : > { %v3979_v0 = vadd.f32 %v5487_v2, %v7979_v45  ;;  %4220 = vmax.xlane.f32.xlu1 %v4219_v63  ;;  %v4077_v63 = vld [vmem:[%s7973_s15 + $0xa0] sm:$0xff] }
 0x38e   : > { %v5489_v40 = vpop.f32.mrf.mxu1  ;;  %vm4109_vm7 = vcmp.eq.s32.totalorder %v4077_v63, 0 }
 0x38f   : > { %v5490_v3 = vadd.f32 %v5489_v40, %v5488_v31  ;;  %v8097_v32 = vsel %vm4101_vm14, -1e+09, %v3979_v0 }
 0x390   : > { %v5491_v49 = vpop.f32.mrf.mxu1  ;;  %4166 = vst.msk [vmem:[%s7986_s19 + $0x60] sm:$0xff] %vm4153_vm2, %v8097_v32  ;;  %v4222_v26 = vsel %vm4153_vm2, %v8097_v32, -inf }
 0x391   : > { %v3982_v1 = vadd.f32 %v5490_v3, %v7979_v45  ;;  %4223 = vmax.xlane.f32.xlu0 %v4222_v26 }
 0x392   : > { %v5492_v55 = vpop.f32.mrf.mxu1 }
 0x393   : > { %v5493_v61 = vadd.f32 %v5492_v55, %v5491_v49  ;;  %v8106_v36 = vsel %vm4102_vm15, -1e+09, %v3982_v1  ;;  %v4078_v1 = vld [vmem:[%s7973_s15 + $0xa8] sm:$0xff]  ;;  %vm4117_vm15 = vcmp.eq.s32.totalorder %v4085_v20, 0 }
 0x394   : > { %v5494_v27 = vpop.f32.mrf.mxu1  ;;  %4167 = vst.msk [vmem:[%s7986_s19 + $0x68] sm:$0xff] %vm4153_vm2, %v8106_v36  ;;  %v4225_v51 = vsel %vm4153_vm2, %v8106_v36, -inf  ;;  %vm4110_vm8 = vcmp.eq.s32.totalorder %v4078_v1, 0 }
 0x395   : > { %v3987_v41 = vadd.f32 %v5493_v61, %v7979_v45  ;;  %4226 = vmax.xlane.f32.xlu1 %v4225_v51 }
 0x396   : > { %v5495_v16 = vpop.f32.mrf.mxu1 }
 0x397   : > { %v5496_v42 = vadd.f32 %v5495_v16, %v5494_v27  ;;  %v8115_v62 = vsel %vm4103_vm0, -1e+09, %v3987_v41 }
 0x398   : > { %v5497_v58 = vpop.f32.mrf.mxu1  ;;  %4168 = vst.msk [vmem:[%s7986_s19 + $0x70] sm:$0xff] %vm4153_vm2, %v8115_v62  ;;  %v4228_v10 = vsel %vm4153_vm2, %v8115_v62, -inf }
 0x399   : > { %v3990_v4 = vadd.f32 %v5496_v42, %v7979_v45  ;;  %4229 = vmax.xlane.f32.xlu0 %v4228_v10 }
 0x39a   : > { %v5498_v39 = vpop.f32.mrf.mxu1 }
 0x39b   : > { %v5499_v52 = vadd.f32 %v5498_v39, %v5497_v58  ;;  %v8124_v21 = vsel %vm4104_vm1, -1e+09, %v3990_v4  ;;  %v4080_v39 = vld [vmem:[%s7973_s15 + $0xb8] sm:$0xff] }
 0x39c   : > { %v5500_v15 = vpop.f32.mrf.mxu1  ;;  %4169 = vst.msk [vmem:[%s7986_s19 + $0x78] sm:$0xff] %vm4153_vm2, %v8124_v21  ;;  %v4231_v13 = vsel %vm4153_vm2, %v8124_v21, -inf  ;;  %vm4112_vm10 = vcmp.eq.s32.totalorder %v4080_v39, 0 }
 0x39d   : > { %v3995_v5 = vadd.f32 %v5499_v52, %v7979_v45  ;;  %4232 = vmax.xlane.f32.xlu1 %v4231_v13 }
 0x39e   : > { %v5501_v57 = vpop.f32.mrf.mxu1 }
 0x39f   : > { %v5502_v35 = vadd.f32 %v5501_v57, %v5500_v15  ;;  %v8133_v7 = vsel %vm4105_vm3, -1e+09, %v3995_v5 }
 0x3a0   : > { %v5503_v60 = vpop.f32.mrf.mxu1  ;;  %4170 = vst.msk [vmem:[%s7986_s19 + $0x80] sm:$0xff] %vm4153_vm2, %v8133_v7  ;;  %v4234_v30 = vsel %vm4153_vm2, %v8133_v7, -inf }
 0x3a1   : > { %v3998_v25 = vadd.f32 %v5502_v35, %v7979_v45  ;;  %4235 = vmax.xlane.f32.xlu0 %v4234_v30  ;;  %v4081_v35 = vld [vmem:[%s7973_s15 + $0xc0] sm:$0xff] }
 0x3a2   : > { %v5504_v22 = vpop.f32.mrf.mxu1  ;;  %vm4113_vm11 = vcmp.eq.s32.totalorder %v4081_v35, 0 }
 0x3a3   : > { %v5505_v50 = vadd.f32 %v5504_v22, %v5503_v60  ;;  %v8142_v43 = vsel %vm4106_vm4, -1e+09, %v3998_v25  ;;  %vm4858_vm4 = vcmask 7168  }
 0x3a4   : > { %v5506_v6 = vpop.f32.mrf.mxu1  ;;  %4171 = vst.msk [vmem:[%s7986_s19 + $0x88] sm:$0xff] %vm4153_vm2, %v8142_v43  ;;  %v4237_v18 = vsel %vm4153_vm2, %v8142_v43, -inf }
 0x3a5   : > { %v4003_v11 = vadd.f32 %v5505_v50, %v7979_v45  ;;  %4238 = vmax.xlane.f32.xlu1 %v4237_v18 }
 0x3a6   : > { %v5507_v8 = vpop.f32.mrf.mxu1 }
 0x3a7   : > { %v5508_v44 = vadd.f32 %v5507_v8, %v5506_v6  ;;  %v8151_v12 = vsel %vm4107_vm5, -1e+09, %v4003_v11  ;;  %v4082_v6 = vld [vmem:[%s7973_s15 + $0xc8] sm:$0xff] }
 0x3a8   : > { %v5509_v37 = vpop.f32.mrf.mxu1  ;;  %4172 = vst.msk [vmem:[%s7986_s19 + $0x90] sm:$0xff] %vm4153_vm2, %v8151_v12  ;;  %v4240_v2 = vsel %vm4153_vm2, %v8151_v12, -inf  ;;  %vm4114_vm12 = vcmp.eq.s32.totalorder %v4082_v6, 0 }
 0x3a9   : > { %v4006_v31 = vadd.f32 %v5508_v44, %v7979_v45  ;;  %4241 = vmax.xlane.f32.xlu0 %v4240_v2  ;;  %v4083_v2 = vld [vmem:[%s7973_s15 + $0xd0] sm:$0xff] }
 0x3aa   : > { %v5510_v0 = vpop.f32.mrf.mxu1  ;;  %vm4115_vm13 = vcmp.eq.s32.totalorder %v4083_v2, 0 }
 0x3ab   : > { %v5511_v34 = vadd.f32 %v5510_v0, %v5509_v37  ;;  %v8160_v40 = vsel %vm4108_vm6, -1e+09, %v4006_v31 }
 0x3ac   : > { %v5512_v3 = vpop.f32.mrf.mxu1  ;;  %4173 = vst.msk [vmem:[%s7986_s19 + $0x98] sm:$0xff] %vm4153_vm2, %v8160_v40  ;;  %v4243_v49 = vsel %vm4153_vm2, %v8160_v40, -inf }
 0x3ad   : > { %v4011_v26 = vadd.f32 %v5511_v34, %v7979_v45  ;;  %4244 = vmax.xlane.f32.xlu1 %v4243_v49 }
 0x3ae   : > { %v5513_v47 = vpop.f32.mrf.mxu1 }
 0x3af   : > { %v5514_v55 = vadd.f32 %v5513_v47, %v5512_v3  ;;  %v8169_v61 = vsel %vm4109_vm7, -1e+09, %v4011_v26  ;;  %v4084_v26 = vld [vmem:[%s7973_s15 + $0xd8] sm:$0xff] }
 0x3b0   : > { %v5515_v27 = vpop.f32.mrf.mxu1  ;;  %4174 = vst.msk [vmem:[%s7986_s19 + $0xa0] sm:$0xff] %vm4153_vm2, %v8169_v61  ;;  %v4246_v51 = vsel %vm4153_vm2, %v8169_v61, -inf  ;;  %vm4116_vm14 = vcmp.eq.s32.totalorder %v4084_v26, 0 }
 0x3b1   : > { %v4014_v41 = vadd.f32 %v5514_v55, %v7979_v45  ;;  %4247 = vmax.xlane.f32.xlu0 %v4246_v51 }
 0x3b2   : > { %v5516_v16 = vpop.f32.mrf.mxu1 }
 0x3b3   : > { %v5517_v42 = vadd.f32 %v5516_v16, %v5515_v27  ;;  %v8178_v58 = vsel %vm4110_vm8, -1e+09, %v4014_v41 }
 0x3b4   : > { %v5518_v10 = vpop.f32.mrf.mxu1  ;;  %4175 = vst.msk [vmem:[%s7986_s19 + $0xa8] sm:$0xff] %vm4153_vm2, %v8178_v58  ;;  %v4249_v4 = vsel %vm4153_vm2, %v8178_v58, -inf }
 0x3b5   : > { %v4019_v9 = vadd.f32 %v5517_v42, %v7979_v45  ;;  %4250 = vmax.xlane.f32.xlu1 %v4249_v4 }
 0x3b6   : > { %v5519_v52 = vpop.f32.mrf.mxu1 }
 0x3b7   : > { %v5520_v15 = vadd.f32 %v5519_v52, %v5518_v10  ;;  %v8187_v13 = vsel %vm4111_vm9, -1e+09, %v4019_v9  ;;  %v4086_v52 = vld [vmem:[%s7973_s15 + $0xe8] sm:$0xff] }
 0x3b8   : > { %v5521_v5 = vpop.f32.mrf.mxu1  ;;  %4176 = vst.msk [vmem:[%s7986_s19 + $0xb0] sm:$0xff] %vm4153_vm2, %v8187_v13  ;;  %v4252_v28 = vsel %vm4153_vm2, %v8187_v13, -inf  ;;  %vm4118_vm0 = vcmp.eq.s32.totalorder %v4086_v52, 0 }
 0x3b9   : > { %v4022_v57 = vadd.f32 %v5520_v15, %v7979_v45  ;;  %4253 = vmax.xlane.f32.xlu0 %v4252_v28 }
 0x3ba   : > { %v5522_v60 = vpop.f32.mrf.mxu1 }
 0x3bb   : > { %v5523_v30 = vadd.f32 %v5522_v60, %v5521_v5  ;;  %v8196_v25 = vsel %vm4112_vm10, -1e+09, %v4022_v57 }
 0x3bc   : > { %v5524_v19 = vpop.f32.mrf.mxu1  ;;  %4177 = vst.msk [vmem:[%s7986_s19 + $0xb8] sm:$0xff] %vm4153_vm2, %v8196_v25  ;;  %v4255_v22 = vsel %vm4153_vm2, %v8196_v25, -inf }
 0x3bd   : > { %v4027_v50 = vadd.f32 %v5523_v30, %v7979_v45  ;;  %4256 = vmax.xlane.f32.xlu1 %v4255_v22  ;;  %v4087_v30 = vld [vmem:[%s7973_s15 + $0xf0] sm:$0xff] }
 0x3be   : > { %v5525_v18 = vpop.f32.mrf.mxu1  ;;  %vm4119_vm1 = vcmp.eq.s32.totalorder %v4087_v30, 0 }
 0x3bf   : > { %v5526_v11 = vadd.f32 %v5525_v18, %v5524_v19  ;;  %v8205_v56 = vsel %vm4113_vm11, -1e+09, %v4027_v50 }
 0x3c0   : > { %v5527_v8 = vpop.f32.mrf.mxu1  ;;  %4178 = vst.msk [vmem:[%s7986_s19 + $0xc0] sm:$0xff] %vm4153_vm2, %v8205_v56  ;;  %v4258_v44 = vsel %vm4153_vm2, %v8205_v56, -inf }
 0x3c1   : > { %v4030_v37 = vadd.f32 %v5526_v11, %v7979_v45  ;;  %4259 = vmax.xlane.f32.xlu0 %v4258_v44 }
 0x3c2   : > { %v5528_v31 = vpop.f32.mrf.mxu1 }
 0x3c3   : > { %v5529_v63 = vadd.f32 %v5528_v31, %v5527_v8  ;;  %v8214_v0 = vsel %vm4114_vm12, -1e+09, %v4030_v37  ;;  %v4088_v8 = vld [vmem:[%s7973_s15 + $0xf8] sm:$0xff] }
 0x3c4   : > { %v5530_v34 = vpop.f32.mrf.mxu1  ;;  %4179 = vst.msk [vmem:[%s7986_s19 + $0xc8] sm:$0xff] %vm4153_vm2, %v8214_v0  ;;  %v4261_v3 = vsel %vm4153_vm2, %v8214_v0, -inf  ;;  %vm4120_vm3 = vcmp.eq.s32.totalorder %v4088_v8, 0 }
 0x3c5   : > { %v4035_v49 = vadd.f32 %v5529_v63, %v7979_v45  ;;  %4262 = vmax.xlane.f32.xlu1 %v4261_v3 }
 0x3c6   : > { %v5531_v1 = vpop.f32.mrf.mxu1 }
 0x3c7   : > { %v5532_v47 = vadd.f32 %v5531_v1, %v5530_v34  ;;  %v8223_v55 = vsel %vm4115_vm13, -1e+09, %v4035_v49 }
 0x3c8   : > { %v5533_v27 = vpop.f32.mrf.mxu1  ;;  %4180 = vst.msk [vmem:[%s7986_s19 + $0xd0] sm:$0xff] %vm4153_vm2, %v8223_v55  ;;  %v4264_v51 = vsel %vm4153_vm2, %v8223_v55, -inf }
 0x3c9   : > { %v4038_v41 = vadd.f32 %v5532_v47, %v7979_v45  ;;  %4265 = vmax.xlane.f32.xlu0 %v4264_v51 }
 0x3ca   : > { %v5534_v16 = vpop.f32.mrf.mxu1 }
 0x3cb   : > { %v5535_v42 = vadd.f32 %v5534_v16, %v5533_v27  ;;  %v8232_v10 = vsel %vm4116_vm14, -1e+09, %v4038_v41 }
 0x3cc   : > { %v5536_v4 = vpop.f32.mrf.mxu1  ;;  %4181 = vst.msk [vmem:[%s7986_s19 + $0xd8] sm:$0xff] %vm4153_vm2, %v8232_v10  ;;  %v4267_v9 = vsel %vm4153_vm2, %v8232_v10, -inf }
 0x3cd   : > { %v4043_v39 = vadd.f32 %v5535_v42, %v7979_v45  ;;  %4268 = vmax.xlane.f32.xlu1 %v4267_v9 }
 0x3ce   : > { %v5537_v15 = vpop.f32.mrf.mxu1 }
 0x3cf   : > { %v5538_v5 = vadd.f32 %v5537_v15, %v5536_v4  ;;  %v8241_v28 = vsel %vm4117_vm15, -1e+09, %v4043_v39 }
 0x3d0   : > { %v5539_v57 = vpop.f32.mrf.mxu1  ;;  %4182 = vst.msk [vmem:[%s7986_s19 + $0xe0] sm:$0xff] %vm4153_vm2, %v8241_v28  ;;  %v4270_v35 = vsel %vm4153_vm2, %v8241_v28, -inf }
 0x3d1   : > { %v4046_v60 = vadd.f32 %v5538_v5, %v7979_v45  ;;  %4271 = vmax.xlane.f32.xlu0 %v4270_v35 }
 0x3d2   : > { %v5540_v19 = vpop.f32.mrf.mxu1 }
 0x3d3   : > { %v5541_v22 = vadd.f32 %v5540_v19, %v5539_v57  ;;  %v8250_v50 = vsel %vm4118_vm0, -1e+09, %v4046_v60 }
 0x3d4   : > { %v5542_v6 = vpop.f32.mrf.mxu1  ;;  %4183 = vst.msk [vmem:[%s7986_s19 + $0xe8] sm:$0xff] %vm4153_vm2, %v8250_v50  ;;  %v4273_v18 = vsel %vm4153_vm2, %v8250_v50, -inf }
 0x3d5   : > { %v4051_v11 = vadd.f32 %v5541_v22, %v7979_v45  ;;  %4274 = vmax.xlane.f32.xlu1 %v4273_v18 }
 0x3d6   : > { %v5543_v44 = vpop.f32.mrf.mxu1 }
 0x3d7   : > { %v5544_v37 = vadd.f32 %v5543_v44, %v5542_v6  ;;  %v8259_v2 = vsel %vm4119_vm1, -1e+09, %v4051_v11 }
 0x3d8   : > { %4184 = vst.msk [vmem:[%s7986_s19 + $0xf0] sm:$0xff] %vm4153_vm2, %v8259_v2  ;;  %v4276_v31 = vsel %vm4153_vm2, %v8259_v2, -inf }
 0x3d9   : > { %v4054_v63 = vadd.f32 %v5544_v37, %v7979_v45  ;;  %4277 = vmax.xlane.f32.xlu0 %v4276_v31 }
 0x3db   : > { %v8267_v34 = vsel %vm4120_vm3, -1e+09, %v4054_v63 }
 0x3dc   : > { %4185 = vst.msk [vmem:[%s7986_s19 + $0xf8] sm:$0xff] %vm4153_vm2, %v8267_v34  ;;  %v4279_v3 = vsel %vm4153_vm2, %v8267_v34, -inf }
 0x3dd   : > { %4280 = vmax.xlane.f32.xlu1 %v4279_v3 }
 0x3ea   : > { %v4188_v49 = vpop.xlane.xlu0 %4187 }
 0x3eb   : > { %v8275_v26 = vsub.f32 %v7989_v54, %v4188_v49 }
 0x3ed   : > { %v4314_v1 = vmul.f32 1.442695, %v8275_v26 }
 0x3ee   : > { %v4191_v47 = vpop.xlane.xlu0 %4190 }
 0x3ef   : > { %5843 = vpow2.f32 %v4314_v1  ;;  %v8279_v45 = vsub.f32 %v7998_v53, %v4191_v47 }
 0x3f1   : > { %v4316_v27 = vmul.f32 1.442695, %v8279_v45 }
 0x3f2   : > { %v4194_v51 = vpop.xlane.xlu1 %4193 }
 0x3f3   : > { %5845 = vpow2.f32 %v4316_v27  ;;  %v8283_v41 = vsub.f32 %v8007_v17, %v4194_v51 }
 0x3f5   : > { %v4318_v20 = vmul.f32 1.442695, %v8283_v41 }
 0x3f6   : > { %v4197_v16 = vpop.xlane.xlu1 %4196 }
 0x3f7   : > { %5847 = vpow2.f32 %v4318_v20  ;;  %v8287_v54 = vsub.f32 %v8016_v23, %v4197_v16 }
 0x3f9   : > { %v4320_v42 = vmul.f32 1.442695, %v8287_v54 }
 0x3fa   : > { %v4200_v4 = vpop.xlane.xlu0 %4199 }
 0x3fb   : > { %5849 = vpow2.f32 %v4320_v42  ;;  %v8291_v53 = vsub.f32 %v8025_v48, %v4200_v4 }
 0x3fc   : > { %v8293_v9 = vpop.eup %5843 }
 0x3fd   : > { %v4322_v39 = vmul.f32 1.442695, %v8291_v53  ;;  %v4378_v17 = vsel %vm4153_vm2, %v8293_v9, 0.0 }
 0x3fe   : > { %v4203_v52 = vpop.xlane.xlu1 %4202  ;;  %4379 = vadd.xlane.f32.xlu0 %v4378_v17 }
 0x3ff   : > { %5851 = vpow2.f32 %v4322_v39  ;;  %v8299_v23 = vsub.f32 %v8034_v29, %v4203_v52 }
 0x400   : > { %v8301_v15 = vpop.eup %5845 }
 0x401   : > { %v4324_v5 = vmul.f32 1.442695, %v8299_v23  ;;  %v4381_v48 = vsel %vm4153_vm2, %v8301_v15, 0.0 }
 0x402   : > { %4382 = vadd.xlane.f32.xlu1 %v4381_v48  ;;  %v4206_v57 = vpop.xlane.xlu0 %4205 }
 0x403   : > { %5853 = vpow2.f32 %v4324_v5  ;;  %v8307_v35 = vsub.f32 %v8043_v24, %v4206_v57 }
 0x404   : > { %v8309_v60 = vpop.eup %5847 }
 0x405   : > { %v4326_v30 = vmul.f32 1.442695, %v8307_v35  ;;  %v4384_v29 = vsel %vm4153_vm2, %v8309_v60, 0.0 }
 0x406   : > { %v4209_v19 = vpop.xlane.xlu1 %4208  ;;  %4385 = vadd.xlane.f32.xlu0 %v4384_v29 }
 0x407   : > { %5855 = vpow2.f32 %v4326_v30  ;;  %v8315_v22 = vsub.f32 %v8052_v14, %v4209_v19 }
 0x408   : > { %v8317_v6 = vpop.eup %5849 }
 0x409   : > { %v4328_v18 = vmul.f32 1.442695, %v8315_v22  ;;  %v4387_v24 = vsel %vm4153_vm2, %v8317_v6, 0.0 }
 0x40a   : > { %4388 = vadd.xlane.f32.xlu1 %v4387_v24  ;;  %v4212_v11 = vpop.xlane.xlu0 %4211 }
 0x40b   : > { %5857 = vpow2.f32 %v4328_v18  ;;  %v8323_v8 = vsub.f32 %v8061_v38, %v4212_v11 }
 0x40c   : > { %v8325_v44 = vpop.eup %5851 }
 0x40d   : > { %v4330_v37 = vmul.f32 1.442695, %v8323_v8  ;;  %v4390_v14 = vsel %vm4153_vm2, %v8325_v44, 0.0 }
 0x40e   : > { %v4215_v31 = vpop.xlane.xlu1 %4214  ;;  %4391 = vadd.xlane.f32.xlu0 %v4390_v14 }
 0x40f   : > { %5859 = vpow2.f32 %v4330_v37  ;;  %v8331_v63 = vsub.f32 %v8070_v59, %v4215_v31 }
 0x410   : > { %v8333_v3 = vpop.eup %5853 }
 0x411   : > { %v4332_v49 = vmul.f32 1.442695, %v8331_v63  ;;  %v4393_v38 = vsel %vm4153_vm2, %v8333_v3, 0.0 }
 0x412   : > { %4394 = vadd.xlane.f32.xlu1 %v4393_v38  ;;  %v4218_v1 = vpop.xlane.xlu0 %4217 }
 0x413   : > { %5861 = vpow2.f32 %v4332_v49  ;;  %v8339_v47 = vsub.f32 %v8079_v33, %v4218_v1 }
 0x414   : > { %v8341_v27 = vpop.eup %5855 }
 0x415   : > { %v4334_v51 = vmul.f32 1.442695, %v8339_v47  ;;  %v4396_v59 = vsel %vm4153_vm2, %v8341_v27, 0.0 }
 0x416   : > { %v4221_v20 = vpop.xlane.xlu1 %4220  ;;  %4397 = vadd.xlane.f32.xlu0 %v4396_v59 }
 0x417   : > { %5863 = vpow2.f32 %v4334_v51  ;;  %v8347_v16 = vsub.f32 %v8088_v46, %v4221_v20 }
 0x418   : > { %v8349_v42 = vpop.eup %5857 }
 0x419   : > { %v4336_v4 = vmul.f32 1.442695, %v8347_v16  ;;  %v4399_v33 = vsel %vm4153_vm2, %v8349_v42, 0.0 }
 0x41a   : > { %4400 = vadd.xlane.f32.xlu1 %v4399_v33  ;;  %v4224_v39 = vpop.xlane.xlu0 %4223 }
 0x41b   : > { %5865 = vpow2.f32 %v4336_v4  ;;  %v8355_v17 = vsub.f32 %v8097_v32, %v4224_v39 }
 0x41c   : > { %v8357_v52 = vpop.eup %5859 }
 0x41d   : > { %v4338_v5 = vmul.f32 1.442695, %v8355_v17  ;;  %v4402_v46 = vsel %vm4153_vm2, %v8357_v52, 0.0 }
 0x41e   : > { %v4227_v48 = vpop.xlane.xlu1 %4226  ;;  %4403 = vadd.xlane.f32.xlu0 %v4402_v46 }
 0x41f   : > { %5867 = vpow2.f32 %v4338_v5  ;;  %v8363_v57 = vsub.f32 %v8106_v36, %v4227_v48 }
 0x420   : > { %v8365_v30 = vpop.eup %5861 }
 0x421   : > { %v4340_v29 = vmul.f32 1.442695, %v8363_v57  ;;  %v4405_v32 = vsel %vm4153_vm2, %v8365_v30, 0.0 }
 0x422   : > { %4406 = vadd.xlane.f32.xlu1 %v4405_v32  ;;  %v4230_v19 = vpop.xlane.xlu0 %4229 }
 0x423   : > { %5869 = vpow2.f32 %v4340_v29  ;;  %v8371_v18 = vsub.f32 %v8115_v62, %v4230_v19 }
 0x424   : > { %v8373_v24 = vpop.eup %5863 }
 0x425   : > { %v4342_v11 = vmul.f32 1.442695, %v8371_v18  ;;  %v4408_v36 = vsel %vm4153_vm2, %v8373_v24, 0.0 }
 0x426   : > { %v4233_v37 = vpop.xlane.xlu1 %4232  ;;  %4409 = vadd.xlane.f32.xlu0 %v4408_v36 }
 0x427   : > { %5871 = vpow2.f32 %v4342_v11  ;;  %v8379_v14 = vsub.f32 %v8124_v21, %v4233_v37 }
 0x428   : > { %v8381_v31 = vpop.eup %5865 }
 0x429   : > { %v4344_v49 = vmul.f32 1.442695, %v8379_v14  ;;  %v4411_v62 = vsel %vm4153_vm2, %v8381_v31, 0.0 }
 0x42a   : > { %4412 = vadd.xlane.f32.xlu1 %v4411_v62  ;;  %v4236_v38 = vpop.xlane.xlu0 %4235 }
 0x42b   : > { %5873 = vpow2.f32 %v4344_v49  ;;  %v8387_v1 = vsub.f32 %v8133_v7, %v4236_v38 }
 0x42c   : > { %v8389_v51 = vpop.eup %5867 }
 0x42d   : > { %v4346_v59 = vmul.f32 1.442695, %v8387_v1  ;;  %v4414_v21 = vsel %vm4153_vm2, %v8389_v51, 0.0 }
 0x42e   : > { %v4239_v20 = vpop.xlane.xlu1 %4238  ;;  %4415 = vadd.xlane.f32.xlu0 %v4414_v21 }
 0x42f   : > { %5875 = vpow2.f32 %v4346_v59  ;;  %v8395_v4 = vsub.f32 %v8142_v43, %v4239_v20 }
 0x430   : > { %v8397_v33 = vpop.eup %5869 }
 0x431   : > { %v4348_v39 = vmul.f32 1.442695, %v8395_v4  ;;  %v4417_v7 = vsel %vm4153_vm2, %v8397_v33, 0.0 }
 0x432   : > { %4418 = vadd.xlane.f32.xlu1 %v4417_v7  ;;  %v4242_v5 = vpop.xlane.xlu0 %4241 }
 0x433   : > { %5877 = vpow2.f32 %v4348_v39  ;;  %v8403_v46 = vsub.f32 %v8151_v12, %v4242_v5 }
 0x434   : > { %v8405_v48 = vpop.eup %5871 }
 0x435   : > { %v4350_v29 = vmul.f32 1.442695, %v8403_v46  ;;  %v4420_v43 = vsel %vm4153_vm2, %v8405_v48, 0.0 }
 0x436   : > { %v4245_v32 = vpop.xlane.xlu1 %4244  ;;  %4421 = vadd.xlane.f32.xlu0 %v4420_v43 }
 0x437   : > { %5879 = vpow2.f32 %v4350_v29  ;;  %v8411_v19 = vsub.f32 %v8160_v40, %v4245_v32 }
 0x438   : > { %v8413_v11 = vpop.eup %5873 }
 0x439   : > { %v4352_v36 = vmul.f32 1.442695, %v8411_v19  ;;  %v4423_v12 = vsel %vm4153_vm2, %v8413_v11, 0.0 }
 0x43a   : > { %4424 = vadd.xlane.f32.xlu1 %v4423_v12  ;;  %v4248_v37 = vpop.xlane.xlu0 %4247 }
 0x43b   : > { %5881 = vpow2.f32 %v4352_v36  ;;  %v8419_v49 = vsub.f32 %v8169_v61, %v4248_v37 }
 0x43c   : > { %v8421_v62 = vpop.eup %5875 }
 0x43d   : > { %v4354_v38 = vmul.f32 1.442695, %v8419_v49  ;;  %v4426_v40 = vsel %vm4153_vm2, %v8421_v62, 0.0 }
 0x43e   : > { %v4251_v59 = vpop.xlane.xlu1 %4250  ;;  %4427 = vadd.xlane.f32.xlu0 %v4426_v40 }
 0x43f   : > { %5883 = vpow2.f32 %v4354_v38  ;;  %v8427_v21 = vsub.f32 %v8178_v58, %v4251_v59 }
 0x440   : > { %v8429_v20 = vpop.eup %5877 }
 0x441   : > { %v4356_v39 = vmul.f32 1.442695, %v8427_v21  ;;  %v4429_v61 = vsel %vm4153_vm2, %v8429_v20, 0.0 }
 0x442   : > { %4430 = vadd.xlane.f32.xlu1 %v4429_v61  ;;  %v4254_v7 = vpop.xlane.xlu0 %4253 }
 0x443   : > { %5885 = vpow2.f32 %v4356_v39  ;;  %v8435_v5 = vsub.f32 %v8187_v13, %v4254_v7 }
 0x444   : > { %v8437_v29 = vpop.eup %5879 }
 0x445   : > { %v4358_v43 = vmul.f32 1.442695, %v8435_v5  ;;  %v4432_v58 = vsel %vm4153_vm2, %v8437_v29, 0.0 }
 0x446   : > { %v4257_v32 = vpop.xlane.xlu1 %4256  ;;  %4433 = vadd.xlane.f32.xlu0 %v4432_v58 }
 0x447   : > { %5887 = vpow2.f32 %v4358_v43  ;;  %v8443_v36 = vsub.f32 %v8196_v25, %v4257_v32 }
 0x448   : > { %v8445_v12 = vpop.eup %5881 }
 0x449   : > { %v4360_v37 = vmul.f32 1.442695, %v8443_v36  ;;  %v4435_v13 = vsel %vm4153_vm2, %v8445_v12, 0.0 }
 0x44a   : > { %4436 = vadd.xlane.f32.xlu1 %v4435_v13  ;;  %v4260_v38 = vpop.xlane.xlu0 %4259 }
 0x44b   : > { %5889 = vpow2.f32 %v4360_v37  ;;  %v8451_v40 = vsub.f32 %v8205_v56, %v4260_v38 }
 0x44c   : > { %v8453_v59 = vpop.eup %5883 }
 0x44d   : > { %v4362_v39 = vmul.f32 1.442695, %v8451_v40  ;;  %v4438_v25 = vsel %vm4153_vm2, %v8453_v59, 0.0 }
 0x44e   : > { %v4263_v61 = vpop.xlane.xlu1 %4262  ;;  %4439 = vadd.xlane.f32.xlu0 %v4438_v25 }
 0x44f   : > { %5891 = vpow2.f32 %v4362_v39  ;;  %v8459_v7 = vsub.f32 %v8214_v0, %v4263_v61 }
 0x450   : > { %v8461_v43 = vpop.eup %5885 }
 0x451   : > { %v4364_v58 = vmul.f32 1.442695, %v8459_v7  ;;  %v4441_v56 = vsel %vm4153_vm2, %v8461_v43, 0.0 }
 0x452   : > { %4442 = vadd.xlane.f32.xlu1 %v4441_v56  ;;  %v4266_v32 = vpop.xlane.xlu0 %4265 }
 0x453   : > { %5893 = vpow2.f32 %v4364_v58  ;;  %v8467_v37 = vsub.f32 %v8223_v55, %v4266_v32 }
 0x454   : > { %v8469_v13 = vpop.eup %5887 }
 0x455   : > { %8955 = vst [vmem:[#allocation5_spill] sm:$0xff] %v8467_v37  ;;  %v4366_v38 = vmul.f32 1.442695, %v8467_v37  ;;  %v4444_v0 = vsel %vm4153_vm2, %v8469_v13, 0.0 }
 0x456   : > { %v4269_v39 = vpop.xlane.xlu1 %4268  ;;  %4445 = vadd.xlane.f32.xlu0 %v4444_v0 }
 0x457   : > { %5895 = vpow2.f32 %v4366_v38  ;;  %v8475_v25 = vsub.f32 %v8232_v10, %v4269_v39 }
 0x458   : > { %v8477_v61 = vpop.eup %5889 }
 0x459   : > { %8956 = vst [vmem:[#allocation6_spill] sm:$0xff] %v8475_v25  ;;  %v4368_v58 = vmul.f32 1.442695, %v8475_v25  ;;  %v4447_v55 = vsel %vm4153_vm2, %v8477_v61, 0.0 }
 0x45a   : > { %4448 = vadd.xlane.f32.xlu1 %v4447_v55  ;;  %v4272_v56 = vpop.xlane.xlu0 %4271 }
 0x45b   : > { %5897 = vpow2.f32 %v4368_v58  ;;  %v8483_v32 = vsub.f32 %v8241_v28, %v4272_v56 }
 0x45c   : > { %v8485_v37 = vpop.eup %5891 }
 0x45d   : > { %8957 = vst [vmem:[#allocation7_spill] sm:$0xff] %v8483_v32  ;;  %v4370_v38 = vmul.f32 1.442695, %v8483_v32  ;;  %v4450_v10 = vsel %vm4153_vm2, %v8485_v37, 0.0 }
 0x45e   : > { %v4275_v0 = vpop.xlane.xlu1 %4274  ;;  %4451 = vadd.xlane.f32.xlu0 %v4450_v10 }
 0x45f   : > { %5899 = vpow2.f32 %v4370_v38  ;;  %v8491_v39 = vsub.f32 %v8250_v50, %v4275_v0 }
 0x460   : > { %v8493_v25 = vpop.eup %5893 }
 0x461   : > { %8958 = vst [vmem:[#allocation9_spill] sm:$0xff] %v8491_v39  ;;  %v4372_v58 = vmul.f32 1.442695, %v8491_v39  ;;  %v4453_v28 = vsel %vm4153_vm2, %v8493_v25, 0.0 }
 0x462   : > { %4454 = vadd.xlane.f32.xlu1 %v4453_v28  ;;  %v4278_v55 = vpop.xlane.xlu0 %4277 }
 0x463   : > { %5901 = vpow2.f32 %v4372_v58  ;;  %v8499_v56 = vsub.f32 %v8259_v2, %v4278_v55 }
 0x464   : > { %v8501_v32 = vpop.eup %5895 }
 0x465   : > { %8959 = vst [vmem:[#allocation10_spill] sm:$0xff] %v8499_v56  ;;  %v4374_v38 = vmul.f32 1.442695, %v8499_v56  ;;  %v4456_v50 = vsel %vm4153_vm2, %v8501_v32, 0.0 }
 0x466   : > { %v4281_v10 = vpop.xlane.xlu1 %4280  ;;  %4457 = vadd.xlane.f32.xlu0 %v4456_v50 }
 0x467   : > { %5903 = vpow2.f32 %v4374_v38  ;;  %v8507_v0 = vsub.f32 %v8267_v34, %v4281_v10 }
 0x468   : > { %v8509_v39 = vpop.eup %5897 }
 0x469   : > { %8960 = vst [vmem:[#allocation8_spill] sm:$0xff] %v8507_v0  ;;  %8961 = vst [vmem:[#allocation12_spill] sm:$0xff] %v8509_v39  ;;  %v4376_v58 = vmul.f32 1.442695, %v8507_v0  ;;  %v4459_v2 = vsel %vm4153_vm2, %v8509_v39, 0.0 }
 0x46a   : > { %4460 = vadd.xlane.f32.xlu1 %v4459_v2 }
 0x46b   : > { %5905 = vpow2.f32 %v4376_v58 }
 0x46c   : > { %v8514_v28 = vpop.eup %5899 }
 0x46d   : > { %8962 = vst [vmem:[#allocation14_spill] sm:$0xff] %v8514_v28  ;;  %v4462_v55 = vsel %vm4153_vm2, %v8514_v28, 0.0 }
 0x46e   : > { %4463 = vadd.xlane.f32.xlu0 %v4462_v55 }
 0x470   : > { %v8518_v50 = vpop.eup %5901 }
 0x471   : > { %8963 = vst [vmem:[#allocation11_spill] sm:$0xff] %v8518_v50  ;;  %v4465_v34 = vsel %vm4153_vm2, %v8518_v50, 0.0 }
 0x472   : > { %4466 = vadd.xlane.f32.xlu1 %v4465_v34 }
 0x474   : > { %v8522_v38 = vpop.eup %5903 }
 0x475   : > { %8964 = vst [vmem:[#allocation17_spill] sm:$0xff] %v8522_v38  ;;  %v4468_v10 = vsel %vm4153_vm2, %v8522_v38, 0.0 }
 0x476   : > { %4469 = vadd.xlane.f32.xlu0 %v4468_v10 }
 0x478   : > { %v8526_v2 = vpop.eup %5905 }
 0x479   : > { %8965 = vst [vmem:[#allocation20_spill] sm:$0xff] %v8526_v2  ;;  %v4471_v58 = vsel %vm4153_vm2, %v8526_v2, 0.0 }
 0x47a   : > { %4472 = vadd.xlane.f32.xlu1 %v4471_v58 }
 0x487   : > { %v4380_v55 = vpop.xlane.xlu0 %4379 }
 0x488   : > { %5907 = vrcp.f32 %v4380_v55 }
 0x489   : > { %5909 = vlog2.f32 %v4380_v55 }
 0x48b   : > { %v4383_v0 = vpop.xlane.xlu1 %4382 }
 0x48c   : > { %5911 = vrcp.f32 %v4383_v0 }
 0x48d   : > { %5913 = vlog2.f32 %v4383_v0 }
 0x48f   : > { %v4386_v34 = vpop.xlane.xlu0 %4385 }
 0x490   : > { %5915 = vrcp.f32 %v4386_v34 }
 0x491   : > { %5917 = vlog2.f32 %v4386_v34 }
 0x493   : > { %v4389_v56 = vpop.xlane.xlu1 %4388 }
 0x494   : > { %5919 = vrcp.f32 %v4389_v56 }
 0x495   : > { %v5908_v10 = vpop.eup %5907  ;;  %5921 = vlog2.f32 %v4389_v56 }
 0x496   : > { %v5910_v58 = vpop.eup %5909  ;;  %v4506_v55 = vmul.f32 %v5908_v10, %v8293_v9 }
 0x497   : > { %v4571_v2 = vmul.f32 0.6931472, %v5910_v58  ;;  %v4392_v38 = vpop.xlane.xlu0 %4391 }
 0x498   : > { %5923 = vrcp.f32 %v4392_v38  ;;  %4538 = vst.msk [vmem:[%s8534_s22] sm:$0xff] %vm4153_vm2, %v4506_v55 }
 0x499   : > { %v5912_v56 = vpop.eup %5911  ;;  %5925 = vlog2.f32 %v4392_v38  ;;  %v4634_v0 = vsub.f32 %v8275_v26, %v4571_v2 }
 0x49a   : > { %v5914_v34 = vpop.eup %5913  ;;  %v4507_v50 = vmul.f32 %v5912_v56, %v8301_v15 }
 0x49b   : > { %v4573_v9 = vmul.f32 0.6931472, %v5914_v34  ;;  %v4395_v10 = vpop.xlane.xlu1 %4394  ;;  %4666 = vst.msk [vmem:[%s8541_s25] sm:$0xff] %vm4153_vm2, %v4634_v0  ;;  %v4698_v58 = vmul.f32 %v4634_v0, %v4506_v55 }
 0x49c   : > { %5927 = vrcp.f32 %v4395_v10  ;;  %4539 = vst.msk [vmem:[%s8534_s22 + $0x8] sm:$0xff] %vm4153_vm2, %v4507_v50 }
 0x49d   : > { %v5916_v28 = vpop.eup %5915  ;;  %5929 = vlog2.f32 %v4395_v10  ;;  %v4730_v39 = vsel %vm4153_vm2, %v4698_v58, 0.0  ;;  %v4635_v38 = vsub.f32 %v8279_v45, %v4573_v9 }
 0x49e   : > { %v5918_v26 = vpop.eup %5917  ;;  %4731 = vadd.xlane.f32.xlu0 %v4730_v39  ;;  %v4508_v15 = vmul.f32 %v5916_v28, %v8309_v60 }
 0x49f   : > { %v4575_v2 = vmul.f32 0.6931472, %v5918_v26  ;;  %v4398_v56 = vpop.xlane.xlu0 %4397  ;;  %4667 = vst.msk [vmem:[%s8541_s25 + $0x8] sm:$0xff] %vm4153_vm2, %v4635_v38  ;;  %v4699_v55 = vmul.f32 %v4635_v38, %v4507_v50 }
 0x4a0   : > { %5931 = vrcp.f32 %v4398_v56  ;;  %4540 = vst.msk [vmem:[%s8534_s22 + $0x10] sm:$0xff] %vm4153_vm2, %v4508_v15 }
 0x4a1   : > { %v5920_v0 = vpop.eup %5919  ;;  %5933 = vlog2.f32 %v4398_v56  ;;  %v4733_v34 = vsel %vm4153_vm2, %v4699_v55, 0.0  ;;  %v4636_v45 = vsub.f32 %v8283_v41, %v4575_v2 }
 0x4a2   : > { %v5922_v9 = vpop.eup %5921  ;;  %4734 = vadd.xlane.f32.xlu1 %v4733_v34  ;;  %v4509_v60 = vmul.f32 %v5920_v0, %v8317_v6 }
 0x4a3   : > { %v4577_v39 = vmul.f32 0.6931472, %v5922_v9  ;;  %v4401_v28 = vpop.xlane.xlu1 %4400  ;;  %4668 = vst.msk [vmem:[%s8541_s25 + $0x10] sm:$0xff] %vm4153_vm2, %v4636_v45  ;;  %v4700_v50 = vmul.f32 %v4636_v45, %v4508_v15 }
 0x4a4   : > { %5935 = vrcp.f32 %v4401_v28  ;;  %4541 = vst.msk [vmem:[%s8534_s22 + $0x18] sm:$0xff] %vm4153_vm2, %v4509_v60 }
 0x4a5   : > { %v5924_v10 = vpop.eup %5923  ;;  %5937 = vlog2.f32 %v4401_v28  ;;  %v4736_v58 = vsel %vm4153_vm2, %v4700_v50, 0.0  ;;  %v4637_v41 = vsub.f32 %v8287_v54, %v4577_v39 }
 0x4a6   : > { %v5926_v38 = vpop.eup %5925  ;;  %4737 = vadd.xlane.f32.xlu0 %v4736_v58  ;;  %v4510_v6 = vmul.f32 %v5924_v10, %v8325_v44 }
 0x4a7   : > { %v4579_v26 = vmul.f32 0.6931472, %v5926_v38  ;;  %v4404_v2 = vpop.xlane.xlu0 %4403  ;;  %4669 = vst.msk [vmem:[%s8541_s25 + $0x18] sm:$0xff] %vm4153_vm2, %v4637_v41  ;;  %v4701_v15 = vmul.f32 %v4637_v41, %v4509_v60 }
 0x4a8   : > { %5939 = vrcp.f32 %v4404_v2  ;;  %4542 = vst.msk [vmem:[%s8534_s22 + $0x20] sm:$0xff] %vm4153_vm2, %v4510_v6 }
 0x4a9   : > { %v5928_v56 = vpop.eup %5927  ;;  %5941 = vlog2.f32 %v4404_v2  ;;  %v4739_v55 = vsel %vm4153_vm2, %v4701_v15, 0.0  ;;  %v4638_v54 = vsub.f32 %v8291_v53, %v4579_v26 }
 0x4aa   : > { %v5930_v0 = vpop.eup %5929  ;;  %4740 = vadd.xlane.f32.xlu1 %v4739_v55  ;;  %v4511_v44 = vmul.f32 %v5928_v56, %v8333_v3 }
 0x4ab   : > { %v4581_v34 = vmul.f32 0.6931472, %v5930_v0  ;;  %v4407_v45 = vpop.xlane.xlu1 %4406  ;;  %4670 = vst.msk [vmem:[%s8541_s25 + $0x20] sm:$0xff] %vm4153_vm2, %v4638_v54  ;;  %v4702_v9 = vmul.f32 %v4638_v54, %v4510_v6 }
 0x4ac   : > { %5943 = vrcp.f32 %v4407_v45  ;;  %4543 = vst.msk [vmem:[%s8534_s22 + $0x28] sm:$0xff] %vm4153_vm2, %v4511_v44 }
 0x4ad   : > { %v5932_v60 = vpop.eup %5931  ;;  %5945 = vlog2.f32 %v4407_v45  ;;  %v4742_v39 = vsel %vm4153_vm2, %v4702_v9, 0.0  ;;  %v4639_v53 = vsub.f32 %v8299_v23, %v4581_v34 }
 0x4ae   : > { %v5934_v28 = vpop.eup %5933  ;;  %4743 = vadd.xlane.f32.xlu0 %v4742_v39  ;;  %v4512_v3 = vmul.f32 %v5932_v60, %v8341_v27 }
 0x4af   : > { %v4583_v50 = vmul.f32 0.6931472, %v5934_v28  ;;  %v4410_v10 = vpop.xlane.xlu0 %4409  ;;  %4671 = vst.msk [vmem:[%s8541_s25 + $0x28] sm:$0xff] %vm4153_vm2, %v4639_v53  ;;  %v4703_v58 = vmul.f32 %v4639_v53, %v4511_v44 }
 0x4b0   : > { %5947 = vrcp.f32 %v4410_v10  ;;  %4544 = vst.msk [vmem:[%s8534_s22 + $0x30] sm:$0xff] %vm4153_vm2, %v4512_v3 }
 0x4b1   : > { %v5936_v41 = vpop.eup %5935  ;;  %5949 = vlog2.f32 %v4410_v10  ;;  %v4745_v38 = vsel %vm4153_vm2, %v4703_v58, 0.0  ;;  %v4640_v23 = vsub.f32 %v8307_v35, %v4583_v50 }
 0x4b2   : > { %v5938_v6 = vpop.eup %5937  ;;  %4746 = vadd.xlane.f32.xlu1 %v4745_v38  ;;  %v4513_v27 = vmul.f32 %v5936_v41, %v8349_v42 }
 0x4b3   : > { %v4585_v26 = vmul.f32 0.6931472, %v5938_v6  ;;  %v4413_v2 = vpop.xlane.xlu1 %4412  ;;  %4672 = vst.msk [vmem:[%s8541_s25 + $0x30] sm:$0xff] %vm4153_vm2, %v4640_v23  ;;  %v4704_v15 = vmul.f32 %v4640_v23, %v4512_v3 }
 0x4b4   : > { %5951 = vrcp.f32 %v4413_v2  ;;  %4545 = vst.msk [vmem:[%s8534_s22 + $0x38] sm:$0xff] %vm4153_vm2, %v4513_v27 }
 0x4b5   : > { %v5940_v56 = vpop.eup %5939  ;;  %5953 = vlog2.f32 %v4413_v2  ;;  %v4748_v55 = vsel %vm4153_vm2, %v4704_v15, 0.0  ;;  %v4641_v35 = vsub.f32 %v8315_v22, %v4585_v26 }
 0x4b6   : > { %v5942_v54 = vpop.eup %5941  ;;  %4749 = vadd.xlane.f32.xlu0 %v4748_v55  ;;  %v4514_v42 = vmul.f32 %v5940_v56, %v8357_v52 }
 0x4b7   : > { %v4587_v0 = vmul.f32 0.6931472, %v5942_v54  ;;  %v4416_v44 = vpop.xlane.xlu0 %4415  ;;  %4673 = vst.msk [vmem:[%s8541_s25 + $0x38] sm:$0xff] %vm4153_vm2, %v4641_v35  ;;  %v4705_v34 = vmul.f32 %v4641_v35, %v4513_v27 }
 0x4b8   : > { %5955 = vrcp.f32 %v4416_v44  ;;  %4546 = vst.msk [vmem:[%s8534_s22 + $0x40] sm:$0xff] %vm4153_vm2, %v4514_v42 }
 0x4b9   : > { %v5944_v45 = vpop.eup %5943  ;;  %5957 = vlog2.f32 %v4416_v44  ;;  %v4751_v9 = vsel %vm4153_vm2, %v4705_v34, 0.0  ;;  %v4642_v22 = vsub.f32 %v8323_v8, %v4587_v0 }
 0x4ba   : > { %v5946_v60 = vpop.eup %5945  ;;  %4752 = vadd.xlane.f32.xlu1 %v4751_v9  ;;  %v4515_v52 = vmul.f32 %v5944_v45, %v8365_v30 }
 0x4bb   : > { %v4589_v39 = vmul.f32 0.6931472, %v5946_v60  ;;  %v4419_v53 = vpop.xlane.xlu1 %4418  ;;  %4674 = vst.msk [vmem:[%s8541_s25 + $0x40] sm:$0xff] %vm4153_vm2, %v4642_v22  ;;  %v4706_v28 = vmul.f32 %v4642_v22, %v4514_v42 }
 0x4bc   : > { %5959 = vrcp.f32 %v4419_v53  ;;  %4547 = vst.msk [vmem:[%s8534_s22 + $0x48] sm:$0xff] %vm4153_vm2, %v4515_v52 }
 0x4bd   : > { %v5948_v3 = vpop.eup %5947  ;;  %5961 = vlog2.f32 %v4419_v53  ;;  %v4754_v50 = vsel %vm4153_vm2, %v4706_v28, 0.0  ;;  %v4643_v8 = vsub.f32 %v8331_v63, %v4589_v39 }
 0x4be   : > { %v5950_v10 = vpop.eup %5949  ;;  %4755 = vadd.xlane.f32.xlu0 %v4754_v50  ;;  %v4516_v30 = vmul.f32 %v5948_v3, %v8373_v24 }
 0x4bf   : > { %v4591_v58 = vmul.f32 0.6931472, %v5950_v10  ;;  %v4422_v41 = vpop.xlane.xlu0 %4421  ;;  %4675 = vst.msk [vmem:[%s8541_s25 + $0x48] sm:$0xff] %vm4153_vm2, %v4643_v8  ;;  %v4707_v38 = vmul.f32 %v4643_v8, %v4515_v52 }
 0x4c0   : > { %5963 = vrcp.f32 %v4422_v41  ;;  %4548 = vst.msk [vmem:[%s8534_s22 + $0x50] sm:$0xff] %vm4153_vm2, %v4516_v30 }
 0x4c1   : > { %v5952_v23 = vpop.eup %5951  ;;  %5965 = vlog2.f32 %v4422_v41  ;;  %v4757_v6 = vsel %vm4153_vm2, %v4707_v38, 0.0  ;;  %v4644_v63 = vsub.f32 %v8339_v47, %v4591_v58 }
 0x4c2   : > { %v5954_v27 = vpop.eup %5953  ;;  %4758 = vadd.xlane.f32.xlu1 %v4757_v6  ;;  %v4517_v24 = vmul.f32 %v5952_v23, %v8381_v31 }
 0x4c3   : > { %v4593_v26 = vmul.f32 0.6931472, %v5954_v27  ;;  %v4425_v2 = vpop.xlane.xlu1 %4424  ;;  %4676 = vst.msk [vmem:[%s8541_s25 + $0x50] sm:$0xff] %vm4153_vm2, %v4644_v63  ;;  %v4708_v15 = vmul.f32 %v4644_v63, %v4516_v30 }
 0x4c4   : > { %5967 = vrcp.f32 %v4425_v2  ;;  %4549 = vst.msk [vmem:[%s8534_s22 + $0x58] sm:$0xff] %vm4153_vm2, %v4517_v24 }
 0x4c5   : > { %v5956_v56 = vpop.eup %5955  ;;  %5969 = vlog2.f32 %v4425_v2  ;;  %v4760_v55 = vsel %vm4153_vm2, %v4708_v15, 0.0  ;;  %v4645_v47 = vsub.f32 %v8347_v16, %v4593_v26 }
 0x4c6   : > { %v5958_v35 = vpop.eup %5957  ;;  %4761 = vadd.xlane.f32.xlu0 %v4760_v55  ;;  %v4518_v31 = vmul.f32 %v5956_v56, %v8389_v51 }
 0x4c7   : > { %v4595_v54 = vmul.f32 0.6931472, %v5958_v35  ;;  %v4428_v42 = vpop.xlane.xlu0 %4427  ;;  %4677 = vst.msk [vmem:[%s8541_s25 + $0x58] sm:$0xff] %vm4153_vm2, %v4645_v47  ;;  %v4709_v0 = vmul.f32 %v4645_v47, %v4517_v24 }
 0x4c8   : > { %5971 = vrcp.f32 %v4428_v42  ;;  %4550 = vst.msk [vmem:[%s8534_s22 + $0x60] sm:$0xff] %vm4153_vm2, %v4518_v31 }
 0x4c9   : > { %v5960_v44 = vpop.eup %5959  ;;  %5973 = vlog2.f32 %v4428_v42  ;;  %v4763_v34 = vsel %vm4153_vm2, %v4709_v0, 0.0  ;;  %v4646_v16 = vsub.f32 %v8355_v17, %v4595_v54 }
 0x4ca   : > { %v5962_v45 = vpop.eup %5961  ;;  %4764 = vadd.xlane.f32.xlu1 %v4763_v34  ;;  %v4519_v51 = vmul.f32 %v5960_v44, %v8397_v33 }
 0x4cb   : > { %v4597_v9 = vmul.f32 0.6931472, %v5962_v45  ;;  %v4431_v22 = vpop.xlane.xlu1 %4430  ;;  %4678 = vst.msk [vmem:[%s8541_s25 + $0x60] sm:$0xff] %vm4153_vm2, %v4646_v16  ;;  %v4710_v60 = vmul.f32 %v4646_v16, %v4518_v31 }
 0x4cc   : > { %5975 = vrcp.f32 %v4431_v22  ;;  %4551 = vst.msk [vmem:[%s8534_s22 + $0x68] sm:$0xff] %vm4153_vm2, %v4519_v51 }
 0x4cd   : > { %v5964_v52 = vpop.eup %5963  ;;  %5977 = vlog2.f32 %v4431_v22  ;;  %v4766_v39 = vsel %vm4153_vm2, %v4710_v60, 0.0  ;;  %v4647_v17 = vsub.f32 %v8363_v57, %v4597_v9 }
 0x4ce   : > { %v5966_v53 = vpop.eup %5965  ;;  %4767 = vadd.xlane.f32.xlu0 %v4766_v39  ;;  %v4520_v33 = vmul.f32 %v5964_v52, %v8405_v48 }
 0x4cf   : > { %v4599_v28 = vmul.f32 0.6931472, %v5966_v53  ;;  %v4434_v3 = vpop.xlane.xlu0 %4433  ;;  %4679 = vst.msk [vmem:[%s8541_s25 + $0x68] sm:$0xff] %vm4153_vm2, %v4647_v17  ;;  %v4711_v50 = vmul.f32 %v4647_v17, %v4519_v51 }
 0x4d0   : > { %5979 = vrcp.f32 %v4434_v3  ;;  %4552 = vst.msk [vmem:[%s8534_s22 + $0x70] sm:$0xff] %vm4153_vm2, %v4520_v33 }
 0x4d1   : > { %v5968_v8 = vpop.eup %5967  ;;  %5981 = vlog2.f32 %v4434_v3  ;;  %v4769_v10 = vsel %vm4153_vm2, %v4711_v50, 0.0  ;;  %v4648_v57 = vsub.f32 %v8371_v18, %v4599_v28 }
 0x4d2   : > { %v5970_v30 = vpop.eup %5969  ;;  %4770 = vadd.xlane.f32.xlu1 %v4769_v10  ;;  %v4521_v48 = vmul.f32 %v5968_v8, %v8413_v11 }
 0x4d3   : > { %v4601_v58 = vmul.f32 0.6931472, %v5970_v30  ;;  %v4437_v41 = vpop.xlane.xlu1 %4436  ;;  %4680 = vst.msk [vmem:[%s8541_s25 + $0x70] sm:$0xff] %vm4153_vm2, %v4648_v57  ;;  %v4712_v38 = vmul.f32 %v4648_v57, %v4520_v33 }
 0x4d4   : > { %5983 = vrcp.f32 %v4437_v41  ;;  %4553 = vst.msk [vmem:[%s8534_s22 + $0x78] sm:$0xff] %vm4153_vm2, %v4521_v48 }
 0x4d5   : > { %v5972_v23 = vpop.eup %5971  ;;  %5985 = vlog2.f32 %v4437_v41  ;;  %v4772_v6 = vsel %vm4153_vm2, %v4712_v38, 0.0  ;;  %v4649_v18 = vsub.f32 %v8379_v14, %v4601_v58 }
 0x4d6   : > { %v5974_v63 = vpop.eup %5973  ;;  %4773 = vadd.xlane.f32.xlu0 %v4772_v6  ;;  %v4522_v11 = vmul.f32 %v5972_v23, %v8421_v62 }
 0x4d7   : > { %v4603_v27 = vmul.f32 0.6931472, %v5974_v63  ;;  %v4440_v24 = vpop.xlane.xlu0 %4439  ;;  %4681 = vst.msk [vmem:[%s8541_s25 + $0x78] sm:$0xff] %vm4153_vm2, %v4649_v18  ;;  %v4713_v26 = vmul.f32 %v4649_v18, %v4521_v48 }
 0x4d8   : > { %5987 = vrcp.f32 %v4440_v24  ;;  %4554 = vst.msk [vmem:[%s8534_s22 + $0x80] sm:$0xff] %vm4153_vm2, %v4522_v11 }
 0x4d9   : > { %v5976_v2 = vpop.eup %5975  ;;  %5989 = vlog2.f32 %v4440_v24  ;;  %v4775_v15 = vsel %vm4153_vm2, %v4713_v26, 0.0  ;;  %v4650_v14 = vsub.f32 %v8387_v1, %v4603_v27 }
 0x4da   : > { %v5978_v56 = vpop.eup %5977  ;;  %4776 = vadd.xlane.f32.xlu1 %v4775_v15  ;;  %v4523_v62 = vmul.f32 %v5976_v2, %v8429_v20 }
 0x4db   : > { %v4605_v55 = vmul.f32 0.6931472, %v5978_v56  ;;  %v4443_v47 = vpop.xlane.xlu1 %4442  ;;  %4682 = vst.msk [vmem:[%s8541_s25 + $0x80] sm:$0xff] %vm4153_vm2, %v4650_v14  ;;  %v4714_v35 = vmul.f32 %v4650_v14, %v4522_v11 }
 0x4dc   : > { %5991 = vrcp.f32 %v4443_v47  ;;  %4555 = vst.msk [vmem:[%s8534_s22 + $0x88] sm:$0xff] %vm4153_vm2, %v4523_v62 }
 0x4dd   : > { %v5980_v31 = vpop.eup %5979  ;;  %5993 = vlog2.f32 %v4443_v47  ;;  %v4778_v54 = vsel %vm4153_vm2, %v4714_v35, 0.0  ;;  %v4651_v1 = vsub.f32 %v8395_v4, %v4605_v55 }
 0x4de   : > { %v5982_v42 = vpop.eup %5981  ;;  %4779 = vadd.xlane.f32.xlu0 %v4778_v54  ;;  %v4524_v20 = vmul.f32 %v5980_v31, %v8437_v29 }
 0x4df   : > { %v4607_v0 = vmul.f32 0.6931472, %v5982_v42  ;;  %v4446_v44 = vpop.xlane.xlu0 %4445  ;;  %4683 = vst.msk [vmem:[%s8541_s25 + $0x88] sm:$0xff] %vm4153_vm2, %v4651_v1  ;;  %v4715_v34 = vmul.f32 %v4651_v1, %v4523_v62 }
 0x4e0   : > { %5995 = vrcp.f32 %v4446_v44  ;;  %4556 = vst.msk [vmem:[%s8534_s22 + $0x90] sm:$0xff] %vm4153_vm2, %v4524_v20 }
 0x4e1   : > { %v5984_v16 = vpop.eup %5983  ;;  %5997 = vlog2.f32 %v4446_v44  ;;  %v4781_v45 = vsel %vm4153_vm2, %v4715_v34, 0.0  ;;  %v4652_v4 = vsub.f32 %v8403_v46, %v4607_v0 }
 0x4e2   : > { %v5986_v51 = vpop.eup %5985  ;;  %4782 = vadd.xlane.f32.xlu1 %v4781_v45  ;;  %v4525_v29 = vmul.f32 %v5984_v16, %v8445_v12 }
 0x4e3   : > { %v4609_v9 = vmul.f32 0.6931472, %v5986_v51  ;;  %v4449_v22 = vpop.xlane.xlu1 %4448  ;;  %4684 = vst.msk [vmem:[%s8541_s25 + $0x90] sm:$0xff] %vm4153_vm2, %v4652_v4  ;;  %v4716_v60 = vmul.f32 %v4652_v4, %v4524_v20 }
 0x4e4   : > { %5999 = vrcp.f32 %v4449_v22  ;;  %4557 = vst.msk [vmem:[%s8534_s22 + $0x98] sm:$0xff] %vm4153_vm2, %v4525_v29 }
 0x4e5   : > { %v5988_v52 = vpop.eup %5987  ;;  %6001 = vlog2.f32 %v4449_v22  ;;  %v4784_v39 = vsel %vm4153_vm2, %v4716_v60, 0.0  ;;  %v4653_v46 = vsub.f32 %v8411_v19, %v4609_v9  ;;  %v8967_v22 = vld [vmem:[#allocation12_spill] sm:$0xff] }
 0x4e6   : > { %v5990_v17 = vpop.eup %5989  ;;  %4785 = vadd.xlane.f32.xlu0 %v4784_v39  ;;  %v4526_v12 = vmul.f32 %v5988_v52, %v8453_v59 }
 0x4e7   : > { %v4611_v53 = vmul.f32 0.6931472, %v5990_v17  ;;  %v4452_v33 = vpop.xlane.xlu0 %4451  ;;  %4685 = vst.msk [vmem:[%s8541_s25 + $0x98] sm:$0xff] %vm4153_vm2, %v4653_v46  ;;  %v4717_v28 = vmul.f32 %v4653_v46, %v4525_v29  ;;  %v8966_v29 = vld [vmem:[#allocation5_spill] sm:$0xff] }
 0x4e8   : > { %6003 = vrcp.f32 %v4452_v33  ;;  %4558 = vst.msk [vmem:[%s8534_s22 + $0xa0] sm:$0xff] %vm4153_vm2, %v4526_v12 }
 0x4e9   : > { %v5992_v3 = vpop.eup %5991  ;;  %6005 = vlog2.f32 %v4452_v33  ;;  %v4787_v50 = vsel %vm4153_vm2, %v4717_v28, 0.0  ;;  %v4654_v19 = vsub.f32 %v8419_v49, %v4611_v53  ;;  %v8969_v28 = vld [vmem:[#allocation14_spill] sm:$0xff] }
 0x4ea   : > { %v5994_v8 = vpop.eup %5993  ;;  %4788 = vadd.xlane.f32.xlu1 %v4787_v50  ;;  %v4527_v59 = vmul.f32 %v5992_v3, %v8461_v43 }
 0x4eb   : > { %v4613_v10 = vmul.f32 0.6931472, %v5994_v8  ;;  %v4455_v57 = vpop.xlane.xlu1 %4454  ;;  %4686 = vst.msk [vmem:[%s8541_s25 + $0xa0] sm:$0xff] %vm4153_vm2, %v4654_v19  ;;  %v4718_v30 = vmul.f32 %v4654_v19, %v4526_v12  ;;  %v8968_v12 = vld [vmem:[#allocation6_spill] sm:$0xff] }
 0x4ec   : > { %6007 = vrcp.f32 %v4455_v57  ;;  %4559 = vst.msk [vmem:[%s8534_s22 + $0xa8] sm:$0xff] %vm4153_vm2, %v4527_v59 }
 0x4ed   : > { %v5996_v48 = vpop.eup %5995  ;;  %6009 = vlog2.f32 %v4455_v57  ;;  %v4790_v58 = vsel %vm4153_vm2, %v4718_v30, 0.0  ;;  %v4655_v49 = vsub.f32 %v8427_v21, %v4613_v10  ;;  %v8970_v10 = vld [vmem:[#allocation7_spill] sm:$0xff] }
 0x4ee   : > { %v5998_v41 = vpop.eup %5997  ;;  %4791 = vadd.xlane.f32.xlu0 %v4790_v58  ;;  %v4528_v43 = vmul.f32 %v5996_v48, %v8469_v13  ;;  %v8971_v48 = vld [vmem:[#allocation11_spill] sm:$0xff] }
 0x4ef   : > { %v4615_v38 = vmul.f32 0.6931472, %v5998_v41  ;;  %v4458_v23 = vpop.xlane.xlu0 %4457  ;;  %4687 = vst.msk [vmem:[%s8541_s25 + $0xa8] sm:$0xff] %vm4153_vm2, %v4655_v49  ;;  %v4719_v6 = vmul.f32 %v4655_v49, %v4527_v59 }
 0x4f0   : > { %6011 = vrcp.f32 %v4458_v23  ;;  %4560 = vst.msk [vmem:[%s8534_s22 + $0xb0] sm:$0xff] %vm4153_vm2, %v4528_v43 }
 0x4f1   : > { %v6000_v18 = vpop.eup %5999  ;;  %6013 = vlog2.f32 %v4458_v23  ;;  %v4793_v63 = vsel %vm4153_vm2, %v4719_v6, 0.0  ;;  %v4656_v21 = vsub.f32 %v8435_v5, %v4615_v38  ;;  %v8972_v23 = vld [vmem:[#allocation9_spill] sm:$0xff] }
 0x4f2   : > { %v6002_v11 = vpop.eup %6001  ;;  %4794 = vadd.xlane.f32.xlu1 %v4793_v63  ;;  %v4529_v13 = vmul.f32 %v6000_v18, %v8477_v61  ;;  %v8973_v63 = vld [vmem:[#allocation17_spill] sm:$0xff] }
 0x4f3   : > { %v4617_v27 = vmul.f32 0.6931472, %v6002_v11  ;;  %v4461_v24 = vpop.xlane.xlu1 %4460  ;;  %4688 = vst.msk [vmem:[%s8541_s25 + $0xb0] sm:$0xff] %vm4153_vm2, %v4656_v21  ;;  %v4720_v26 = vmul.f32 %v4656_v21, %v4528_v43 }
 0x4f4   : > { %6015 = vrcp.f32 %v4461_v24  ;;  %4561 = vst.msk [vmem:[%s8534_s22 + $0xb8] sm:$0xff] %vm4153_vm2, %v4529_v13 }
 0x4f5   : > { %v6004_v2 = vpop.eup %6003  ;;  %6017 = vlog2.f32 %v4461_v24  ;;  %v4796_v15 = vsel %vm4153_vm2, %v4720_v26, 0.0  ;;  %v4657_v5 = vsub.f32 %v8443_v36, %v4617_v27  ;;  %v8974_v26 = vld [vmem:[#allocation10_spill] sm:$0xff] }
 0x4f6   : > { %v6006_v14 = vpop.eup %6005  ;;  %4797 = vadd.xlane.f32.xlu0 %v4796_v15  ;;  %v4530_v61 = vmul.f32 %v6004_v2, %v8485_v37 }
 0x4f7   : > { %v4619_v56 = vmul.f32 0.6931472, %v6006_v14  ;;  %v4464_v62 = vpop.xlane.xlu0 %4463  ;;  %4689 = vst.msk [vmem:[%s8541_s25 + $0xb8] sm:$0xff] %vm4153_vm2, %v4657_v5  ;;  %v4721_v55 = vmul.f32 %v4657_v5, %v4529_v13  ;;  %v8975_v5 = vld [vmem:[#allocation20_spill] sm:$0xff] }
 0x4f8   : > { %6019 = vrcp.f32 %v4464_v62  ;;  %4562 = vst.msk [vmem:[%s8534_s22 + $0xc0] sm:$0xff] %vm4153_vm2, %v4530_v61 }
 0x4f9   : > { %v6008_v47 = vpop.eup %6007  ;;  %6021 = vlog2.f32 %v4464_v62  ;;  %v4799_v35 = vsel %vm4153_vm2, %v4721_v55, 0.0  ;;  %v4658_v36 = vsub.f32 %v8451_v40, %v4619_v56  ;;  %v8976_v55 = vld [vmem:[#allocation8_spill] sm:$0xff] }
 0x4fa   : > { %v6010_v31 = vpop.eup %6009  ;;  %4800 = vadd.xlane.f32.xlu1 %v4799_v35  ;;  %v4531_v37 = vmul.f32 %v6008_v47, %v8493_v25 }
 0x4fb   : > { %v4621_v54 = vmul.f32 0.6931472, %v6010_v31  ;;  %v4467_v1 = vpop.xlane.xlu1 %4466  ;;  %4690 = vst.msk [vmem:[%s8541_s25 + $0xc0] sm:$0xff] %vm4153_vm2, %v4658_v36  ;;  %v4722_v42 = vmul.f32 %v4658_v36, %v4530_v61 }
 0x4fc   : > { %6023 = vrcp.f32 %v4467_v1  ;;  %4563 = vst.msk [vmem:[%s8534_s22 + $0xc8] sm:$0xff] %vm4153_vm2, %v4531_v37 }
 0x4fd   : > { %v6012_v20 = vpop.eup %6011  ;;  %6025 = vlog2.f32 %v4467_v1  ;;  %v4802_v0 = vsel %vm4153_vm2, %v4722_v42, 0.0  ;;  %v4659_v40 = vsub.f32 %v8459_v7, %v4621_v54 }
 0x4fe   : > { %v6014_v44 = vpop.eup %6013  ;;  %4803 = vadd.xlane.f32.xlu0 %v4802_v0  ;;  %v4532_v25 = vmul.f32 %v6012_v20, %v8501_v32 }
 0x4ff   : > { %v4623_v34 = vmul.f32 0.6931472, %v6014_v44  ;;  %v4470_v16 = vpop.xlane.xlu0 %4469  ;;  %4691 = vst.msk [vmem:[%s8541_s25 + $0xc8] sm:$0xff] %vm4153_vm2, %v4659_v40  ;;  %v4723_v45 = vmul.f32 %v4659_v40, %v4531_v37 }
 0x500   : > { %6027 = vrcp.f32 %v4470_v16  ;;  %4564 = vst.msk [vmem:[%s8534_s22 + $0xd0] sm:$0xff] %vm4153_vm2, %v4532_v25 }
 0x501   : > { %v6016_v4 = vpop.eup %6015  ;;  %6029 = vlog2.f32 %v4470_v16  ;;  %v4805_v51 = vsel %vm4153_vm2, %v4723_v45, 0.0  ;;  %v4660_v7 = vsub.f32 %v8966_v29, %v4623_v34 }
 0x502   : > { %v6018_v9 = vpop.eup %6017  ;;  %4806 = vadd.xlane.f32.xlu1 %v4805_v51  ;;  %v4533_v32 = vmul.f32 %v6016_v4, %v8967_v22 }
 0x503   : > { %v4625_v60 = vmul.f32 0.6931472, %v6018_v9  ;;  %v4473_v52 = vpop.xlane.xlu1 %4472  ;;  %4692 = vst.msk [vmem:[%s8541_s25 + $0xd0] sm:$0xff] %vm4153_vm2, %v4660_v7  ;;  %v4724_v39 = vmul.f32 %v4660_v7, %v4532_v25 }
 0x504   : > { %6031 = vrcp.f32 %v4473_v52  ;;  %4565 = vst.msk [vmem:[%s8534_s22 + $0xd8] sm:$0xff] %vm4153_vm2, %v4533_v32 }
 0x505   : > { %v6020_v46 = vpop.eup %6019  ;;  %6033 = vlog2.f32 %v4473_v52  ;;  %v4808_v17 = vsel %vm4153_vm2, %v4724_v39, 0.0  ;;  %v4661_v53 = vsub.f32 %v8968_v12, %v4625_v60 }
 0x506   : > { %v6022_v33 = vpop.eup %6021  ;;  %4809 = vadd.xlane.f32.xlu0 %v4808_v17  ;;  %v4534_v3 = vmul.f32 %v6020_v46, %v8969_v28 }
 0x507   : > { %v4627_v50 = vmul.f32 0.6931472, %v6022_v33  ;;  %4693 = vst.msk [vmem:[%s8541_s25 + $0xd8] sm:$0xff] %vm4153_vm2, %v4661_v53  ;;  %v4725_v19 = vmul.f32 %v4661_v53, %v4533_v32 }
 0x508   : > { %4566 = vst.msk [vmem:[%s8534_s22 + $0xe0] sm:$0xff] %vm4153_vm2, %v4534_v3 }
 0x509   : > { %v6024_v8 = vpop.eup %6023  ;;  %v4811_v59 = vsel %vm4153_vm2, %v4725_v19, 0.0  ;;  %v4662_v57 = vsub.f32 %v8970_v10, %v4627_v50 }
 0x50a   : > { %v6026_v30 = vpop.eup %6025  ;;  %4812 = vadd.xlane.f32.xlu1 %v4811_v59  ;;  %v4535_v58 = vmul.f32 %v6024_v8, %v8971_v48 }
 0x50b   : > { %v4629_v49 = vmul.f32 0.6931472, %v6026_v30  ;;  %4694 = vst.msk [vmem:[%s8541_s25 + $0xe0] sm:$0xff] %vm4153_vm2, %v4662_v57  ;;  %v4726_v41 = vmul.f32 %v4662_v57, %v4534_v3 }
 0x50c   : > { %4567 = vst.msk [vmem:[%s8534_s22 + $0xe8] sm:$0xff] %vm4153_vm2, %v4535_v58 }
 0x50d   : > { %v6028_v43 = vpop.eup %6027  ;;  %v4814_v38 = vsel %vm4153_vm2, %v4726_v41, 0.0  ;;  %v4663_v6 = vsub.f32 %v8972_v23, %v4629_v49 }
 0x50e   : > { %v6030_v18 = vpop.eup %6029  ;;  %4815 = vadd.xlane.f32.xlu0 %v4814_v38  ;;  %v4536_v21 = vmul.f32 %v6028_v43, %v8973_v63 }
 0x50f   : > { %v4631_v11 = vmul.f32 0.6931472, %v6030_v18  ;;  %4695 = vst.msk [vmem:[%s8541_s25 + $0xe8] sm:$0xff] %vm4153_vm2, %v4663_v6  ;;  %v4727_v13 = vmul.f32 %v4663_v6, %v4535_v58 }
 0x510   : > { %4568 = vst.msk [vmem:[%s8534_s22 + $0xf0] sm:$0xff] %vm4153_vm2, %v4536_v21 }
 0x511   : > { %v6032_v27 = vpop.eup %6031  ;;  %v4817_v24 = vsel %vm4153_vm2, %v4727_v13, 0.0  ;;  %v4664_v2 = vsub.f32 %v8974_v26, %v4631_v11 }
 0x512   : > { %v6034_v15 = vpop.eup %6033  ;;  %4818 = vadd.xlane.f32.xlu1 %v4817_v24  ;;  %v4537_v14 = vmul.f32 %v6032_v27, %v8975_v5 }
 0x513   : > { %v4633_v61 = vmul.f32 0.6931472, %v6034_v15  ;;  %4696 = vst.msk [vmem:[%s8541_s25 + $0xf0] sm:$0xff] %vm4153_vm2, %v4664_v2  ;;  %v4728_v56 = vmul.f32 %v4664_v2, %v4536_v21 }
 0x514   : > { %4569 = vst.msk [vmem:[%s8534_s22 + $0xf8] sm:$0xff] %vm4153_vm2, %v4537_v14 }
 0x515   : > { %v4820_v62 = vsel %vm4153_vm2, %v4728_v56, 0.0  ;;  %v4665_v47 = vsub.f32 %v8976_v55, %v4633_v61 }
 0x516   : > { %4821 = vadd.xlane.f32.xlu0 %v4820_v62 }
 0x517   : > { %4697 = vst.msk [vmem:[%s8541_s25 + $0xf8] sm:$0xff] %vm4153_vm2, %v4665_v47  ;;  %v4729_v35 = vmul.f32 %v4665_v47, %v4537_v14 }
 0x519   : > { %v4823_v36 = vsel %vm4153_vm2, %v4729_v35, 0.0 }
 0x51a   : > { %4824 = vadd.xlane.f32.xlu1 %v4823_v36 }
 0x527   : > { %v4732_v31 = vpop.xlane.xlu0 %4731 }
 0x528   : > { %v4826_v37 = vsub.f32 0.0, %v4732_v31 }
 0x52a   : > { %4859 = vst.msk [vmem:[%s8770_s30] sm:$0xff] %vm4858_vm4, %v4826_v37 }
 0x52b   : > { %v4735_v54 = vpop.xlane.xlu1 %4734 }
 0x52c   : > { %v4827_v1 = vsub.f32 0.0, %v4735_v54 }
 0x52e   : > { %4860 = vst.msk [vmem:[%s8770_s30 + $0x8] sm:$0xff] %vm4858_vm4, %v4827_v1 }
 0x52f   : > { %v4738_v42 = vpop.xlane.xlu0 %4737 }
 0x530   : > { %v4828_v20 = vsub.f32 0.0, %v4738_v42 }
 0x532   : > { %4861 = vst.msk [vmem:[%s8770_s30 + $0x10] sm:$0xff] %vm4858_vm4, %v4828_v20 }
 0x533   : > { %v4741_v0 = vpop.xlane.xlu1 %4740 }
 0x534   : > { %v4829_v40 = vsub.f32 0.0, %v4741_v0 }
 0x536   : > { %4862 = vst.msk [vmem:[%s8770_s30 + $0x18] sm:$0xff] %vm4858_vm4, %v4829_v40 }
 0x537   : > { %v4744_v44 = vpop.xlane.xlu0 %4743 }
 0x538   : > { %v4830_v25 = vsub.f32 0.0, %v4744_v44 }
 0x53a   : > { %4863 = vst.msk [vmem:[%s8770_s30 + $0x20] sm:$0xff] %vm4858_vm4, %v4830_v25 }
 0x53b   : > { %v4747_v34 = vpop.xlane.xlu1 %4746 }
 0x53c   : > { %v4831_v16 = vsub.f32 0.0, %v4747_v34 }
 0x53e   : > { %4864 = vst.msk [vmem:[%s8770_s30 + $0x28] sm:$0xff] %vm4858_vm4, %v4831_v16 }
 0x53f   : > { %v4750_v45 = vpop.xlane.xlu0 %4749 }
 0x540   : > { %v4832_v4 = vsub.f32 0.0, %v4750_v45 }
 0x542   : > { %4865 = vst.msk [vmem:[%s8770_s30 + $0x30] sm:$0xff] %vm4858_vm4, %v4832_v4 }
 0x543   : > { %v4753_v51 = vpop.xlane.xlu1 %4752 }
 0x544   : > { %v4833_v29 = vsub.f32 0.0, %v4753_v51 }
 0x546   : > { %4866 = vst.msk [vmem:[%s8770_s30 + $0x38] sm:$0xff] %vm4858_vm4, %v4833_v29 }
 0x547   : > { %v4756_v7 = vpop.xlane.xlu0 %4755 }
 0x548   : > { %v4834_v9 = vsub.f32 0.0, %v4756_v7 }
 0x54a   : > { %4867 = vst.msk [vmem:[%s8770_s30 + $0x40] sm:$0xff] %vm4858_vm4, %v4834_v9 }
 0x54b   : > { %v4759_v22 = vpop.xlane.xlu1 %4758 }
 0x54c   : > { %v4835_v32 = vsub.f32 0.0, %v4759_v22 }
 0x54e   : > { %4868 = vst.msk [vmem:[%s8770_s30 + $0x48] sm:$0xff] %vm4858_vm4, %v4835_v32 }
 0x54f   : > { %v4762_v60 = vpop.xlane.xlu0 %4761 }
 0x550   : > { %v4836_v52 = vsub.f32 0.0, %v4762_v60 }
 0x552   : > { %4869 = vst.msk [vmem:[%s8770_s30 + $0x50] sm:$0xff] %vm4858_vm4, %v4836_v52 }
 0x553   : > { %v4765_v39 = vpop.xlane.xlu1 %4764 }
 0x554   : > { %v4837_v46 = vsub.f32 0.0, %v4765_v39 }
 0x556   : > { %4870 = vst.msk [vmem:[%s8770_s30 + $0x58] sm:$0xff] %vm4858_vm4, %v4837_v46 }
 0x557   : > { %v4768_v17 = vpop.xlane.xlu0 %4767 }
 0x558   : > { %v4838_v12 = vsub.f32 0.0, %v4768_v17 }
 0x55a   : > { %4871 = vst.msk [vmem:[%s8770_s30 + $0x60] sm:$0xff] %vm4858_vm4, %v4838_v12 }
 0x55b   : > { %v4771_v53 = vpop.xlane.xlu1 %4770 }
 0x55c   : > { %v4839_v33 = vsub.f32 0.0, %v4771_v53 }
 0x55e   : > { %4872 = vst.msk [vmem:[%s8770_s30 + $0x68] sm:$0xff] %vm4858_vm4, %v4839_v33 }
 0x55f   : > { %v4774_v28 = vpop.xlane.xlu0 %4773 }
 0x560   : > { %v4840_v3 = vsub.f32 0.0, %v4774_v28 }
 0x562   : > { %4873 = vst.msk [vmem:[%s8770_s30 + $0x70] sm:$0xff] %vm4858_vm4, %v4840_v3 }
 0x563   : > { %v4777_v50 = vpop.xlane.xlu1 %4776 }
 0x564   : > { %v4841_v19 = vsub.f32 0.0, %v4777_v50 }
 0x566   : > { %4874 = vst.msk [vmem:[%s8770_s30 + $0x78] sm:$0xff] %vm4858_vm4, %v4841_v19 }
 0x567   : > { %v4780_v8 = vpop.xlane.xlu0 %4779 }
 0x568   : > { %v4842_v59 = vsub.f32 0.0, %v4780_v8 }
 0x56a   : > { %4875 = vst.msk [vmem:[%s8770_s30 + $0x80] sm:$0xff] %vm4858_vm4, %v4842_v59 }
 0x56b   : > { %v4783_v10 = vpop.xlane.xlu1 %4782 }
 0x56c   : > { %v4843_v57 = vsub.f32 0.0, %v4783_v10 }
 0x56e   : > { %4876 = vst.msk [vmem:[%s8770_s30 + $0x88] sm:$0xff] %vm4858_vm4, %v4843_v57 }
 0x56f   : > { %v4786_v30 = vpop.xlane.xlu0 %4785 }
 0x570   : > { %v4844_v48 = vsub.f32 0.0, %v4786_v30 }
 0x572   : > { %4877 = vst.msk [vmem:[%s8770_s30 + $0x90] sm:$0xff] %vm4858_vm4, %v4844_v48 }
 0x573   : > { %v4789_v58 = vpop.xlane.xlu1 %4788 }
 0x574   : > { %v4845_v49 = vsub.f32 0.0, %v4789_v58 }
 0x576   : > { %4878 = vst.msk [vmem:[%s8770_s30 + $0x98] sm:$0xff] %vm4858_vm4, %v4845_v49 }
 0x577   : > { %v4792_v41 = vpop.xlane.xlu0 %4791 }
 0x578   : > { %v4846_v43 = vsub.f32 0.0, %v4792_v41 }
 0x57a   : > { %4879 = vst.msk [vmem:[%s8770_s30 + $0xa0] sm:$0xff] %vm4858_vm4, %v4846_v43 }
 0x57b   : > { %v4795_v38 = vpop.xlane.xlu1 %4794 }
 0x57c   : > { %v4847_v23 = vsub.f32 0.0, %v4795_v38 }
 0x57e   : > { %4880 = vst.msk [vmem:[%s8770_s30 + $0xa8] sm:$0xff] %vm4858_vm4, %v4847_v23 }
 0x57f   : > { %v4798_v6 = vpop.xlane.xlu0 %4797 }
 0x580   : > { %v4848_v18 = vsub.f32 0.0, %v4798_v6 }
 0x582   : > { %4881 = vst.msk [vmem:[%s8770_s30 + $0xb0] sm:$0xff] %vm4858_vm4, %v4848_v18 }
 0x583   : > { %v4801_v63 = vpop.xlane.xlu1 %4800 }
 0x584   : > { %v4849_v21 = vsub.f32 0.0, %v4801_v63 }
 0x586   : > { %4882 = vst.msk [vmem:[%s8770_s30 + $0xb8] sm:$0xff] %vm4858_vm4, %v4849_v21 }
 0x587   : > { %v4804_v11 = vpop.xlane.xlu0 %4803 }
 0x588   : > { %v4850_v13 = vsub.f32 0.0, %v4804_v11 }
 0x58a   : > { %4883 = vst.msk [vmem:[%s8770_s30 + $0xc0] sm:$0xff] %vm4858_vm4, %v4850_v13 }
 0x58b   : > { %v4807_v27 = vpop.xlane.xlu1 %4806 }
 0x58c   : > { %v4851_v24 = vsub.f32 0.0, %v4807_v27 }
 0x58e   : > { %4884 = vst.msk [vmem:[%s8770_s30 + $0xc8] sm:$0xff] %vm4858_vm4, %v4851_v24 }
 0x58f   : > { %v4810_v26 = vpop.xlane.xlu0 %4809 }
 0x590   : > { %v4852_v2 = vsub.f32 0.0, %v4810_v26 }
 0x592   : > { %4885 = vst.msk [vmem:[%s8770_s30 + $0xd0] sm:$0xff] %vm4858_vm4, %v4852_v2 }
 0x593   : > { %v4813_v15 = vpop.xlane.xlu1 %4812 }
 0x594   : > { %v4853_v5 = vsub.f32 0.0, %v4813_v15 }
 0x596   : > { %4886 = vst.msk [vmem:[%s8770_s30 + $0xd8] sm:$0xff] %vm4858_vm4, %v4853_v5 }
 0x597   : > { %v4816_v14 = vpop.xlane.xlu0 %4815 }
 0x598   : > { %v4854_v61 = vsub.f32 0.0, %v4816_v14 }
 0x59a   : > { %4887 = vst.msk [vmem:[%s8770_s30 + $0xe0] sm:$0xff] %vm4858_vm4, %v4854_v61 }
 0x59b   : > { %v4819_v56 = vpop.xlane.xlu1 %4818 }
 0x59c   : > { %v4855_v62 = vsub.f32 0.0, %v4819_v56 }
 0x59e   : > { %4888 = vst.msk [vmem:[%s8770_s30 + $0xe8] sm:$0xff] %vm4858_vm4, %v4855_v62 }
 0x59f   : > { %v4822_v55 = vpop.xlane.xlu0 %4821 }
 0x5a0   : > { %v4856_v47 = vsub.f32 0.0, %v4822_v55 }
 0x5a2   : > { %4889 = vst.msk [vmem:[%s8770_s30 + $0xf0] sm:$0xff] %vm4858_vm4, %v4856_v47 }
 0x5a3   : > { %v4825_v35 = vpop.xlane.xlu1 %4824 }
 0x5a4   : > { %v4857_v36 = vsub.f32 0.0, %v4825_v35 }
 0x5a6   : > { %4890 = vst.msk [vmem:[%s8770_s30 + $0xf8] sm:$0xff] %vm4858_vm4, %v4857_v36 }
 0x5a7 PF: > { %s22_s17 = sadd.s32 1, %s6083_s17  }
 0x5a8   : > { %p19_p4 = scmp.ge.s32.totalorder %s22_s17, 4  }
 0x5aa   :  { %21 = sbr.rel (!%p19_p4) target bundleno = 1 (0x1), region = 121 }

</bundles_post_ra>
